<compile_context>
chip_gen: v7x
topology: tpu7x:2x2x1
jax: 0.10.0
libtpu: 0.0.40
codegen_flags: <defaults>
</compile_context>

<pallas_src>
import functools

import jax
import jax.numpy as jnp
from jax.experimental import pallas as pl
from jax.experimental.pallas import tpu as pltpu

LANE = 128  # TPU lane width


# ----------------------------------------------------------------------------
# small helpers
# ----------------------------------------------------------------------------
def _round_up(x, m):
    return (x + m - 1) // m * m


def _pad_to(a, axis, size):
    cur = a.shape[axis]
    if cur == size:
        return a
    cfg = [(0, 0)] * a.ndim
    cfg[axis] = (0, size - cur)
    return jnp.pad(a, cfg)


# ----------------------------------------------------------------------------
# Pallas kernels
# ----------------------------------------------------------------------------
def _conv_relu_pool_kernel(p_ref, w_ref, b_ref, o_ref):
    """Fused conv(5x5) + 2x2 maxpool + bias + ReLU for a block of B images.

    p_ref: (4, B, Mpad, Kpad) bf16  im2col rows, tap-major (Mpad multiple of 8)
    w_ref: (Kpad, Cpad)       bf16  packed conv weights
    b_ref: (1, Cpad)          f32   packed bias
    o_ref: (B*Mpad, Cpad)     bf16  pooled output rows
    """
    T, B, Mp, Kp = p_ref.shape
    R = B * Mp
    p = p_ref[...].reshape(T * R, Kp)                     # free relabel (Mp % 8 == 0)
    y = jnp.dot(p, w_ref[...], preferred_element_type=jnp.float32)   # (4R, Cpad)
    # 2x2 max-pool = elementwise max over the 4 tap slabs.
    y = jnp.maximum(jnp.maximum(y[0:R], y[R:2 * R]),
                    jnp.maximum(y[2 * R:3 * R], y[3 * R:4 * R]))
    y = jnp.maximum(y + b_ref[...], 0.0)                  # bias + ReLU (hoisted)
    o_ref[...] = y.astype(o_ref.dtype)


def _mlp_kernel(x_ref, w1_ref, b1_ref, w2_ref, b2_ref, w3_ref, b3_ref, o_ref):
    """Fused fc1 -> ReLU -> fc2 -> ReLU -> fc3 for one batch tile."""
    h = jnp.dot(x_ref[...], w1_ref[...], preferred_element_type=jnp.float32)
    h = jnp.maximum(h + b1_ref[...], 0.0).astype(jnp.bfloat16)
    h = jnp.dot(h, w2_ref[...], preferred_element_type=jnp.float32)
    h = jnp.maximum(h + b2_ref[...], 0.0).astype(jnp.bfloat16)
    h = jnp.dot(h, w3_ref[...], preferred_element_type=jnp.float32)
    o_ref[...] = (h + b3_ref[...]).astype(o_ref.dtype)


# ----------------------------------------------------------------------------
# XLA glue: patch extraction (one row group per 2x2 pool tap)
# ----------------------------------------------------------------------------
def _im2col_pool_taps(x, kh, kw):
    """x: (N,H,W,C) -> (4, N, Hp*Wp, kh*kw*C); columns ordered (i, j, c)."""
    N, H, W, C = x.shape
    Ho, Wo = H - kh + 1, W - kw + 1
    Hp, Wp = Ho // 2, Wo // 2
    cols = []
    for i in range(kh):
        for j in range(kw):
            cols.append(x[:, i:i + Ho, j:j + Wo, :])          # (N, Ho, Wo, C)
    pat = jnp.concatenate(cols, axis=-1)                      # (N, Ho, Wo, K)
    taps = []
    for dy in range(2):
        for dx in range(2):
            t = pat[:, dy:2 * Hp:2, dx:2 * Wp:2, :]           # (N, Hp, Wp, K)
            taps.append(t.reshape(N, Hp * Wp, kh * kw * C))
    return jnp.stack(taps, axis=0)                            # (4, N, M, K)


# ----------------------------------------------------------------------------
# Pallas-backed ops
# ----------------------------------------------------------------------------
def conv5x5_relu_pool(x_nhwc, w2d, b2d, *, block_n=16):
    """Fused 5x5 valid conv + ReLU + 2x2 maxpool (Conv2d+ReLU+MaxPool2d).

    x_nhwc: (N, H, W, Cx) bf16 (real channels only)
    w2d:    (Kpad, Cpad)  bf16 packed weights
    b2d:    (1, Cpad)     f32  packed bias
    returns (N, Hp, Wp, Cpad) bf16 (padded out-channels are zero).
    """
    N, H, W, Cx = x_nhwc.shape
    kh = kw = 5
    Ho, Wo = H - kh + 1, W - kw + 1
    Hp, Wp = Ho // 2, Wo // 2
    M = Hp * Wp
    Mp = _round_up(M, 8)                       # dense sublanes for store/reshape
    Kin = kh * kw * Cx
    Kpad, Cpad = w2d.shape
    assert Kpad == _round_up(Kin, LANE), (Kpad, Kin)

    B = min(block_n, N)                        # images per grid step
    Nb = _round_up(N, B)

    P = _im2col_pool_taps(x_nhwc, kh, kw)                     # (4, N, M, Kin)
    P = _pad_to(P, 1, Nb)
    P = _pad_to(P, 2, Mp)
    P = _pad_to(P, 3, Kpad).astype(jnp.bfloat16)

    rows = B * Mp
    flops = 2 * Nb * 4 * Mp * Kpad * Cpad
    bytes_acc = P.size * 2 + w2d.size * 2 + b2d.size * 4 + Nb * Mp * Cpad * 2

    out = pl.pallas_call(
        _conv_relu_pool_kernel,
        out_shape=jax.ShapeDtypeStruct((Nb * Mp, Cpad), jnp.bfloat16),
        grid=(Nb // B,),
        in_specs=[
            pl.BlockSpec((4, B, Mp, Kpad), lambda n: (0, n, 0, 0)),
            pl.BlockSpec((Kpad, Cpad), lambda n: (0, 0)),      # weights resident
            pl.BlockSpec((1, Cpad), lambda n: (0, 0)),         # bias resident
        ],
        out_specs=pl.BlockSpec((rows, Cpad), lambda n: (n, 0)),
        compiler_params=pltpu.CompilerParams(
            dimension_semantics=("parallel",)),                # split batch over TCs
        cost_estimate=pl.CostEstimate(
            flops=flops, transcendentals=0, bytes_accessed=bytes_acc),
    )(P, w2d, b2d)
    out = out.reshape(Nb, Mp, Cpad)[:N, :M].reshape(N, Hp, Wp, Cpad)
    return out


def mlp_head(x2d, w1, b1, w2, b2, w3, b3, *, block_rows=256):
    """Batch-tiled fused fc1->relu->fc2->relu->fc3 (intermediates stay in VMEM)."""
    N, Kin = x2d.shape
    K1 = w1.shape[0]
    Np = w3.shape[1]

    TB = min(block_rows, _round_up(N, 8))
    Nb = _round_up(N, TB)
    x = _pad_to(_pad_to(x2d, 1, K1), 0, Nb).astype(jnp.bfloat16)

    flops = 2 * Nb * (w1.shape[0] * w1.shape[1]
                      + w2.shape[0] * w2.shape[1]
                      + w3.shape[0] * w3.shape[1])
    bytes_acc = ((x.size + w1.size + w2.size + w3.size) * 2
                 + (b1.size + b2.size + b3.size) * 4 + Nb * Np * 4)

    def const_spec(shape):
        return pl.BlockSpec(shape, lambda n: (0, 0))

    out = pl.pallas_call(
        _mlp_kernel,
        out_shape=jax.ShapeDtypeStruct((Nb, Np), jnp.float32),
        grid=(Nb // TB,),
        in_specs=[
            pl.BlockSpec((TB, K1), lambda n: (n, 0)),
            const_spec(w1.shape), const_spec(b1.shape),
            const_spec(w2.shape), const_spec(b2.shape),
            const_spec(w3.shape), const_spec(b3.shape),
        ],
        out_specs=pl.BlockSpec((TB, Np), lambda n: (n, 0)),
        compiler_params=pltpu.CompilerParams(
            dimension_semantics=("parallel",)),
        cost_estimate=pl.CostEstimate(
            flops=flops, transcendentals=0, bytes_accessed=bytes_acc),
    )(x, w1, b1, w2, b2, w3, b3)
    return out[:N]


# ----------------------------------------------------------------------------
# parameter init (torch layouts) and one-time packing into padded bf16 operands
# ----------------------------------------------------------------------------
def init_lenet5_params(key, num_classes=10, gray_scale=False):
    in_ch = 1 if gray_scale else 3
    ks = jax.random.split(key, 5)

    def w_init(k, shape, fan_in):
        return jax.random.normal(k, shape, jnp.float32) / jnp.sqrt(fan_in)

    return {
        "conv1_w": w_init(ks[0], (6 * in_ch, in_ch, 5, 5), in_ch * 25),
        "conv1_b": jnp.zeros((6 * in_ch,), jnp.float32),
        "conv2_w": w_init(ks[1], (16 * in_ch, 6 * in_ch, 5, 5), 6 * in_ch * 25),
        "conv2_b": jnp.zeros((16 * in_ch,), jnp.float32),
        "fc1_w": w_init(ks[2], (120 * in_ch, 16 * 5 * 5 * in_ch), 16 * 25 * in_ch),
        "fc1_b": jnp.zeros((120 * in_ch,), jnp.float32),
        "fc2_w": w_init(ks[3], (84 * in_ch, 120 * in_ch), 120 * in_ch),
        "fc2_b": jnp.zeros((84 * in_ch,), jnp.float32),
        "fc3_w": w_init(ks[4], (num_classes, 84 * in_ch), 84 * in_ch),
        "fc3_b": jnp.zeros((num_classes,), jnp.float32),
    }


def pack_lenet5_params(params):
    """One-time re-layout of torch-layout params into padded bf16 matmul operands.

    Contractions are packed against the REAL input channel counts (K slimming);
    only the final K / out dims are rounded up to lane multiples.
    """
    c1w, c2w = params["conv1_w"], params["conv2_w"]
    c2 = c2w.shape[0]  # real conv2 out channels

    def pack_conv(w):
        # (Cout, Cin, kh, kw) -> (round_up(kh*kw*Cin,128), round_up(Cout,128)),
        # contraction ordered (i, j, c) to match _im2col_pool_taps columns.
        cout, cin, kh, kw = w.shape
        wk = jnp.transpose(w, (2, 3, 1, 0)).reshape(kh * kw * cin, cout)
        wk = _pad_to(wk, 0, _round_up(kh * kw * cin, LANE))
        wk = _pad_to(wk, 1, _round_up(cout, LANE))
        return wk.astype(jnp.bfloat16)

    def pack_bias(b):
        return _pad_to(b.reshape(1, -1), 1,
                       _round_up(b.shape[0], LANE)).astype(jnp.float32)

    # fc1: permute input columns from torch's (c, h, w) flatten to our NHWC
    # (h, w, c) flatten over the real c2 channels; pad K and out to lane mults.
    f1w = params["fc1_w"]                                      # (f1, c2*5*5)
    f1 = f1w.shape[0]
    f1w = f1w.reshape(f1, c2, 5, 5)
    f1w = jnp.transpose(f1w, (2, 3, 1, 0)).reshape(5 * 5 * c2, f1)
    f1w = _pad_to(f1w, 0, _round_up(5 * 5 * c2, LANE))
    f1w = _pad_to(f1w, 1, _round_up(f1, LANE)).astype(jnp.bfloat16)

    def pack_fc(w):                                            # (out, in) -> (in_pad, out_pad)
        out_f, in_f = w.shape
        w2d = _pad_to(_pad_to(w.T, 0, _round_up(in_f, LANE)),
                      1, _round_up(out_f, LANE))
        return w2d.astype(jnp.bfloat16)

    return {
        "conv1_w": pack_conv(c1w), "conv1_b": pack_bias(params["conv1_b"]),
        "conv2_w": pack_conv(c2w), "conv2_b": pack_bias(params["conv2_b"]),
        "fc1_w": f1w, "fc1_b": pack_bias(params["fc1_b"]),
        "fc2_w": pack_fc(params["fc2_w"]), "fc2_b": pack_bias(params["fc2_b"]),
        "fc3_w": pack_fc(params["fc3_w"]), "fc3_b": pack_bias(params["fc3_b"]),
    }


# ----------------------------------------------------------------------------
# LeNet-5 forward
# ----------------------------------------------------------------------------
def lenet5_forward(packed, x_nchw, *, num_classes):
    in_ch = x_nchw.shape[1]
    c1, c2 = 6 * in_ch, 16 * in_ch                    # real channel counts (static)

    x = jnp.transpose(x_nchw, (0, 2, 3, 1)).astype(jnp.bfloat16)        # NHWC bf16
    x = conv5x5_relu_pool(x, packed["conv1_w"], packed["conv1_b"])      # (N,14,14,128)
    x = x[..., :c1]                                                     # K-slim conv2
    x = conv5x5_relu_pool(x, packed["conv2_w"], packed["conv2_b"])      # (N, 5, 5,128)
    x = x[..., :c2]                                                     # K-slim fc1
    n = x.shape[0]
    x = x.reshape(n, -1)                                                # (N, 25*c2)
    logits_padded = mlp_head(
        x, packed["fc1_w"], packed["fc1_b"], packed["fc2_w"], packed["fc2_b"],
        packed["fc3_w"], packed["fc3_b"])                               # (N, 128) f32
    return logits_padded[:, :num_classes]


if __name__ == "__main__":
    key = jax.random.PRNGKey(0)
    k_param, k_input = jax.random.split(key)

    num_classes = 10
    params = init_lenet5_params(k_param, num_classes=num_classes, gray_scale=False)
    packed = pack_lenet5_params(params)

    # LeNet-5 classifier dims (16*5*5*in_ch) imply a 32x32 spatial input.
    x = jax.random.normal(k_input, (2, 3, 32, 32), jnp.float32)

    fwd = jax.jit(functools.partial(lenet5_forward, num_classes=num_classes))
    logits = jax.block_until_ready(fwd(packed, x))

    assert logits.shape == (2, num_classes), logits.shape
    assert logits.dtype == jnp.float32
    assert bool(jnp.all(jnp.isfinite(logits)))
    print("KERNEL_OK")
</pallas_src>

<mosaic_0001>
module attributes {stable_mosaic.version = 11 : i64} {
  func.func @_conv_relu_pool_kernel(%arg0: i32, %arg1: memref<4x2x200x128xbf16, #tpu.memory_space<vmem>>, %arg2: memref<128x128xbf16, #tpu.memory_space<vmem>>, %arg3: memref<1x128xf32, #tpu.memory_space<vmem>>, %arg4: memref<400x128xbf16, #tpu.memory_space<vmem>>) attributes {dimension_semantics = [#tpu.dimension_semantics<parallel>], iteration_bounds = array<i64: 1>, scalar_prefetch = 0 : i64, scratch_operands = 0 : i64, tpu.core_type = #tpu.core_type<tc>, window_params = [{transform_indices = @transform_0, window_bounds = array<i64: 4, 2, 200, 128>}, {pipeline_mode = #tpu.pipeline_mode<synchronous>, transform_indices = @transform_1, window_bounds = array<i64: 128, 128>}, {pipeline_mode = #tpu.pipeline_mode<synchronous>, transform_indices = @transform_2, window_bounds = array<i64: 1, 128>}, {transform_indices = @transform_3, window_bounds = array<i64: 400, 128>}]} {
    %c0 = arith.constant 0 : index
    %c0_0 = arith.constant 0 : index
    %c0_1 = arith.constant 0 : index
    %c0_2 = arith.constant 0 : index
    %0 = vector.load %arg1[%c0, %c0_0, %c0_1, %c0_2] : memref<4x2x200x128xbf16, #tpu.memory_space<vmem>>, vector<4x2x200x128xbf16>
    %1 = vector.shape_cast %0 : vector<4x2x200x128xbf16> to vector<1600x128xbf16>
    %c0_3 = arith.constant 0 : index
    %c0_4 = arith.constant 0 : index
    %2 = vector.load %arg2[%c0_3, %c0_4] : memref<128x128xbf16, #tpu.memory_space<vmem>>, vector<128x128xbf16>
    %cst = arith.constant dense<0.000000e+00> : vector<1600x128xf32>
    %3 = tpu.matmul %1, %2, %cst {dimension_numbers = #tpu.dot_dimension_numbers<[1], [0], [0], [1], [0, 0, 1, 1], [], []>} : vector<1600x128xbf16>, vector<128x128xbf16>, vector<1600x128xf32> -> vector<1600x128xf32>
    %4 = vector.extract_strided_slice %3 {offsets = [0, 0], sizes = [400, 128], strides = [1, 1]} : vector<1600x128xf32> to vector<400x128xf32>
    %5 = vector.extract_strided_slice %3 {offsets = [400, 0], sizes = [400, 128], strides = [1, 1]} : vector<1600x128xf32> to vector<400x128xf32>
    %6 = arith.maximumf %4, %5 : vector<400x128xf32>
    %7 = vector.extract_strided_slice %3 {offsets = [800, 0], sizes = [400, 128], strides = [1, 1]} : vector<1600x128xf32> to vector<400x128xf32>
    %8 = vector.extract_strided_slice %3 {offsets = [1200, 0], sizes = [400, 128], strides = [1, 1]} : vector<1600x128xf32> to vector<400x128xf32>
    %9 = arith.maximumf %7, %8 : vector<400x128xf32>
    %10 = arith.maximumf %6, %9 : vector<400x128xf32>
    %c0_5 = arith.constant 0 : index
    %c0_6 = arith.constant 0 : index
    %11 = vector.load %arg3[%c0_5, %c0_6] : memref<1x128xf32, #tpu.memory_space<vmem>>, vector<1x128xf32>
    %12 = vector.broadcast %11 : vector<1x128xf32> to vector<400x128xf32>
    %13 = arith.addf %10, %12 : vector<400x128xf32>
    %cst_7 = arith.constant 0.000000e+00 : f32
    %14 = vector.broadcast %cst_7 : f32 to vector<400x128xf32>
    %15 = arith.maximumf %13, %14 : vector<400x128xf32>
    %16 = arith.truncf %15 : vector<400x128xf32> to vector<400x128xbf16>
    %c0_8 = arith.constant 0 : index
    %c0_9 = arith.constant 0 : index
    %17 = vector.load %arg4[%c0_8, %c0_9] : memref<400x128xbf16, #tpu.memory_space<vmem>>, vector<400x128xbf16>
    tpu.vector_store %arg4[%c0_8, %c0_9], %16 {strides = array<i32>} : memref<400x128xbf16, #tpu.memory_space<vmem>>, vector<400x128xbf16>,
    return
  }
  func.func @transform_0(%arg0: i32) -> (i32, i32, i32, i32) {
    %c0_i32 = arith.constant 0 : i32
    %c0_i32_0 = arith.constant 0 : i32
    %c0_i32_1 = arith.constant 0 : i32
    %c0_i32_2 = arith.constant 0 : i32
    return %c0_i32, %arg0, %c0_i32_0, %c0_i32_1 : i32, i32, i32, i32
  }
  func.func @transform_1(%arg0: i32) -> (i32, i32) {
    %c0_i32 = arith.constant 0 : i32
    %c0_i32_0 = arith.constant 0 : i32
    %c0_i32_1 = arith.constant 0 : i32
    return %c0_i32, %c0_i32_0 : i32, i32
  }
  func.func @transform_2(%arg0: i32) -> (i32, i32) {
    %c0_i32 = arith.constant 0 : i32
    %c0_i32_0 = arith.constant 0 : i32
    %c0_i32_1 = arith.constant 0 : i32
    return %c0_i32, %c0_i32_0 : i32, i32
  }
  func.func @transform_3(%arg0: i32) -> (i32, i32) {
    %c0_i32 = arith.constant 0 : i32
    %c0_i32_0 = arith.constant 0 : i32
    return %arg0, %c0_i32 : i32, i32
  }
}

module attributes {stable_mosaic.version = 11 : i64} {
  func.func @_conv_relu_pool_kernel(%arg0: i32, %arg1: memref<4x2x32x512xbf16, #tpu.memory_space<vmem>>, %arg2: memref<512x128xbf16, #tpu.memory_space<vmem>>, %arg3: memref<1x128xf32, #tpu.memory_space<vmem>>, %arg4: memref<64x128xbf16, #tpu.memory_space<vmem>>) attributes {dimension_semantics = [#tpu.dimension_semantics<parallel>], iteration_bounds = array<i64: 1>, scalar_prefetch = 0 : i64, scratch_operands = 0 : i64, tpu.core_type = #tpu.core_type<tc>, window_params = [{transform_indices = @transform_0, window_bounds = array<i64: 4, 2, 32, 512>}, {pipeline_mode = #tpu.pipeline_mode<synchronous>, transform_indices = @transform_1, window_bounds = array<i64: 512, 128>}, {pipeline_mode = #tpu.pipeline_mode<synchronous>, transform_indices = @transform_2, window_bounds = array<i64: 1, 128>}, {transform_indices = @transform_3, window_bounds = array<i64: 64, 128>}]} {
    %c0 = arith.constant 0 : index
    %c0_0 = arith.constant 0 : index
    %c0_1 = arith.constant 0 : index
    %c0_2 = arith.constant 0 : index
    %0 = vector.load %arg1[%c0, %c0_0, %c0_1, %c0_2] : memref<4x2x32x512xbf16, #tpu.memory_space<vmem>>, vector<4x2x32x512xbf16>
    %1 = vector.shape_cast %0 : vector<4x2x32x512xbf16> to vector<256x512xbf16>
    %c0_3 = arith.constant 0 : index
    %c0_4 = arith.constant 0 : index
    %2 = vector.load %arg2[%c0_3, %c0_4] : memref<512x128xbf16, #tpu.memory_space<vmem>>, vector<512x128xbf16>
    %cst = arith.constant dense<0.000000e+00> : vector<256x128xf32>
    %3 = tpu.matmul %1, %2, %cst {dimension_numbers = #tpu.dot_dimension_numbers<[1], [0], [0], [1], [0, 0, 1, 1], [], []>} : vector<256x512xbf16>, vector<512x128xbf16>, vector<256x128xf32> -> vector<256x128xf32>
    %4 = vector.extract_strided_slice %3 {offsets = [0, 0], sizes = [64, 128], strides = [1, 1]} : vector<256x128xf32> to vector<64x128xf32>
    %5 = vector.extract_strided_slice %3 {offsets = [64, 0], sizes = [64, 128], strides = [1, 1]} : vector<256x128xf32> to vector<64x128xf32>
    %6 = arith.maximumf %4, %5 : vector<64x128xf32>
    %7 = vector.extract_strided_slice %3 {offsets = [128, 0], sizes = [64, 128], strides = [1, 1]} : vector<256x128xf32> to vector<64x128xf32>
    %8 = vector.extract_strided_slice %3 {offsets = [192, 0], sizes = [64, 128], strides = [1, 1]} : vector<256x128xf32> to vector<64x128xf32>
    %9 = arith.maximumf %7, %8 : vector<64x128xf32>
    %10 = arith.maximumf %6, %9 : vector<64x128xf32>
    %c0_5 = arith.constant 0 : index
    %c0_6 = arith.constant 0 : index
    %11 = vector.load %arg3[%c0_5, %c0_6] : memref<1x128xf32, #tpu.memory_space<vmem>>, vector<1x128xf32>
    %12 = vector.broadcast %11 : vector<1x128xf32> to vector<64x128xf32>
    %13 = arith.addf %10, %12 : vector<64x128xf32>
    %cst_7 = arith.constant 0.000000e+00 : f32
    %14 = vector.broadcast %cst_7 : f32 to vector<64x128xf32>
    %15 = arith.maximumf %13, %14 : vector<64x128xf32>
    %16 = arith.truncf %15 : vector<64x128xf32> to vector<64x128xbf16>
    %c0_8 = arith.constant 0 : index
    %c0_9 = arith.constant 0 : index
    %17 = vector.load %arg4[%c0_8, %c0_9] : memref<64x128xbf16, #tpu.memory_space<vmem>>, vector<64x128xbf16>
    tpu.vector_store %arg4[%c0_8, %c0_9], %16 {strides = array<i32>} : memref<64x128xbf16, #tpu.memory_space<vmem>>, vector<64x128xbf16>,
    return
  }
  func.func @transform_0(%arg0: i32) -> (i32, i32, i32, i32) {
    %c0_i32 = arith.constant 0 : i32
    %c0_i32_0 = arith.constant 0 : i32
    %c0_i32_1 = arith.constant 0 : i32
    %c0_i32_2 = arith.constant 0 : i32
    return %c0_i32, %arg0, %c0_i32_0, %c0_i32_1 : i32, i32, i32, i32
  }
  func.func @transform_1(%arg0: i32) -> (i32, i32) {
    %c0_i32 = arith.constant 0 : i32
    %c0_i32_0 = arith.constant 0 : i32
    %c0_i32_1 = arith.constant 0 : i32
    return %c0_i32, %c0_i32_0 : i32, i32
  }
  func.func @transform_2(%arg0: i32) -> (i32, i32) {
    %c0_i32 = arith.constant 0 : i32
    %c0_i32_0 = arith.constant 0 : i32
    %c0_i32_1 = arith.constant 0 : i32
    return %c0_i32, %c0_i32_0 : i32, i32
  }
  func.func @transform_3(%arg0: i32) -> (i32, i32) {
    %c0_i32 = arith.constant 0 : i32
    %c0_i32_0 = arith.constant 0 : i32
    return %arg0, %c0_i32 : i32, i32
  }
}

module attributes {stable_mosaic.version = 11 : i64} {
  func.func @_mlp_kernel(%arg0: i32, %arg1: memref<8x1280xbf16, #tpu.memory_space<vmem>>, %arg2: memref<1280x384xbf16, #tpu.memory_space<vmem>>, %arg3: memref<1x384xf32, #tpu.memory_space<vmem>>, %arg4: memref<384x256xbf16, #tpu.memory_space<vmem>>, %arg5: memref<1x256xf32, #tpu.memory_space<vmem>>, %arg6: memref<256x128xbf16, #tpu.memory_space<vmem>>, %arg7: memref<1x128xf32, #tpu.memory_space<vmem>>, %arg8: memref<8x128xf32, #tpu.memory_space<vmem>>) attributes {dimension_semantics = [#tpu.dimension_semantics<parallel>], iteration_bounds = array<i64: 1>, scalar_prefetch = 0 : i64, scratch_operands = 0 : i64, tpu.core_type = #tpu.core_type<tc>, window_params = [{transform_indices = @transform_0, window_bounds = array<i64: 8, 1280>}, {pipeline_mode = #tpu.pipeline_mode<synchronous>, transform_indices = @transform_1, window_bounds = array<i64: 1280, 384>}, {pipeline_mode = #tpu.pipeline_mode<synchronous>, transform_indices = @transform_2, window_bounds = array<i64: 1, 384>}, {pipeline_mode = #tpu.pipeline_mode<synchronous>, transform_indices = @transform_3, window_bounds = array<i64: 384, 256>}, {pipeline_mode = #tpu.pipeline_mode<synchronous>, transform_indices = @transform_4, window_bounds = array<i64: 1, 256>}, {pipeline_mode = #tpu.pipeline_mode<synchronous>, transform_indices = @transform_5, window_bounds = array<i64: 256, 128>}, {pipeline_mode = #tpu.pipeline_mode<synchronous>, transform_indices = @transform_6, window_bounds = array<i64: 1, 128>}, {transform_indices = @transform_7, window_bounds = array<i64: 8, 128>}]} {
    %c0 = arith.constant 0 : index
    %c0_0 = arith.constant 0 : index
    %0 = vector.load %arg1[%c0, %c0_0] : memref<8x1280xbf16, #tpu.memory_space<vmem>>, vector<8x1280xbf16>
    %c0_1 = arith.constant 0 : index
    %c0_2 = arith.constant 0 : index
    %1 = vector.load %arg2[%c0_1, %c0_2] : memref<1280x384xbf16, #tpu.memory_space<vmem>>, vector<1280x384xbf16>
    %cst = arith.constant dense<0.000000e+00> : vector<8x384xf32>
    %2 = tpu.matmul %0, %1, %cst {dimension_numbers = #tpu.dot_dimension_numbers<[1], [0], [0], [1], [0, 0, 1, 1], [], []>} : vector<8x1280xbf16>, vector<1280x384xbf16>, vector<8x384xf32> -> vector<8x384xf32>
    %c0_3 = arith.constant 0 : index
    %c0_4 = arith.constant 0 : index
    %3 = vector.load %arg3[%c0_3, %c0_4] : memref<1x384xf32, #tpu.memory_space<vmem>>, vector<1x384xf32>
    %4 = vector.broadcast %3 : vector<1x384xf32> to vector<8x384xf32>
    %5 = arith.addf %2, %4 : vector<8x384xf32>
    %cst_5 = arith.constant 0.000000e+00 : f32
    %6 = vector.broadcast %cst_5 : f32 to vector<8x384xf32>
    %7 = arith.maximumf %5, %6 : vector<8x384xf32>
    %8 = arith.truncf %7 : vector<8x384xf32> to vector<8x384xbf16>
    %c0_6 = arith.constant 0 : index
    %c0_7 = arith.constant 0 : index
    %9 = vector.load %arg4[%c0_6, %c0_7] : memref<384x256xbf16, #tpu.memory_space<vmem>>, vector<384x256xbf16>
    %cst_8 = arith.constant dense<0.000000e+00> : vector<8x256xf32>
    %10 = tpu.matmul %8, %9, %cst_8 {dimension_numbers = #tpu.dot_dimension_numbers<[1], [0], [0], [1], [0, 0, 1, 1], [], []>} : vector<8x384xbf16>, vector<384x256xbf16>, vector<8x256xf32> -> vector<8x256xf32>
    %c0_9 = arith.constant 0 : index
    %c0_10 = arith.constant 0 : index
    %11 = vector.load %arg5[%c0_9, %c0_10] : memref<1x256xf32, #tpu.memory_space<vmem>>, vector<1x256xf32>
    %12 = vector.broadcast %11 : vector<1x256xf32> to vector<8x256xf32>
    %13 = arith.addf %10, %12 : vector<8x256xf32>
    %cst_11 = arith.constant 0.000000e+00 : f32
    %14 = vector.broadcast %cst_11 : f32 to vector<8x256xf32>
    %15 = arith.maximumf %13, %14 : vector<8x256xf32>
    %16 = arith.truncf %15 : vector<8x256xf32> to vector<8x256xbf16>
    %c0_12 = arith.constant 0 : index
    %c0_13 = arith.constant 0 : index
    %17 = vector.load %arg6[%c0_12, %c0_13] : memref<256x128xbf16, #tpu.memory_space<vmem>>, vector<256x128xbf16>
    %cst_14 = arith.constant dense<0.000000e+00> : vector<8x128xf32>
    %18 = tpu.matmul %16, %17, %cst_14 {dimension_numbers = #tpu.dot_dimension_numbers<[1], [0], [0], [1], [0, 0, 1, 1], [], []>} : vector<8x256xbf16>, vector<256x128xbf16>, vector<8x128xf32> -> vector<8x128xf32>
    %c0_15 = arith.constant 0 : index
    %c0_16 = arith.constant 0 : index
    %19 = vector.load %arg7[%c0_15, %c0_16] : memref<1x128xf32, #tpu.memory_space<vmem>>, vector<1x128xf32>
    %20 = vector.broadcast %19 : vector<1x128xf32> to vector<8x128xf32>
    %21 = arith.addf %18, %20 : vector<8x128xf32>
    %c0_17 = arith.constant 0 : index
    %c0_18 = arith.constant 0 : index
    %22 = vector.load %arg8[%c0_17, %c0_18] : memref<8x128xf32, #tpu.memory_space<vmem>>, vector<8x128xf32>
    tpu.vector_store %arg8[%c0_17, %c0_18], %21 {strides = array<i32>} : memref<8x128xf32, #tpu.memory_space<vmem>>, vector<8x128xf32>,
    return
  }
  func.func @transform_0(%arg0: i32) -> (i32, i32) {
    %c0_i32 = arith.constant 0 : i32
    %c0_i32_0 = arith.constant 0 : i32
    return %arg0, %c0_i32 : i32, i32
  }
  func.func @transform_1(%arg0: i32) -> (i32, i32) {
    %c0_i32 = arith.constant 0 : i32
    %c0_i32_0 = arith.constant 0 : i32
    %c0_i32_1 = arith.constant 0 : i32
    return %c0_i32, %c0_i32_0 : i32, i32
  }
  func.func @transform_2(%arg0: i32) -> (i32, i32) {
    %c0_i32 = arith.constant 0 : i32
    %c0_i32_0 = arith.constant 0 : i32
    %c0_i32_1 = arith.constant 0 : i32
    return %c0_i32, %c0_i32_0 : i32, i32
  }
  func.func @transform_3(%arg0: i32) -> (i32, i32) {
    %c0_i32 = arith.constant 0 : i32
    %c0_i32_0 = arith.constant 0 : i32
    %c0_i32_1 = arith.constant 0 : i32
    return %c0_i32, %c0_i32_0 : i32, i32
  }
  func.func @transform_4(%arg0: i32) -> (i32, i32) {
    %c0_i32 = arith.constant 0 : i32
    %c0_i32_0 = arith.constant 0 : i32
    %c0_i32_1 = arith.constant 0 : i32
    return %c0_i32, %c0_i32_0 : i32, i32
  }
  func.func @transform_5(%arg0: i32) -> (i32, i32) {
    %c0_i32 = arith.constant 0 : i32
    %c0_i32_0 = arith.constant 0 : i32
    %c0_i32_1 = arith.constant 0 : i32
    return %c0_i32, %c0_i32_0 : i32, i32
  }
  func.func @transform_6(%arg0: i32) -> (i32, i32) {
    %c0_i32 = arith.constant 0 : i32
    %c0_i32_0 = arith.constant 0 : i32
    %c0_i32_1 = arith.constant 0 : i32
    return %c0_i32, %c0_i32_0 : i32, i32
  }
  func.func @transform_7(%arg0: i32) -> (i32, i32) {
    %c0_i32 = arith.constant 0 : i32
    %c0_i32_0 = arith.constant 0 : i32
    return %arg0, %c0_i32 : i32, i32
  }
}

</mosaic_0001>

<bundles_post_ra>
// kernel: lenet5_forward.3
= control target key start
LH: loop header
LB: loop body
LE: loop exit
PB: predicated region body
PF: predicated region fallthrough
CT: control target
= control target key end

     0   :  { %s3803_s1 = inlined_call_operand.vmem [shape: bf16[128,128], index: 1, kind: input, shape index: {}]   ;;  %s3804_s0 = inlined_call_operand.vmem [shape: bf16[4,2,200,128], index: 0, kind: input, shape index: {}]   ;;  %s3805_s2 = inlined_call_operand.vmem [shape: f32[1,128], index: 2, kind: input, shape index: {}]   ;;  %s3806_s3 = inlined_call_operand.vmem [shape: bf16[400,128], index: 3, kind: output, shape index: {}]  }
   0x1   :  { %v2921_v0 = vld [vmem:[%s3803_s1] sm:$0xff]   ;;  %v2922_v1 = vld [vmem:[%s3803_s1 + $0x8] sm:$0xff]   ;;  %v2923_v2 = vld [vmem:[%s3803_s1 + $0x10] sm:$0xff]  }
   0x2   :  { %2689 = vmatprep.subr.bf16.mxu0 %v2921_v0  ;;  %2905 = vmatprep.subr.bf16.mxu1 %v2921_v0  ;;  %v2924_v3 = vld [vmem:[%s3803_s1 + $0x18] sm:$0xff]   ;;  %v2929_v4 = vld [vmem:[%s3804_s0] sm:$0xff]   ;;  %v2930_v5 = vld [vmem:[%s3804_s0 + $0x190] sm:$0xff]  }
   0x3   :  { %2690 = vmatpush3.bf16.msra.mxu0 %v2921_v0  ;;  %2913 = vmatpush3.bf16.msra.mxu1 %v2921_v0  ;;  %v2925_v6 = vld [vmem:[%s3803_s1 + $0x20] sm:$0xff]   ;;  %v2926_v7 = vld [vmem:[%s3803_s1 + $0x28] sm:$0xff]   ;;  %v2927_v8 = vld [vmem:[%s3803_s1 + $0x30] sm:$0xff]  }
   0x4   :  { %2691 = vmatprep.subr.bf16.mxu0 %v2922_v1  ;;  %2906 = vmatprep.subr.bf16.mxu1 %v2922_v1  ;;  %v2928_v9 = vld [vmem:[%s3803_s1 + $0x38] sm:$0xff]   ;;  %v2931_v10 = vld [vmem:[%s3804_s0 + $0x8] sm:$0xff]   ;;  %v2933_v12 = vld [vmem:[%s3804_s0 + $0x10] sm:$0xff]  }
   0x5   :  { %2705 = vmatprep.mubr.bf16.mxu0 %v2929_v4  ;;  %2805 = vmatprep.mubr.bf16.mxu1 %v2930_v5  ;;  %v2932_v11 = vld [vmem:[%s3804_s0 + $0x198] sm:$0xff]   ;;  %v2934_v13 = vld [vmem:[%s3804_s0 + $0x1a0] sm:$0xff]   ;;  %v2936_v15 = vld [vmem:[%s3804_s0 + $0x1a8] sm:$0xff]  }
   0x6   :  { %v2935_v14 = vld [vmem:[%s3804_s0 + $0x18] sm:$0xff]   ;;  %v2937_v16 = vld [vmem:[%s3804_s0 + $0x20] sm:$0xff]   ;;  %v2938_v17 = vld [vmem:[%s3804_s0 + $0x1b0] sm:$0xff]  }
   0x7   :  { %2692 = vmatpush3.bf16.msra.mxu0 %v2922_v1  ;;  %2914 = vmatpush3.bf16.msra.mxu1 %v2922_v1  ;;  %v2939_v18 = vld [vmem:[%s3804_s0 + $0x28] sm:$0xff]   ;;  %v2940_v19 = vld [vmem:[%s3804_s0 + $0x1b8] sm:$0xff]   ;;  %v2941_v20 = vld [vmem:[%s3804_s0 + $0x30] sm:$0xff]  }
   0x8   :  { %2693 = vmatprep.subr.bf16.mxu0 %v2923_v2  ;;  %2907 = vmatprep.subr.bf16.mxu1 %v2923_v2  ;;  %v2942_v21 = vld [vmem:[%s3804_s0 + $0x1c0] sm:$0xff]   ;;  %v2943_v22 = vld [vmem:[%s3804_s0 + $0x38] sm:$0xff]   ;;  %v2944_v23 = vld [vmem:[%s3804_s0 + $0x1c8] sm:$0xff]  }
   0x9   :  { %v2945_v24 = vld [vmem:[%s3804_s0 + $0x40] sm:$0xff]   ;;  %v2946_v25 = vld [vmem:[%s3804_s0 + $0x1d0] sm:$0xff]   ;;  %v2947_v26 = vld [vmem:[%s3804_s0 + $0x48] sm:$0xff]  }
   0xa   :  { %v2948_v27 = vld [vmem:[%s3804_s0 + $0x1d8] sm:$0xff]   ;;  %v2949_v28 = vld [vmem:[%s3804_s0 + $0x50] sm:$0xff]   ;;  %v2950_v29 = vld [vmem:[%s3804_s0 + $0x1e0] sm:$0xff]  }
   0xb   :  { %2694 = vmatpush3.bf16.msra.mxu0 %v2923_v2  ;;  %2915 = vmatpush3.bf16.msra.mxu1 %v2923_v2  ;;  %v2951_v30 = vld [vmem:[%s3804_s0 + $0x58] sm:$0xff]   ;;  %v2952_v31 = vld [vmem:[%s3804_s0 + $0x1e8] sm:$0xff]   ;;  %v2953_v32 = vld [vmem:[%s3804_s0 + $0x60] sm:$0xff]  }
   0xc   :  { %2695 = vmatprep.subr.bf16.mxu0 %v2924_v3  ;;  %2908 = vmatprep.subr.bf16.mxu1 %v2924_v3  ;;  %v2954_v33 = vld [vmem:[%s3804_s0 + $0x1f0] sm:$0xff]   ;;  %v2955_v34 = vld [vmem:[%s3804_s0 + $0x68] sm:$0xff]   ;;  %v2956_v35 = vld [vmem:[%s3804_s0 + $0x1f8] sm:$0xff]  }
   0xd   :  { %v2957_v36 = vld [vmem:[%s3804_s0 + $0x70] sm:$0xff]   ;;  %v2958_v37 = vld [vmem:[%s3804_s0 + $0x200] sm:$0xff]   ;;  %v2959_v38 = vld [vmem:[%s3804_s0 + $0x78] sm:$0xff]  }
   0xe   :  { %v2960_v39 = vld [vmem:[%s3804_s0 + $0x208] sm:$0xff]   ;;  %v2961_v40 = vld [vmem:[%s3804_s0 + $0x80] sm:$0xff]   ;;  %v2962_v41 = vld [vmem:[%s3804_s0 + $0x210] sm:$0xff]  }
   0xf   :  { %2696 = vmatpush3.bf16.msra.mxu0 %v2924_v3  ;;  %2916 = vmatpush3.bf16.msra.mxu1 %v2924_v3  ;;  %v2963_v42 = vld [vmem:[%s3804_s0 + $0x88] sm:$0xff]   ;;  %v2964_v43 = vld [vmem:[%s3804_s0 + $0x218] sm:$0xff]   ;;  %v2965_v44 = vld [vmem:[%s3804_s0 + $0x90] sm:$0xff]  }
  0x10   :  { %2697 = vmatprep.subr.bf16.mxu0 %v2925_v6  ;;  %2909 = vmatprep.subr.bf16.mxu1 %v2925_v6  ;;  %v2966_v45 = vld [vmem:[%s3804_s0 + $0x220] sm:$0xff]   ;;  %v2967_v46 = vld [vmem:[%s3804_s0 + $0x98] sm:$0xff]   ;;  %v2968_v47 = vld [vmem:[%s3804_s0 + $0x228] sm:$0xff]  }
  0x11   :  { %v2969_v48 = vld [vmem:[%s3804_s0 + $0xa0] sm:$0xff]   ;;  %v2970_v49 = vld [vmem:[%s3804_s0 + $0x230] sm:$0xff]   ;;  %v2971_v50 = vld [vmem:[%s3804_s0 + $0xa8] sm:$0xff]  }
  0x12   :  { %v2972_v51 = vld [vmem:[%s3804_s0 + $0x238] sm:$0xff]   ;;  %v2973_v52 = vld [vmem:[%s3804_s0 + $0xb0] sm:$0xff]   ;;  %v2974_v53 = vld [vmem:[%s3804_s0 + $0x240] sm:$0xff]  }
  0x13   :  { %2698 = vmatpush3.bf16.msra.mxu0 %v2925_v6  ;;  %2917 = vmatpush3.bf16.msra.mxu1 %v2925_v6  ;;  %v2975_v54 = vld [vmem:[%s3804_s0 + $0xb8] sm:$0xff]   ;;  %v2976_v55 = vld [vmem:[%s3804_s0 + $0x248] sm:$0xff]   ;;  %v2977_v56 = vld [vmem:[%s3804_s0 + $0xc0] sm:$0xff]  }
  0x14   :  { %2699 = vmatprep.subr.bf16.mxu0 %v2926_v7  ;;  %2910 = vmatprep.subr.bf16.mxu1 %v2926_v7  ;;  %v2978_v57 = vld [vmem:[%s3804_s0 + $0x250] sm:$0xff]   ;;  %v2979_v58 = vld [vmem:[%s3804_s0 + $0xc8] sm:$0xff]   ;;  %v2980_v59 = vld [vmem:[%s3804_s0 + $0x258] sm:$0xff]  }
  0x15   :  { %v2981_v60 = vld [vmem:[%s3804_s0 + $0xd0] sm:$0xff]   ;;  %v2982_v61 = vld [vmem:[%s3804_s0 + $0x260] sm:$0xff]   ;;  %v2983_v62 = vld [vmem:[%s3804_s0 + $0xd8] sm:$0xff]  }
  0x16   :  { %v2984_v63 = vld [vmem:[%s3804_s0 + $0x268] sm:$0xff]   ;;  %v2985_v0 = vld [vmem:[%s3804_s0 + $0xe0] sm:$0xff]   ;;  %v2986_v1 = vld [vmem:[%s3804_s0 + $0x270] sm:$0xff]  }
  0x17   :  { %2700 = vmatpush3.bf16.msra.mxu0 %v2926_v7  ;;  %2918 = vmatpush3.bf16.msra.mxu1 %v2926_v7  ;;  %v2987_v2 = vld [vmem:[%s3804_s0 + $0xe8] sm:$0xff]   ;;  %v2988_v3 = vld [vmem:[%s3804_s0 + $0x278] sm:$0xff]   ;;  %v2989_v4 = vld [vmem:[%s3804_s0 + $0xf0] sm:$0xff]  }
  0x18   :  { %2701 = vmatprep.subr.bf16.mxu0 %v2927_v8  ;;  %2911 = vmatprep.subr.bf16.mxu1 %v2927_v8  ;;  %v2990_v5 = vld [vmem:[%s3804_s0 + $0x280] sm:$0xff]   ;;  %v2991_v6 = vld [vmem:[%s3804_s0 + $0xf8] sm:$0xff]   ;;  %v2992_v7 = vld [vmem:[%s3804_s0 + $0x288] sm:$0xff]  }
  0x1b   :  { %2702 = vmatpush3.bf16.msra.mxu0 %v2927_v8  ;;  %2919 = vmatpush3.bf16.msra.mxu1 %v2927_v8  ;;  %v2993_v8 = vld [vmem:[%s3804_s0 + $0x100] sm:$0xff]  }
  0x1c   :  { %2703 = vmatprep.subr.bf16.mxu0 %v2928_v9  ;;  %2912 = vmatprep.subr.bf16.mxu1 %v2928_v9 }
  0x1f   :  { %2704 = vmatpush3.bf16.msra.mxu0 %v2928_v9  ;;  %2920 = vmatpush3.bf16.msra.mxu1 %v2928_v9  ;;  %v2994_v9 = vld [vmem:[%s3804_s0 + $0x290] sm:$0xff]  }
  0x22   :  { %2706 = vmatmul.mubr.bf16.vlgmr.msra.gmra.mrb[0].mxu0 %v2931_v10  ;;  %2806 = vmatmul.mubr.bf16.vlgmr.msra.gmra.mrb[0].mxu1 %v2932_v11  ;;  %v2995_v10 = vld [vmem:[%s3804_s0 + $0x108] sm:$0xff]   ;;  %v2996_v11 = vld [vmem:[%s3804_s0 + $0x298] sm:$0xff]  }
  0x23   :  { %2709 = vmatprep.mubr.bf16.mxu0 %v2933_v12  ;;  %2809 = vmatprep.mubr.bf16.mxu1 %v2934_v13  ;;  %v2997_v12 = vld [vmem:[%s3804_s0 + $0x110] sm:$0xff]   ;;  %v2998_v13 = vld [vmem:[%s3804_s0 + $0x2a0] sm:$0xff]  }
  0x2a   :  { %2710 = vmatmul.mubr.bf16.gmra.mrb[4].mxu0 %v2935_v14  ;;  %2810 = vmatmul.mubr.bf16.gmra.mrb[4].mxu1 %v2936_v15  ;;  %v2999_v14 = vld [vmem:[%s3804_s0 + $0x118] sm:$0xff]   ;;  %v3000_v15 = vld [vmem:[%s3804_s0 + $0x2a8] sm:$0xff]  }
  0x2b   :  { %2713 = vmatprep.mubr.bf16.mxu0 %v2937_v16  ;;  %2813 = vmatprep.mubr.bf16.mxu1 %v2938_v17  ;;  %v3001_v16 = vld [vmem:[%s3804_s0 + $0x120] sm:$0xff]   ;;  %v3002_v17 = vld [vmem:[%s3804_s0 + $0x2b0] sm:$0xff]  }
  0x32   :  { %2714 = vmatmul.mubr.bf16.gmra.mrb[8].mxu0 %v2939_v18  ;;  %2814 = vmatmul.mubr.bf16.gmra.mrb[8].mxu1 %v2940_v19  ;;  %v3003_v18 = vld [vmem:[%s3804_s0 + $0x128] sm:$0xff]   ;;  %v3004_v19 = vld [vmem:[%s3804_s0 + $0x2b8] sm:$0xff]  }
  0x33   :  { %2717 = vmatprep.mubr.bf16.mxu0 %v2941_v20  ;;  %2817 = vmatprep.mubr.bf16.mxu1 %v2942_v21  ;;  %v3005_v20 = vld [vmem:[%s3804_s0 + $0x130] sm:$0xff]   ;;  %v3006_v21 = vld [vmem:[%s3804_s0 + $0x2c0] sm:$0xff]  }
  0x3a   :  { %2718 = vmatmul.mubr.bf16.gmra.mrb[12].mxu0 %v2943_v22  ;;  %2818 = vmatmul.mubr.bf16.gmra.mrb[12].mxu1 %v2944_v23  ;;  %v3007_v22 = vld [vmem:[%s3804_s0 + $0x138] sm:$0xff]   ;;  %v3008_v23 = vld [vmem:[%s3804_s0 + $0x2c8] sm:$0xff]  }
  0x3b   :  { %2721 = vmatprep.mubr.bf16.mxu0 %v2945_v24  ;;  %2821 = vmatprep.mubr.bf16.mxu1 %v2946_v25  ;;  %v3009_v24 = vld [vmem:[%s3804_s0 + $0x140] sm:$0xff]   ;;  %v3010_v25 = vld [vmem:[%s3804_s0 + $0x2d0] sm:$0xff]  }
  0x42   :  { %2722 = vmatmul.mubr.bf16.gmra.mrb[16].mxu0 %v2947_v26  ;;  %2822 = vmatmul.mubr.bf16.gmra.mrb[16].mxu1 %v2948_v27  ;;  %v3011_v26 = vld [vmem:[%s3804_s0 + $0x148] sm:$0xff]   ;;  %v3012_v27 = vld [vmem:[%s3804_s0 + $0x2d8] sm:$0xff]  }
  0x43   :  { %2725 = vmatprep.mubr.bf16.mxu0 %v2949_v28  ;;  %2825 = vmatprep.mubr.bf16.mxu1 %v2950_v29  ;;  %v3013_v28 = vld [vmem:[%s3804_s0 + $0x150] sm:$0xff]   ;;  %v3014_v29 = vld [vmem:[%s3804_s0 + $0x2e0] sm:$0xff]  }
  0x4a   :  { %2726 = vmatmul.mubr.bf16.gmra.mrb[20].mxu0 %v2951_v30  ;;  %2826 = vmatmul.mubr.bf16.gmra.mrb[20].mxu1 %v2952_v31  ;;  %v3015_v30 = vld [vmem:[%s3804_s0 + $0x158] sm:$0xff]   ;;  %v3016_v31 = vld [vmem:[%s3804_s0 + $0x2e8] sm:$0xff]  }
  0x4b   :  { %2729 = vmatprep.mubr.bf16.mxu0 %v2953_v32  ;;  %2829 = vmatprep.mubr.bf16.mxu1 %v2954_v33  ;;  %v3017_v32 = vld [vmem:[%s3804_s0 + $0x160] sm:$0xff]   ;;  %v3018_v33 = vld [vmem:[%s3804_s0 + $0x2f0] sm:$0xff]  }
  0x52   :  { %2730 = vmatmul.mubr.bf16.gmra.mrb[24].mxu0 %v2955_v34  ;;  %2830 = vmatmul.mubr.bf16.gmra.mrb[24].mxu1 %v2956_v35  ;;  %v3019_v34 = vld [vmem:[%s3804_s0 + $0x168] sm:$0xff]   ;;  %v3020_v35 = vld [vmem:[%s3804_s0 + $0x2f8] sm:$0xff]  }
  0x53   :  { %2733 = vmatprep.mubr.bf16.mxu0 %v2957_v36  ;;  %2833 = vmatprep.mubr.bf16.mxu1 %v2958_v37  ;;  %v3021_v36 = vld [vmem:[%s3804_s0 + $0x170] sm:$0xff]   ;;  %v3022_v37 = vld [vmem:[%s3804_s0 + $0x300] sm:$0xff]  }
  0x5a   :  { %2734 = vmatmul.mubr.bf16.gmra.mrb[28].mxu0 %v2959_v38  ;;  %2834 = vmatmul.mubr.bf16.gmra.mrb[28].mxu1 %v2960_v39  ;;  %v3023_v38 = vld [vmem:[%s3804_s0 + $0x178] sm:$0xff]   ;;  %v3024_v39 = vld [vmem:[%s3804_s0 + $0x308] sm:$0xff]  }
  0x5b   :  { %2737 = vmatprep.mubr.bf16.mxu0 %v2961_v40  ;;  %2837 = vmatprep.mubr.bf16.mxu1 %v2962_v41  ;;  %v3025_v40 = vld [vmem:[%s3804_s0 + $0x180] sm:$0xff]   ;;  %v3026_v41 = vld [vmem:[%s3804_s0 + $0x310] sm:$0xff]  }
  0x62   :  { %2738 = vmatmul.mubr.bf16.gmra.mrb[32].mxu0 %v2963_v42  ;;  %2838 = vmatmul.mubr.bf16.gmra.mrb[32].mxu1 %v2964_v43  ;;  %v3027_v42 = vld [vmem:[%s3804_s0 + $0x188] sm:$0xff]   ;;  %v3028_v43 = vld [vmem:[%s3804_s0 + $0x318] sm:$0xff]  }
  0x63   :  { %2741 = vmatprep.mubr.bf16.mxu0 %v2965_v44  ;;  %2841 = vmatprep.mubr.bf16.mxu1 %v2966_v45 }
  0x6a   :  { %2742 = vmatmul.mubr.bf16.gmra.mrb[36].mxu0 %v2967_v46  ;;  %2842 = vmatmul.mubr.bf16.gmra.mrb[36].mxu1 %v2968_v47 }
  0x6b   :  { %2745 = vmatprep.mubr.bf16.mxu0 %v2969_v48  ;;  %2845 = vmatprep.mubr.bf16.mxu1 %v2970_v49 }
  0x72   :  { %2746 = vmatmul.mubr.bf16.gmra.mrb[40].mxu0 %v2971_v50  ;;  %2846 = vmatmul.mubr.bf16.gmra.mrb[40].mxu1 %v2972_v51 }
  0x73   :  { %2749 = vmatprep.mubr.bf16.mxu0 %v2973_v52  ;;  %2849 = vmatprep.mubr.bf16.mxu1 %v2974_v53 }
  0x7a   :  { %2750 = vmatmul.mubr.bf16.gmra.mrb[44].mxu0 %v2975_v54  ;;  %2850 = vmatmul.mubr.bf16.gmra.mrb[44].mxu1 %v2976_v55 }
  0x7b   :  { %2753 = vmatprep.mubr.bf16.mxu0 %v2977_v56  ;;  %2853 = vmatprep.mubr.bf16.mxu1 %v2978_v57 }
  0x82   :  { %2754 = vmatmul.mubr.bf16.gmra.mrb[48].mxu0 %v2979_v58  ;;  %2854 = vmatmul.mubr.bf16.gmra.mrb[48].mxu1 %v2980_v59 }
  0x83   :  { %2757 = vmatprep.mubr.bf16.mxu0 %v2981_v60  ;;  %2857 = vmatprep.mubr.bf16.mxu1 %v2982_v61 }
  0x8a   :  { %2758 = vmatmul.mubr.bf16.gmra.mrb[52].mxu0 %v2983_v62  ;;  %2858 = vmatmul.mubr.bf16.gmra.mrb[52].mxu1 %v2984_v63 }
  0x8b   :  { %2761 = vmatprep.mubr.bf16.mxu0 %v2985_v0  ;;  %2861 = vmatprep.mubr.bf16.mxu1 %v2986_v1 }
  0x92   :  { %2762 = vmatmul.mubr.bf16.gmra.mrb[56].mxu0 %v2987_v2  ;;  %2862 = vmatmul.mubr.bf16.gmra.mrb[56].mxu1 %v2988_v3 }
  0x93   :  { %2765 = vmatprep.mubr.bf16.mxu0 %v2989_v4  ;;  %2865 = vmatprep.mubr.bf16.mxu1 %v2990_v5 }
  0x9a   :  { %2766 = vmatmul.mubr.bf16.gmra.mrb[60].mxu0 %v2991_v6  ;;  %2866 = vmatmul.mubr.bf16.gmra.mrb[60].mxu1 %v2992_v7 }
  0x9b   :  { %2769 = vmatprep.mubr.bf16.mxu0 %v2993_v8  ;;  %2869 = vmatprep.mubr.bf16.mxu1 %v2994_v9 }
  0xa2   :  { %2770 = vmatmul.mubr.bf16.gmra.mrb[64].mxu0 %v2995_v10  ;;  %2870 = vmatmul.mubr.bf16.gmra.mrb[64].mxu1 %v2996_v11 }
  0xa3   :  { %2773 = vmatprep.mubr.bf16.mxu0 %v2997_v12  ;;  %2873 = vmatprep.mubr.bf16.mxu1 %v2998_v13 }
  0xaa   :  { %2774 = vmatmul.mubr.bf16.gmra.mrb[68].mxu0 %v2999_v14  ;;  %2874 = vmatmul.mubr.bf16.gmra.mrb[68].mxu1 %v3000_v15 }
  0xab   :  { %2777 = vmatprep.mubr.bf16.mxu0 %v3001_v16  ;;  %2877 = vmatprep.mubr.bf16.mxu1 %v3002_v17 }
  0xb2   :  { %2778 = vmatmul.mubr.bf16.gmra.mrb[72].mxu0 %v3003_v18  ;;  %2878 = vmatmul.mubr.bf16.gmra.mrb[72].mxu1 %v3004_v19 }
  0xb3   :  { %2781 = vmatprep.mubr.bf16.mxu0 %v3005_v20  ;;  %2881 = vmatprep.mubr.bf16.mxu1 %v3006_v21 }
  0xba   :  { %2782 = vmatmul.mubr.bf16.gmra.mrb[76].mxu0 %v3007_v22  ;;  %2882 = vmatmul.mubr.bf16.gmra.mrb[76].mxu1 %v3008_v23 }
  0xbb   :  { %2785 = vmatprep.mubr.bf16.mxu0 %v3009_v24  ;;  %2885 = vmatprep.mubr.bf16.mxu1 %v3010_v25 }
  0xc2   :  { %2786 = vmatmul.mubr.bf16.gmra.mrb[80].mxu0 %v3011_v26  ;;  %2886 = vmatmul.mubr.bf16.gmra.mrb[80].mxu1 %v3012_v27 }
  0xc3   :  { %2789 = vmatprep.mubr.bf16.mxu0 %v3013_v28  ;;  %2889 = vmatprep.mubr.bf16.mxu1 %v3014_v29 }
  0xca   :  { %2790 = vmatmul.mubr.bf16.gmra.mrb[84].mxu0 %v3015_v30  ;;  %2890 = vmatmul.mubr.bf16.gmra.mrb[84].mxu1 %v3016_v31 }
  0xcb   :  { %2793 = vmatprep.mubr.bf16.mxu0 %v3017_v32  ;;  %2893 = vmatprep.mubr.bf16.mxu1 %v3018_v33 }
  0xd2   :  { %2794 = vmatmul.mubr.bf16.gmra.mrb[88].mxu0 %v3019_v34  ;;  %2894 = vmatmul.mubr.bf16.gmra.mrb[88].mxu1 %v3020_v35 }
  0xd3   :  { %2797 = vmatprep.mubr.bf16.mxu0 %v3021_v36  ;;  %2897 = vmatprep.mubr.bf16.mxu1 %v3022_v37 }
  0xda   :  { %2798 = vmatmul.mubr.bf16.gmra.mrb[92].mxu0 %v3023_v38  ;;  %2898 = vmatmul.mubr.bf16.gmra.mrb[92].mxu1 %v3024_v39 }
  0xdb   :  { %2801 = vmatprep.mubr.bf16.mxu0 %v3025_v40  ;;  %2901 = vmatprep.mubr.bf16.mxu1 %v3026_v41 }
  0xe2   :  { %2802 = vmatmul.mubr.bf16.gmra.mrb[96].mxu0 %v3027_v42  ;;  %2902 = vmatmul.mubr.bf16.gmra.mrb[96].mxu1 %v3028_v43 }
  0xf5   :  { %v3373_v44 = vpop.f32.mrb[0].mxu0  ;;  %v3375_v45 = vpop.f32.mrb[0].mxu1 }
  0xf6   :  { %v3377_v46 = vpop.f32.mrb[1].mxu0  ;;  %v3379_v47 = vpop.f32.mrb[1].mxu1 }
  0xf7   :  { %v3381_v48 = vpop.f32.mrb[2].mxu0  ;;  %v3383_v49 = vpop.f32.mrb[2].mxu1 }
  0xf8   :  { %v3385_v50 = vpop.f32.mrb[3].mxu0  ;;  %v3387_v51 = vpop.f32.mrb[3].mxu1 }
  0xfd   :  { %v3389_v52 = vpop.f32.mrb[4].mxu0  ;;  %v3391_v53 = vpop.f32.mrb[4].mxu1 }
  0xfe   :  { %v3393_v54 = vpop.f32.mrb[5].mxu0  ;;  %v3395_v55 = vpop.f32.mrb[5].mxu1 }
  0xff   :  { %v3397_v56 = vpop.f32.mrb[6].mxu0  ;;  %v3399_v57 = vpop.f32.mrb[6].mxu1 }
 0x100   :  { %v3401_v58 = vpop.f32.mrb[7].mxu0  ;;  %v3403_v59 = vpop.f32.mrb[7].mxu1 }
 0x105   :  { %v3405_v60 = vpop.f32.mrb[8].mxu0  ;;  %v3407_v61 = vpop.f32.mrb[8].mxu1 }
 0x106   :  { %v3409_v62 = vpop.f32.mrb[9].mxu0  ;;  %v3411_v63 = vpop.f32.mrb[9].mxu1 }
 0x107   :  { %v3413_v0 = vpop.f32.mrb[10].mxu0  ;;  %v3415_v1 = vpop.f32.mrb[10].mxu1 }
 0x108   :  { %v3417_v2 = vpop.f32.mrb[11].mxu0  ;;  %v3419_v3 = vpop.f32.mrb[11].mxu1 }
 0x10d   :  { %v3421_v4 = vpop.f32.mrb[12].mxu0  ;;  %v3423_v5 = vpop.f32.mrb[12].mxu1 }
 0x10e   :  { %v3425_v6 = vpop.f32.mrb[13].mxu0  ;;  %v3427_v7 = vpop.f32.mrb[13].mxu1 }
 0x10f   :  { %v3429_v8 = vpop.f32.mrb[14].mxu0  ;;  %v3431_v9 = vpop.f32.mrb[14].mxu1 }
 0x110   :  { %v3433_v10 = vpop.f32.mrb[15].mxu0  ;;  %v3435_v11 = vpop.f32.mrb[15].mxu1 }
 0x115   :  { %v3437_v12 = vpop.f32.mrb[16].mxu0  ;;  %v3439_v13 = vpop.f32.mrb[16].mxu1 }
 0x116   :  { %v3441_v14 = vpop.f32.mrb[17].mxu0  ;;  %v3443_v15 = vpop.f32.mrb[17].mxu1 }
 0x117   :  { %v3445_v16 = vpop.f32.mrb[18].mxu0  ;;  %v3447_v17 = vpop.f32.mrb[18].mxu1 }
 0x118   :  { %v3449_v18 = vpop.f32.mrb[19].mxu0  ;;  %v3451_v19 = vpop.f32.mrb[19].mxu1 }
 0x11d   :  { %v3453_v20 = vpop.f32.mrb[20].mxu0  ;;  %v3455_v21 = vpop.f32.mrb[20].mxu1 }
 0x11e   :  { %v3457_v22 = vpop.f32.mrb[21].mxu0  ;;  %v3459_v23 = vpop.f32.mrb[21].mxu1 }
 0x11f   :  { %v3461_v24 = vpop.f32.mrb[22].mxu0  ;;  %v3463_v25 = vpop.f32.mrb[22].mxu1 }
 0x120   :  { %3807 = vst [vmem:[#allocation2_spill] sm:$0xff] %v3461_v24  ;;  %3808 = vst [vmem:[#allocation3_spill] sm:$0xff] %v3463_v25  ;;  %v3465_v26 = vpop.f32.mrb[23].mxu0  ;;  %v3467_v27 = vpop.f32.mrb[23].mxu1 }
 0x125   :  { %v3469_v28 = vpop.f32.mrb[24].mxu0  ;;  %v3471_v29 = vpop.f32.mrb[24].mxu1 }
 0x126   :  { %3809 = vst [vmem:[#allocation4_spill] sm:$0xff] %v3469_v28  ;;  %3810 = vst [vmem:[#allocation5_spill] sm:$0xff] %v3471_v29  ;;  %v3473_v30 = vpop.f32.mrb[25].mxu0  ;;  %v3475_v31 = vpop.f32.mrb[25].mxu1 }
 0x127   :  { %v3477_v32 = vpop.f32.mrb[26].mxu0  ;;  %v3479_v33 = vpop.f32.mrb[26].mxu1 }
 0x128   :  { %3811 = vst [vmem:[#allocation6_spill] sm:$0xff] %v3477_v32  ;;  %3812 = vst [vmem:[#allocation7_spill] sm:$0xff] %v3479_v33  ;;  %v3481_v34 = vpop.f32.mrb[27].mxu0  ;;  %v3483_v35 = vpop.f32.mrb[27].mxu1 }
 0x129   :  { %3813 = vst [vmem:[#allocation8_spill] sm:$0xff] %v3481_v34  ;;  %3814 = vst [vmem:[#allocation9_spill] sm:$0xff] %v3483_v35 }
 0x12d   :  { %v3485_v36 = vpop.f32.mrb[28].mxu0  ;;  %v3487_v37 = vpop.f32.mrb[28].mxu1 }
 0x12e   :  { %3815 = vst [vmem:[#allocation10_spill] sm:$0xff] %v3485_v36  ;;  %3816 = vst [vmem:[#allocation11_spill] sm:$0xff] %v3487_v37  ;;  %v3489_v38 = vpop.f32.mrb[29].mxu0  ;;  %v3491_v39 = vpop.f32.mrb[29].mxu1 }
 0x12f   :  { %3817 = vst [vmem:[#allocation12_spill] sm:$0xff] %v3489_v38  ;;  %3818 = vst [vmem:[#allocation13_spill] sm:$0xff] %v3491_v39  ;;  %v3493_v40 = vpop.f32.mrb[30].mxu0  ;;  %v3495_v41 = vpop.f32.mrb[30].mxu1 }
 0x130   :  { %3819 = vst [vmem:[#allocation14_spill] sm:$0xff] %v3493_v40  ;;  %3820 = vst [vmem:[#allocation15_spill] sm:$0xff] %v3495_v41  ;;  %v3497_v42 = vpop.f32.mrb[31].mxu0  ;;  %v3499_v43 = vpop.f32.mrb[31].mxu1 }
 0x131   :  { %3821 = vst [vmem:[#allocation16_spill] sm:$0xff] %v3497_v42  ;;  %3822 = vst [vmem:[#allocation17_spill] sm:$0xff] %v3499_v43 }
 0x135   :  { %v3501_v33 = vpop.f32.mrb[32].mxu0  ;;  %v3503_v32 = vpop.f32.mrb[32].mxu1 }
 0x136   :  { %3823 = vst [vmem:[#allocation18_spill] sm:$0xff] %v3501_v33  ;;  %3824 = vst [vmem:[#allocation19_spill] sm:$0xff] %v3503_v32  ;;  %v3505_v29 = vpop.f32.mrb[33].mxu0  ;;  %v3507_v36 = vpop.f32.mrb[33].mxu1 }
 0x137   :  { %3825 = vst [vmem:[#allocation20_spill] sm:$0xff] %v3505_v29  ;;  %3826 = vst [vmem:[#allocation21_spill] sm:$0xff] %v3507_v36  ;;  %v3509_v37 = vpop.f32.mrb[34].mxu0  ;;  %v3511_v28 = vpop.f32.mrb[34].mxu1 }
 0x138   :  { %3827 = vst [vmem:[#allocation22_spill] sm:$0xff] %v3509_v37  ;;  %3828 = vst [vmem:[#allocation23_spill] sm:$0xff] %v3511_v28  ;;  %v3513_v39 = vpop.f32.mrb[35].mxu0  ;;  %v3515_v40 = vpop.f32.mrb[35].mxu1 }
 0x139   :  { %3829 = vst [vmem:[#allocation24_spill] sm:$0xff] %v3513_v39  ;;  %3830 = vst [vmem:[#allocation25_spill] sm:$0xff] %v3515_v40 }
 0x13d   :  { %v3517_v41 = vpop.f32.mrb[36].mxu0  ;;  %v3519_v42 = vpop.f32.mrb[36].mxu1 }
 0x13e   :  { %3831 = vst [vmem:[#allocation26_spill] sm:$0xff] %v3517_v41  ;;  %3832 = vst [vmem:[#allocation27_spill] sm:$0xff] %v3519_v42  ;;  %v3521_v43 = vpop.f32.mrb[37].mxu0  ;;  %v3523_v33 = vpop.f32.mrb[37].mxu1 }
 0x13f   :  { %3833 = vst [vmem:[#allocation28_spill] sm:$0xff] %v3521_v43  ;;  %3834 = vst [vmem:[#allocation29_spill] sm:$0xff] %v3523_v33  ;;  %v3525_v32 = vpop.f32.mrb[38].mxu0  ;;  %v3527_v29 = vpop.f32.mrb[38].mxu1 }
 0x140   :  { %3835 = vst [vmem:[#allocation30_spill] sm:$0xff] %v3525_v32  ;;  %3836 = vst [vmem:[#allocation31_spill] sm:$0xff] %v3527_v29  ;;  %v3529_v36 = vpop.f32.mrb[39].mxu0  ;;  %v3531_v37 = vpop.f32.mrb[39].mxu1 }
 0x141   :  { %3837 = vst [vmem:[#allocation32_spill] sm:$0xff] %v3529_v36  ;;  %3838 = vst [vmem:[#allocation33_spill] sm:$0xff] %v3531_v37 }
 0x145   :  { %v3533_v28 = vpop.f32.mrb[40].mxu0  ;;  %v3535_v39 = vpop.f32.mrb[40].mxu1 }
 0x146   :  { %3839 = vst [vmem:[#allocation34_spill] sm:$0xff] %v3533_v28  ;;  %3840 = vst [vmem:[#allocation35_spill] sm:$0xff] %v3535_v39  ;;  %v3537_v40 = vpop.f32.mrb[41].mxu0  ;;  %v3539_v41 = vpop.f32.mrb[41].mxu1 }
 0x147   :  { %3841 = vst [vmem:[#allocation36_spill] sm:$0xff] %v3537_v40  ;;  %3842 = vst [vmem:[#allocation37_spill] sm:$0xff] %v3539_v41  ;;  %v3541_v42 = vpop.f32.mrb[42].mxu0  ;;  %v3543_v43 = vpop.f32.mrb[42].mxu1 }
 0x148   :  { %3843 = vst [vmem:[#allocation38_spill] sm:$0xff] %v3541_v42  ;;  %3844 = vst [vmem:[#allocation39_spill] sm:$0xff] %v3543_v43  ;;  %v3545_v33 = vpop.f32.mrb[43].mxu0  ;;  %v3547_v32 = vpop.f32.mrb[43].mxu1 }
 0x149   :  { %3845 = vst [vmem:[#allocation40_spill] sm:$0xff] %v3545_v33  ;;  %3846 = vst [vmem:[#allocation41_spill] sm:$0xff] %v3547_v32 }
 0x14d   :  { %v3549_v29 = vpop.f32.mrb[44].mxu0  ;;  %v3551_v36 = vpop.f32.mrb[44].mxu1 }
 0x14e   :  { %3847 = vst [vmem:[#allocation42_spill] sm:$0xff] %v3549_v29  ;;  %3848 = vst [vmem:[#allocation43_spill] sm:$0xff] %v3551_v36  ;;  %v3553_v37 = vpop.f32.mrb[45].mxu0  ;;  %v3555_v28 = vpop.f32.mrb[45].mxu1 }
 0x14f   :  { %3849 = vst [vmem:[#allocation44_spill] sm:$0xff] %v3553_v37  ;;  %3850 = vst [vmem:[#allocation45_spill] sm:$0xff] %v3555_v28  ;;  %v3557_v39 = vpop.f32.mrb[46].mxu0  ;;  %v3559_v40 = vpop.f32.mrb[46].mxu1 }
 0x150   :  { %3851 = vst [vmem:[#allocation46_spill] sm:$0xff] %v3557_v39  ;;  %3852 = vst [vmem:[#allocation47_spill] sm:$0xff] %v3559_v40  ;;  %v3561_v41 = vpop.f32.mrb[47].mxu0  ;;  %v3563_v42 = vpop.f32.mrb[47].mxu1  ;;  %v3574_v39 = vld [vmem:[%s3805_s2] ss:$0 sm:$0xff] }
 0x151   :  { %3853 = vst [vmem:[#allocation48_spill] sm:$0xff] %v3561_v41  ;;  %3854 = vst [vmem:[#allocation49_spill] sm:$0xff] %v3563_v42 }
 0x155   :  { %v2755_v43 = vpop.f32.mrb[48].mxu0  ;;  %v2855_v33 = vpop.f32.mrb[48].mxu1 }
 0x156   :  { %v1712_v32 = vmax.f32 %v3377_v46, %v2755_v43  ;;  %v1762_v29 = vmax.f32 %v3379_v47, %v2855_v33  ;;  %v3567_v38 = vpop.f32.mrb[49].mxu0  ;;  %v3569_v36 = vpop.f32.mrb[49].mxu1 }
 0x157   :  { %3855 = vst [vmem:[#allocation50_spill] sm:$0xff] %v3567_v38  ;;  %3856 = vst [vmem:[#allocation51_spill] sm:$0xff] %v3569_v36  ;;  %v2756_v40 = vpop.f32.mrb[50].mxu0  ;;  %v2856_v28 = vpop.f32.mrb[50].mxu1 }
 0x158   :  { %v1812_v41 = vmax.f32 %v1712_v32, %v1762_v29  ;;  %v1713_v42 = vmax.f32 %v3385_v50, %v2756_v40  ;;  %v1763_v37 = vmax.f32 %v3387_v51, %v2856_v28  ;;  %v3578_v25 = vpop.f32.mrb[51].mxu0  ;;  %v3580_v46 = vpop.f32.mrb[51].mxu1 }
 0x159   :  { %3857 = vst [vmem:[#allocation52_spill] sm:$0xff] %v3578_v25  ;;  %3858 = vst [vmem:[#allocation53_spill] sm:$0xff] %v3580_v46 }
 0x15a   :  { %v1869_v47 = vadd.f32 %v3574_v39, %v1812_v41  ;;  %v1813_v33 = vmax.f32 %v1713_v42, %v1763_v37 }
 0x15c   :  { %v1870_v43 = vadd.f32 %v3574_v39, %v1813_v33  ;;  %v1919_v24 = vmax.f32 %v1869_v47, 0.0 }
 0x15d   :  { %v2759_v36 = vpop.f32.mrb[52].mxu0  ;;  %v2859_v38 = vpop.f32.mrb[52].mxu1 }
 0x15e   :  { %v1920_v35 = vmax.f32 %v1870_v43, 0.0  ;;  %v1716_v34 = vmax.f32 %v3393_v54, %v2759_v36  ;;  %v1766_v29 = vmax.f32 %v3395_v55, %v2859_v38  ;;  %v1121_v50 = vpop.f32.mrb[53].mxu0  ;;  %v1521_v32 = vpop.f32.mrb[53].mxu1 }
 0x15f   :  { %v1714_v51 = vmax.f32 %v3373_v44, %v1121_v50  ;;  %v1764_v28 = vmax.f32 %v3375_v45, %v1521_v32  ;;  %v2760_v40 = vpop.f32.mrb[54].mxu0  ;;  %v2860_v46 = vpop.f32.mrb[54].mxu1 }
 0x160   :  { %v2435_v41 = vpack.c.bf16 %v1920_v35, %v1919_v24  ;;  %v1816_v37 = vmax.f32 %v1716_v34, %v1766_v29  ;;  %v1717_v42 = vmax.f32 %v3401_v58, %v2760_v40  ;;  %v1767_v33 = vmax.f32 %v3403_v59, %v2860_v46  ;;  %v1124_v47 = vpop.f32.mrb[55].mxu0  ;;  %v1524_v43 = vpop.f32.mrb[55].mxu1 }
 0x161   :  { %v1814_v25 = vmax.f32 %v1714_v51, %v1764_v28  ;;  %v1715_v54 = vmax.f32 %v3381_v48, %v1124_v47  ;;  %v1765_v55 = vmax.f32 %v3383_v49, %v1524_v43 }
 0x162   :  { %2436 = vst [vmem:[%s3806_s3] sm:$0xff] %v2435_v41   ;;  %v1873_v44 = vadd.f32 %v3574_v39, %v1816_v37  ;;  %v1817_v45 = vmax.f32 %v1717_v42, %v1767_v33 }
 0x163   :  { %v1871_v24 = vadd.f32 %v3574_v39, %v1814_v25  ;;  %v1815_v34 = vmax.f32 %v1715_v54, %v1765_v55 }
 0x164   :  { %v1874_v58 = vadd.f32 %v3574_v39, %v1817_v45  ;;  %v1923_v38 = vmax.f32 %v1873_v44, 0.0 }
 0x165   :  { %v1872_v59 = vadd.f32 %v3574_v39, %v1815_v34  ;;  %v2763_v35 = vpop.f32.mrb[56].mxu0  ;;  %v2863_v36 = vpop.f32.mrb[56].mxu1  ;;  %v1921_v32 = vmax.f32 %v1871_v24, 0.0 }
 0x166   :  { %v1924_v48 = vmax.f32 %v1874_v58, 0.0  ;;  %v1720_v49 = vmax.f32 %v3409_v62, %v2763_v35  ;;  %v1770_v46 = vmax.f32 %v3411_v63, %v2863_v36  ;;  %v1137_v29 = vpop.f32.mrb[57].mxu0  ;;  %v1537_v50 = vpop.f32.mrb[57].mxu1 }
 0x167   :  { %v1922_v51 = vmax.f32 %v1872_v59, 0.0  ;;  %v1718_v28 = vmax.f32 %v3389_v52, %v1137_v29  ;;  %v1768_v25 = vmax.f32 %v3391_v53, %v1537_v50  ;;  %v2764_v40 = vpop.f32.mrb[58].mxu0  ;;  %v2864_v41 = vpop.f32.mrb[58].mxu1 }
 0x168   :  { %v2445_v37 = vpack.c.bf16 %v1924_v48, %v1923_v38  ;;  %v1820_v42 = vmax.f32 %v1720_v49, %v1770_v46  ;;  %v1721_v33 = vmax.f32 %v3417_v2, %v2764_v40  ;;  %v1771_v47 = vmax.f32 %v3419_v3, %v2864_v41  ;;  %v1140_v43 = vpop.f32.mrb[59].mxu0  ;;  %v1540_v62 = vpop.f32.mrb[59].mxu1 }
 0x169   :  { %v2440_v54 = vpack.c.bf16 %v1922_v51, %v1921_v32  ;;  %v1818_v63 = vmax.f32 %v1718_v28, %v1768_v25  ;;  %v1719_v55 = vmax.f32 %v3397_v56, %v1140_v43  ;;  %v1769_v44 = vmax.f32 %v3399_v57, %v1540_v62 }
 0x16a   :  { %2558 = vst [vmem:[%s3806_s3 + $0x10] sm:$0xff] %v2445_v37   ;;  %v1877_v52 = vadd.f32 %v3574_v39, %v1820_v42  ;;  %v1821_v53 = vmax.f32 %v1721_v33, %v1771_v47 }
 0x16b   :  { %2557 = vst [vmem:[%s3806_s3 + $0x8] sm:$0xff] %v2440_v54   ;;  %v1875_v2 = vadd.f32 %v3574_v39, %v1818_v63  ;;  %v1819_v3 = vmax.f32 %v1719_v55, %v1769_v44 }
 0x16c   :  { %v1878_v45 = vadd.f32 %v3574_v39, %v1821_v53  ;;  %v1927_v34 = vmax.f32 %v1877_v52, 0.0 }
 0x16d   :  { %v1876_v56 = vadd.f32 %v3574_v39, %v1819_v3  ;;  %v2767_v24 = vpop.f32.mrb[60].mxu0  ;;  %v2867_v57 = vpop.f32.mrb[60].mxu1  ;;  %v1925_v48 = vmax.f32 %v1875_v2, 0.0 }
 0x16e   :  { %v1928_v58 = vmax.f32 %v1878_v45, 0.0  ;;  %v1724_v59 = vmax.f32 %v3425_v6, %v2767_v24  ;;  %v1774_v35 = vmax.f32 %v3427_v7, %v2867_v57  ;;  %v1153_v36 = vpop.f32.mrb[61].mxu0  ;;  %v1553_v38 = vpop.f32.mrb[61].mxu1 }
 0x16f   :  { %v1926_v49 = vmax.f32 %v1876_v56, 0.0  ;;  %v1722_v46 = vmax.f32 %v3405_v60, %v1153_v36  ;;  %v1772_v29 = vmax.f32 %v3407_v61, %v1553_v38  ;;  %v2768_v50 = vpop.f32.mrb[62].mxu0  ;;  %v2868_v32 = vpop.f32.mrb[62].mxu1 }
 0x170   :  { %v2455_v51 = vpack.c.bf16 %v1928_v58, %v1927_v34  ;;  %v1824_v28 = vmax.f32 %v1724_v59, %v1774_v35  ;;  %v1725_v25 = vmax.f32 %v3433_v10, %v2768_v50  ;;  %v1775_v40 = vmax.f32 %v3435_v11, %v2868_v32  ;;  %v1156_v41 = vpop.f32.mrb[63].mxu0  ;;  %v1556_v6 = vpop.f32.mrb[63].mxu1 }
 0x171   :  { %v2450_v37 = vpack.c.bf16 %v1926_v49, %v1925_v48  ;;  %v1822_v7 = vmax.f32 %v1722_v46, %v1772_v29  ;;  %v1723_v42 = vmax.f32 %v3413_v0, %v1156_v41  ;;  %v1773_v33 = vmax.f32 %v3415_v1, %v1556_v6 }
 0x172   :  { %2560 = vst [vmem:[%s3806_s3 + $0x20] sm:$0xff] %v2455_v51   ;;  %v1881_v60 = vadd.f32 %v3574_v39, %v1824_v28  ;;  %v1825_v61 = vmax.f32 %v1725_v25, %v1775_v40 }
 0x173   :  { %2559 = vst [vmem:[%s3806_s3 + $0x18] sm:$0xff] %v2450_v37   ;;  %v1879_v10 = vadd.f32 %v3574_v39, %v1822_v7  ;;  %v1823_v11 = vmax.f32 %v1723_v42, %v1773_v33 }
 0x174   :  { %v1882_v47 = vadd.f32 %v3574_v39, %v1825_v61  ;;  %v1931_v62 = vmax.f32 %v1881_v60, 0.0 }
 0x175   :  { %v1880_v0 = vadd.f32 %v3574_v39, %v1823_v11  ;;  %v2771_v43 = vpop.f32.mrb[64].mxu0  ;;  %v2871_v1 = vpop.f32.mrb[64].mxu1  ;;  %v1929_v53 = vmax.f32 %v1879_v10, 0.0 }
 0x176   :  { %v1932_v54 = vmax.f32 %v1882_v47, 0.0  ;;  %v1728_v63 = vmax.f32 %v3441_v14, %v2771_v43  ;;  %v1778_v55 = vmax.f32 %v3443_v15, %v2871_v1  ;;  %v1169_v44 = vpop.f32.mrb[65].mxu0  ;;  %v1569_v52 = vpop.f32.mrb[65].mxu1 }
 0x177   :  { %v1930_v2 = vmax.f32 %v1880_v0, 0.0  ;;  %v1726_v3 = vmax.f32 %v3421_v4, %v1169_v44  ;;  %v1776_v45 = vmax.f32 %v3423_v5, %v1569_v52  ;;  %v2772_v56 = vpop.f32.mrb[66].mxu0  ;;  %v2872_v24 = vpop.f32.mrb[66].mxu1 }
 0x178   :  { %v2465_v57 = vpack.c.bf16 %v1932_v54, %v1931_v62  ;;  %v1828_v34 = vmax.f32 %v1728_v63, %v1778_v55  ;;  %v1729_v58 = vmax.f32 %v3449_v18, %v2772_v56  ;;  %v1779_v59 = vmax.f32 %v3451_v19, %v2872_v24  ;;  %v1172_v35 = vpop.f32.mrb[67].mxu0  ;;  %v1572_v14 = vpop.f32.mrb[67].mxu1 }
 0x179   :  { %v2460_v36 = vpack.c.bf16 %v1930_v2, %v1929_v53  ;;  %v1826_v15 = vmax.f32 %v1726_v3, %v1776_v45  ;;  %v1727_v38 = vmax.f32 %v3429_v8, %v1172_v35  ;;  %v1777_v48 = vmax.f32 %v3431_v9, %v1572_v14  ;;  %v3860_v14 = vld [vmem:[#allocation9_spill] sm:$0xff] }
 0x17a   :  { %2562 = vst [vmem:[%s3806_s3 + $0x30] sm:$0xff] %v2465_v57   ;;  %v1885_v4 = vadd.f32 %v3574_v39, %v1828_v34  ;;  %v1829_v5 = vmax.f32 %v1729_v58, %v1779_v59  ;;  %v3859_v59 = vld [vmem:[#allocation8_spill] sm:$0xff] }
 0x17b   :  { %2561 = vst [vmem:[%s3806_s3 + $0x28] sm:$0xff] %v2460_v36   ;;  %v1883_v18 = vadd.f32 %v3574_v39, %v1826_v15  ;;  %v1827_v19 = vmax.f32 %v1727_v38, %v1777_v48  ;;  %v3861_v48 = vld [vmem:[#allocation2_spill] sm:$0xff] }
 0x17c   :  { %v1886_v49 = vadd.f32 %v3574_v39, %v1829_v5  ;;  %v1935_v29 = vmax.f32 %v1885_v4, 0.0  ;;  %v3862_v5 = vld [vmem:[#allocation3_spill] sm:$0xff] }
 0x17d   :  { %v1884_v8 = vadd.f32 %v3574_v39, %v1827_v19  ;;  %v2775_v46 = vpop.f32.mrb[68].mxu0  ;;  %v2875_v9 = vpop.f32.mrb[68].mxu1  ;;  %v1933_v40 = vmax.f32 %v1883_v18, 0.0 }
 0x17e   :  { %v1936_v50 = vmax.f32 %v1886_v49, 0.0  ;;  %v1732_v32 = vmax.f32 %v3457_v22, %v2775_v46  ;;  %v1782_v51 = vmax.f32 %v3459_v23, %v2875_v9  ;;  %v1185_v28 = vpop.f32.mrb[69].mxu0  ;;  %v1585_v25 = vpop.f32.mrb[69].mxu1 }
 0x17f   :  { %v1934_v41 = vmax.f32 %v1884_v8, 0.0  ;;  %v1730_v6 = vmax.f32 %v3437_v12, %v1185_v28  ;;  %v1780_v37 = vmax.f32 %v3439_v13, %v1585_v25  ;;  %v2776_v7 = vpop.f32.mrb[70].mxu0  ;;  %v2876_v42 = vpop.f32.mrb[70].mxu1  ;;  %v3864_v25 = vld [vmem:[#allocation13_spill] sm:$0xff] }
 0x180   :  { %v2475_v33 = vpack.c.bf16 %v1936_v50, %v1935_v29  ;;  %v1832_v60 = vmax.f32 %v1732_v32, %v1782_v51  ;;  %v1733_v61 = vmax.f32 %v3465_v26, %v2776_v7  ;;  %v1783_v10 = vmax.f32 %v3467_v27, %v2876_v42  ;;  %v1188_v11 = vpop.f32.mrb[71].mxu0  ;;  %v1588_v22 = vpop.f32.mrb[71].mxu1  ;;  %v3863_v51 = vld [vmem:[#allocation12_spill] sm:$0xff] }
 0x181   :  { %v2470_v47 = vpack.c.bf16 %v1934_v41, %v1933_v40  ;;  %v1830_v23 = vmax.f32 %v1730_v6, %v1780_v37  ;;  %v1731_v0 = vmax.f32 %v3445_v16, %v1188_v11  ;;  %v1781_v43 = vmax.f32 %v3447_v17, %v1588_v22  ;;  %v3865_v42 = vld [vmem:[#allocation4_spill] sm:$0xff] }
 0x182   :  { %2564 = vst [vmem:[%s3806_s3 + $0x40] sm:$0xff] %v2475_v33   ;;  %v1889_v12 = vadd.f32 %v3574_v39, %v1832_v60  ;;  %v1833_v13 = vmax.f32 %v1733_v61, %v1783_v10  ;;  %v3866_v60 = vld [vmem:[#allocation5_spill] sm:$0xff] }
 0x183   :  { %2563 = vst [vmem:[%s3806_s3 + $0x38] sm:$0xff] %v2470_v47   ;;  %v1887_v26 = vadd.f32 %v3574_v39, %v1830_v23  ;;  %v1831_v27 = vmax.f32 %v1731_v0, %v1781_v43  ;;  %v3867_v23 = vld [vmem:[#allocation16_spill] sm:$0xff]  ;;  %v3868_v43 = vld [vmem:[#allocation17_spill] sm:$0xff] }
 0x184   :  { %v1890_v1 = vadd.f32 %v3574_v39, %v1833_v13  ;;  %v1939_v54 = vmax.f32 %v1889_v12, 0.0 }
 0x185   :  { %v1888_v16 = vadd.f32 %v3574_v39, %v1831_v27  ;;  %v2779_v62 = vpop.f32.mrb[72].mxu0  ;;  %v2879_v17 = vpop.f32.mrb[72].mxu1  ;;  %v1937_v2 = vmax.f32 %v1887_v26, 0.0 }
 0x186   :  { %v1940_v63 = vmax.f32 %v1890_v1, 0.0  ;;  %v1736_v55 = vmax.f32 %v3473_v30, %v2779_v62  ;;  %v1786_v44 = vmax.f32 %v3475_v31, %v2879_v17  ;;  %v1201_v52 = vpop.f32.mrb[73].mxu0  ;;  %v1601_v53 = vpop.f32.mrb[73].mxu1  ;;  %v3870_v17 = vld [vmem:[#allocation7_spill] sm:$0xff] }
 0x187   :  { %v1938_v3 = vmax.f32 %v1888_v16, 0.0  ;;  %v1734_v45 = vmax.f32 %v3453_v20, %v1201_v52  ;;  %v1784_v56 = vmax.f32 %v3455_v21, %v1601_v53  ;;  %v2780_v24 = vpop.f32.mrb[74].mxu0  ;;  %v2880_v57 = vpop.f32.mrb[74].mxu1  ;;  %v3869_v16 = vld [vmem:[#allocation6_spill] sm:$0xff] }
 0x188   :  { %v2485_v34 = vpack.c.bf16 %v1940_v63, %v1939_v54  ;;  %v1836_v58 = vmax.f32 %v1736_v55, %v1786_v44  ;;  %v1737_v35 = vmax.f32 %v3859_v59, %v2780_v24  ;;  %v1787_v36 = vmax.f32 %v3860_v14, %v2880_v57  ;;  %v1204_v15 = vpop.f32.mrb[75].mxu0  ;;  %v1604_v30 = vpop.f32.mrb[75].mxu1  ;;  %v3871_v57 = vld [vmem:[#allocation20_spill] sm:$0xff] }
 0x189   :  { %v2480_v38 = vpack.c.bf16 %v1938_v3, %v1937_v2  ;;  %v1834_v31 = vmax.f32 %v1734_v45, %v1784_v56  ;;  %v1735_v4 = vmax.f32 %v3861_v48, %v1204_v15  ;;  %v1785_v18 = vmax.f32 %v3862_v5, %v1604_v30  ;;  %v3873_v30 = vld [vmem:[#allocation10_spill] sm:$0xff] }
 0x18a   :  { %2566 = vst [vmem:[%s3806_s3 + $0x50] sm:$0xff] %v2485_v34   ;;  %v1893_v20 = vadd.f32 %v3574_v39, %v1836_v58  ;;  %v1837_v21 = vmax.f32 %v1737_v35, %v1787_v36  ;;  %v3872_v58 = vld [vmem:[#allocation21_spill] sm:$0xff] }
 0x18b   :  { %2565 = vst [vmem:[%s3806_s3 + $0x48] sm:$0xff] %v2480_v38   ;;  %v1891_v19 = vadd.f32 %v3574_v39, %v1834_v31  ;;  %v1835_v49 = vmax.f32 %v1735_v4, %v1785_v18  ;;  %v3874_v31 = vld [vmem:[#allocation11_spill] sm:$0xff] }
 0x18c   :  { %v1894_v8 = vadd.f32 %v3574_v39, %v1837_v21  ;;  %v1943_v50 = vmax.f32 %v1893_v20, 0.0  ;;  %v3875_v21 = vld [vmem:[#allocation24_spill] sm:$0xff] }
 0x18d   :  { %v1892_v46 = vadd.f32 %v3574_v39, %v1835_v49  ;;  %v2783_v9 = vpop.f32.mrb[76].mxu0  ;;  %v2883_v29 = vpop.f32.mrb[76].mxu1  ;;  %v1941_v37 = vmax.f32 %v1891_v19, 0.0  ;;  %v3876_v49 = vld [vmem:[#allocation25_spill] sm:$0xff] }
 0x18e   :  { %v1944_v32 = vmax.f32 %v1894_v8, 0.0  ;;  %v1740_v28 = vmax.f32 %v3863_v51, %v2783_v9  ;;  %v1790_v40 = vmax.f32 %v3864_v25, %v2883_v29  ;;  %v1217_v41 = vpop.f32.mrb[77].mxu0  ;;  %v1617_v6 = vpop.f32.mrb[77].mxu1 }
 0x18f   :  { %v1942_v7 = vmax.f32 %v1892_v46, 0.0  ;;  %v1738_v33 = vmax.f32 %v3865_v42, %v1217_v41  ;;  %v1788_v61 = vmax.f32 %v3866_v60, %v1617_v6  ;;  %v2784_v10 = vpop.f32.mrb[78].mxu0  ;;  %v2884_v11 = vpop.f32.mrb[78].mxu1 }
 0x190   :  { %v2495_v22 = vpack.c.bf16 %v1944_v32, %v1943_v50  ;;  %v1840_v47 = vmax.f32 %v1740_v28, %v1790_v40  ;;  %v1741_v0 = vmax.f32 %v3867_v23, %v2784_v10  ;;  %v1791_v12 = vmax.f32 %v3868_v43, %v2884_v11  ;;  %v1220_v13 = vpop.f32.mrb[79].mxu0  ;;  %v1620_v26 = vpop.f32.mrb[79].mxu1  ;;  %v3877_v32 = vld [vmem:[#allocation14_spill] sm:$0xff]  ;;  %v3878_v28 = vld [vmem:[#allocation15_spill] sm:$0xff]  ;;  %v3879_v11 = vld [vmem:[#allocation28_spill] sm:$0xff] }
 0x191   :  { %v2490_v27 = vpack.c.bf16 %v1942_v7, %v1941_v37  ;;  %v1838_v1 = vmax.f32 %v1738_v33, %v1788_v61  ;;  %v1739_v62 = vmax.f32 %v3869_v16, %v1220_v13  ;;  %v1789_v54 = vmax.f32 %v3870_v17, %v1620_v26  ;;  %v3881_v26 = vld [vmem:[#allocation18_spill] sm:$0xff] }
 0x192   :  { %2568 = vst [vmem:[%s3806_s3 + $0x60] sm:$0xff] %v2495_v22   ;;  %v1897_v63 = vadd.f32 %v3574_v39, %v1840_v47  ;;  %v1841_v55 = vmax.f32 %v1741_v0, %v1791_v12  ;;  %v3880_v47 = vld [vmem:[#allocation29_spill] sm:$0xff] }
 0x193   :  { %2567 = vst [vmem:[%s3806_s3 + $0x58] sm:$0xff] %v2490_v27   ;;  %v1895_v44 = vadd.f32 %v3574_v39, %v1838_v1  ;;  %v1839_v52 = vmax.f32 %v1739_v62, %v1789_v54  ;;  %v3882_v1 = vld [vmem:[#allocation19_spill] sm:$0xff] }
 0x194   :  { %v1898_v53 = vadd.f32 %v3574_v39, %v1841_v55  ;;  %v1947_v56 = vmax.f32 %v1897_v63, 0.0  ;;  %v3883_v55 = vld [vmem:[#allocation32_spill] sm:$0xff] }
 0x195   :  { %v1896_v2 = vadd.f32 %v3574_v39, %v1839_v52  ;;  %v2787_v3 = vpop.f32.mrb[80].mxu0  ;;  %v2887_v45 = vpop.f32.mrb[80].mxu1  ;;  %v1945_v36 = vmax.f32 %v1895_v44, 0.0  ;;  %v3884_v52 = vld [vmem:[#allocation33_spill] sm:$0xff] }
 0x196   :  { %v1948_v24 = vmax.f32 %v1898_v53, 0.0  ;;  %v1744_v34 = vmax.f32 %v3871_v57, %v2787_v3  ;;  %v1794_v59 = vmax.f32 %v3872_v58, %v2887_v45  ;;  %v1233_v35 = vpop.f32.mrb[81].mxu0  ;;  %v1633_v14 = vpop.f32.mrb[81].mxu1 }
 0x197   :  { %v1946_v15 = vmax.f32 %v1896_v2, 0.0  ;;  %v1742_v38 = vmax.f32 %v3873_v30, %v1233_v35  ;;  %v1792_v48 = vmax.f32 %v3874_v31, %v1633_v14  ;;  %v2788_v4 = vpop.f32.mrb[82].mxu0  ;;  %v2888_v5 = vpop.f32.mrb[82].mxu1 }
 0x198   :  { %v2505_v18 = vpack.c.bf16 %v1948_v24, %v1947_v56  ;;  %v1844_v20 = vmax.f32 %v1744_v34, %v1794_v59  ;;  %v1745_v19 = vmax.f32 %v3875_v21, %v2788_v4  ;;  %v1795_v8 = vmax.f32 %v3876_v49, %v2888_v5  ;;  %v1236_v46 = vpop.f32.mrb[83].mxu0  ;;  %v1636_v9 = vpop.f32.mrb[83].mxu1  ;;  %v3885_v24 = vld [vmem:[#allocation22_spill] sm:$0xff]  ;;  %v3886_v34 = vld [vmem:[#allocation23_spill] sm:$0xff]  ;;  %v3887_v5 = vld [vmem:[#allocation36_spill] sm:$0xff] }
 0x199   :  { %v2500_v29 = vpack.c.bf16 %v1946_v15, %v1945_v36  ;;  %v1842_v50 = vmax.f32 %v1742_v38, %v1792_v48  ;;  %v1743_v51 = vmax.f32 %v3877_v32, %v1236_v46  ;;  %v1793_v25 = vmax.f32 %v3878_v28, %v1636_v9  ;;  %v3889_v9 = vld [vmem:[#allocation26_spill] sm:$0xff] }
 0x19a   :  { %2570 = vst [vmem:[%s3806_s3 + $0x70] sm:$0xff] %v2505_v18   ;;  %v1901_v40 = vadd.f32 %v3574_v39, %v1844_v20  ;;  %v1845_v41 = vmax.f32 %v1745_v19, %v1795_v8  ;;  %v3888_v20 = vld [vmem:[#allocation37_spill] sm:$0xff] }
 0x19b   :  { %2569 = vst [vmem:[%s3806_s3 + $0x68] sm:$0xff] %v2500_v29   ;;  %v1899_v6 = vadd.f32 %v3574_v39, %v1842_v50  ;;  %v1843_v37 = vmax.f32 %v1743_v51, %v1793_v25  ;;  %v3890_v50 = vld [vmem:[#allocation27_spill] sm:$0xff] }
 0x19c   :  { %v1902_v7 = vadd.f32 %v3574_v39, %v1845_v41  ;;  %v1951_v61 = vmax.f32 %v1901_v40, 0.0  ;;  %v3891_v41 = vld [vmem:[#allocation40_spill] sm:$0xff] }
 0x19d   :  { %v1900_v42 = vadd.f32 %v3574_v39, %v1843_v37  ;;  %v2791_v33 = vpop.f32.mrb[84].mxu0  ;;  %v2891_v60 = vpop.f32.mrb[84].mxu1  ;;  %v1949_v12 = vmax.f32 %v1899_v6, 0.0  ;;  %v3892_v37 = vld [vmem:[#allocation41_spill] sm:$0xff] }
 0x19e   :  { %v1952_v10 = vmax.f32 %v1902_v7, 0.0  ;;  %v1748_v22 = vmax.f32 %v3879_v11, %v2791_v33  ;;  %v1798_v23 = vmax.f32 %v3880_v47, %v2891_v60  ;;  %v1249_v0 = vpop.f32.mrb[85].mxu0  ;;  %v1649_v43 = vpop.f32.mrb[85].mxu1 }
 0x19f   :  { %v1950_v13 = vmax.f32 %v1900_v42, 0.0  ;;  %v1746_v27 = vmax.f32 %v3881_v26, %v1249_v0  ;;  %v1796_v16 = vmax.f32 %v3882_v1, %v1649_v43  ;;  %v2792_v62 = vpop.f32.mrb[86].mxu0  ;;  %v2892_v17 = vpop.f32.mrb[86].mxu1 }
 0x1a0   :  { %v2515_v54 = vpack.c.bf16 %v1952_v10, %v1951_v61  ;;  %v1848_v63 = vmax.f32 %v1748_v22, %v1798_v23  ;;  %v1749_v44 = vmax.f32 %v3883_v55, %v2792_v62  ;;  %v1799_v53 = vmax.f32 %v3884_v52, %v2892_v17  ;;  %v1252_v2 = vpop.f32.mrb[87].mxu0  ;;  %v1652_v3 = vpop.f32.mrb[87].mxu1  ;;  %v3893_v10 = vld [vmem:[#allocation30_spill] sm:$0xff]  ;;  %v3894_v22 = vld [vmem:[#allocation31_spill] sm:$0xff]  ;;  %v3895_v17 = vld [vmem:[#allocation44_spill] sm:$0xff] }
 0x1a1   :  { %v2510_v45 = vpack.c.bf16 %v1950_v13, %v1949_v12  ;;  %v1846_v56 = vmax.f32 %v1746_v27, %v1796_v16  ;;  %v1747_v57 = vmax.f32 %v3885_v24, %v1252_v2  ;;  %v1797_v58 = vmax.f32 %v3886_v34, %v1652_v3  ;;  %v3897_v3 = vld [vmem:[#allocation34_spill] sm:$0xff] }
 0x1a2   :  { %2572 = vst [vmem:[%s3806_s3 + $0x80] sm:$0xff] %v2515_v54   ;;  %v1905_v59 = vadd.f32 %v3574_v39, %v1848_v63  ;;  %v1849_v35 = vmax.f32 %v1749_v44, %v1799_v53  ;;  %v3896_v63 = vld [vmem:[#allocation45_spill] sm:$0xff] }
 0x1a3   :  { %2571 = vst [vmem:[%s3806_s3 + $0x78] sm:$0xff] %v2510_v45   ;;  %v1903_v14 = vadd.f32 %v3574_v39, %v1846_v56  ;;  %v1847_v36 = vmax.f32 %v1747_v57, %v1797_v58  ;;  %v3898_v56 = vld [vmem:[#allocation35_spill] sm:$0xff] }
 0x1a4   :  { %v1906_v15 = vadd.f32 %v3574_v39, %v1849_v35  ;;  %v1955_v48 = vmax.f32 %v1905_v59, 0.0  ;;  %v3899_v35 = vld [vmem:[#allocation48_spill] sm:$0xff] }
 0x1a5   :  { %v1904_v30 = vadd.f32 %v3574_v39, %v1847_v36  ;;  %v2795_v38 = vpop.f32.mrb[88].mxu0  ;;  %v2895_v31 = vpop.f32.mrb[88].mxu1  ;;  %v1953_v8 = vmax.f32 %v1903_v14, 0.0  ;;  %v3900_v36 = vld [vmem:[#allocation49_spill] sm:$0xff] }
 0x1a6   :  { %v1956_v4 = vmax.f32 %v1906_v15, 0.0  ;;  %v1752_v18 = vmax.f32 %v3887_v5, %v2795_v38  ;;  %v1802_v21 = vmax.f32 %v3888_v20, %v2895_v31  ;;  %v1265_v19 = vpop.f32.mrb[89].mxu0  ;;  %v1665_v49 = vpop.f32.mrb[89].mxu1 }
 0x1a7   :  { %v1954_v46 = vmax.f32 %v1904_v30, 0.0  ;;  %v1750_v29 = vmax.f32 %v3889_v9, %v1265_v19  ;;  %v1800_v32 = vmax.f32 %v3890_v50, %v1665_v49  ;;  %v2796_v51 = vpop.f32.mrb[90].mxu0  ;;  %v2896_v28 = vpop.f32.mrb[90].mxu1 }
 0x1a8   :  { %v2525_v25 = vpack.c.bf16 %v1956_v4, %v1955_v48  ;;  %v1852_v40 = vmax.f32 %v1752_v18, %v1802_v21  ;;  %v1753_v6 = vmax.f32 %v3891_v41, %v2796_v51  ;;  %v1803_v7 = vmax.f32 %v3892_v37, %v2896_v28  ;;  %v1268_v42 = vpop.f32.mrb[91].mxu0  ;;  %v1668_v33 = vpop.f32.mrb[91].mxu1  ;;  %v3901_v4 = vld [vmem:[#allocation38_spill] sm:$0xff]  ;;  %v3902_v18 = vld [vmem:[#allocation39_spill] sm:$0xff] }
 0x1a9   :  { %v2520_v60 = vpack.c.bf16 %v1954_v46, %v1953_v8  ;;  %v1850_v61 = vmax.f32 %v1750_v29, %v1800_v32  ;;  %v1751_v11 = vmax.f32 %v3893_v10, %v1268_v42  ;;  %v1801_v47 = vmax.f32 %v3894_v22, %v1668_v33  ;;  %v3903_v28 = vld [vmem:[#allocation50_spill] sm:$0xff] }
 0x1aa   :  { %2574 = vst [vmem:[%s3806_s3 + $0x90] sm:$0xff] %v2525_v25   ;;  %v1909_v23 = vadd.f32 %v3574_v39, %v1852_v40  ;;  %v1853_v0 = vmax.f32 %v1753_v6, %v1803_v7  ;;  %v3904_v40 = vld [vmem:[#allocation51_spill] sm:$0xff]  ;;  %v3905_v33 = vld [vmem:[#allocation42_spill] sm:$0xff] }
 0x1ab   :  { %2573 = vst [vmem:[%s3806_s3 + $0x88] sm:$0xff] %v2520_v60   ;;  %v1907_v43 = vadd.f32 %v3574_v39, %v1850_v61  ;;  %v1851_v12 = vmax.f32 %v1751_v11, %v1801_v47  ;;  %v3906_v61 = vld [vmem:[#allocation43_spill] sm:$0xff] }
 0x1ac   :  { %v1910_v13 = vadd.f32 %v3574_v39, %v1853_v0  ;;  %v1959_v16 = vmax.f32 %v1909_v23, 0.0  ;;  %v3907_v0 = vld [vmem:[#allocation52_spill] sm:$0xff] }
 0x1ad   :  { %v1908_v26 = vadd.f32 %v3574_v39, %v1851_v12  ;;  %v2799_v27 = vpop.f32.mrb[92].mxu0  ;;  %v2899_v1 = vpop.f32.mrb[92].mxu1  ;;  %v1957_v53 = vmax.f32 %v1907_v43, 0.0  ;;  %v3908_v12 = vld [vmem:[#allocation53_spill] sm:$0xff] }
 0x1ae   :  { %v1960_v62 = vmax.f32 %v1910_v13, 0.0  ;;  %v1756_v54 = vmax.f32 %v3895_v17, %v2799_v27  ;;  %v1806_v55 = vmax.f32 %v3896_v63, %v2899_v1  ;;  %v1281_v44 = vpop.f32.mrb[93].mxu0  ;;  %v1681_v52 = vpop.f32.mrb[93].mxu1 }
 0x1af   :  { %v1958_v2 = vmax.f32 %v1908_v26, 0.0  ;;  %v1754_v45 = vmax.f32 %v3897_v3, %v1281_v44  ;;  %v1804_v24 = vmax.f32 %v3898_v56, %v1681_v52  ;;  %v2800_v57 = vpop.f32.mrb[94].mxu0  ;;  %v2900_v34 = vpop.f32.mrb[94].mxu1 }
 0x1b0   :  { %v2535_v58 = vpack.c.bf16 %v1960_v62, %v1959_v16  ;;  %v1856_v59 = vmax.f32 %v1756_v54, %v1806_v55  ;;  %v1757_v14 = vmax.f32 %v3899_v35, %v2800_v57  ;;  %v1807_v15 = vmax.f32 %v3900_v36, %v2900_v34  ;;  %v1284_v30 = vpop.f32.mrb[95].mxu0  ;;  %v1684_v38 = vpop.f32.mrb[95].mxu1  ;;  %v3909_v62 = vld [vmem:[#allocation46_spill] sm:$0xff]  ;;  %v3910_v54 = vld [vmem:[#allocation47_spill] sm:$0xff] }
 0x1b1   :  { %v2530_v31 = vpack.c.bf16 %v1958_v2, %v1957_v53  ;;  %v1854_v48 = vmax.f32 %v1754_v45, %v1804_v24  ;;  %v1755_v5 = vmax.f32 %v3901_v4, %v1284_v30  ;;  %v1805_v20 = vmax.f32 %v3902_v18, %v1684_v38 }
 0x1b2   :  { %2576 = vst [vmem:[%s3806_s3 + $0xa0] sm:$0xff] %v2535_v58   ;;  %v1913_v21 = vadd.f32 %v3574_v39, %v1856_v59  ;;  %v1857_v19 = vmax.f32 %v1757_v14, %v1807_v15 }
 0x1b3   :  { %2575 = vst [vmem:[%s3806_s3 + $0x98] sm:$0xff] %v2530_v31   ;;  %v1911_v49 = vadd.f32 %v3574_v39, %v1854_v48  ;;  %v1855_v8 = vmax.f32 %v1755_v5, %v1805_v20 }
 0x1b4   :  { %v1914_v46 = vadd.f32 %v3574_v39, %v1857_v19  ;;  %v1963_v32 = vmax.f32 %v1913_v21, 0.0 }
 0x1b5   :  { %v1912_v9 = vadd.f32 %v3574_v39, %v1855_v8  ;;  %v2803_v29 = vpop.f32.mrb[96].mxu0  ;;  %v2903_v50 = vpop.f32.mrb[96].mxu1  ;;  %v1961_v7 = vmax.f32 %v1911_v49, 0.0 }
 0x1b6   :  { %v1964_v51 = vmax.f32 %v1914_v46, 0.0  ;;  %v1760_v25 = vmax.f32 %v3903_v28, %v2803_v29  ;;  %v1810_v41 = vmax.f32 %v3904_v40, %v2903_v50  ;;  %v1297_v6 = vpop.f32.mrb[97].mxu0  ;;  %v1697_v37 = vpop.f32.mrb[97].mxu1 }
 0x1b7   :  { %v1962_v42 = vmax.f32 %v1912_v9, 0.0  ;;  %v1758_v60 = vmax.f32 %v3905_v33, %v1297_v6  ;;  %v1808_v10 = vmax.f32 %v3906_v61, %v1697_v37  ;;  %v2804_v11 = vpop.f32.mrb[98].mxu0  ;;  %v2904_v22 = vpop.f32.mrb[98].mxu1 }
 0x1b8   :  { %v2545_v47 = vpack.c.bf16 %v1964_v51, %v1963_v32  ;;  %v1860_v23 = vmax.f32 %v1760_v25, %v1810_v41  ;;  %v1761_v43 = vmax.f32 %v3907_v0, %v2804_v11  ;;  %v1811_v13 = vmax.f32 %v3908_v12, %v2904_v22  ;;  %v1300_v26 = vpop.f32.mrb[99].mxu0  ;;  %v1700_v27 = vpop.f32.mrb[99].mxu1 }
 0x1b9   :  { %v2540_v1 = vpack.c.bf16 %v1962_v42, %v1961_v7  ;;  %v1858_v16 = vmax.f32 %v1758_v60, %v1808_v10  ;;  %v1759_v17 = vmax.f32 %v3909_v62, %v1300_v26  ;;  %v1809_v63 = vmax.f32 %v3910_v54, %v1700_v27 }
 0x1ba   :  { %2578 = vst [vmem:[%s3806_s3 + $0xb0] sm:$0xff] %v2545_v47   ;;  %v1917_v55 = vadd.f32 %v3574_v39, %v1860_v23  ;;  %v1861_v44 = vmax.f32 %v1761_v43, %v1811_v13 }
 0x1bb   :  { %2577 = vst [vmem:[%s3806_s3 + $0xa8] sm:$0xff] %v2540_v1   ;;  %v1915_v52 = vadd.f32 %v3574_v39, %v1858_v16  ;;  %v1859_v53 = vmax.f32 %v1759_v17, %v1809_v63 }
 0x1bc   :  { %v1918_v2 = vadd.f32 %v3574_v39, %v1861_v44  ;;  %v1967_v45 = vmax.f32 %v1917_v55, 0.0 }
 0x1bd   :  { %v1916_v3 = vadd.f32 %v3574_v39, %v1859_v53  ;;  %v1965_v24 = vmax.f32 %v1915_v52, 0.0 }
 0x1be   :  { %v1968_v56 = vmax.f32 %v1918_v2, 0.0 }
 0x1bf   :  { %v1966_v57 = vmax.f32 %v1916_v3, 0.0 }
 0x1c0   :  { %v2555_v34 = vpack.c.bf16 %v1968_v56, %v1967_v45 }
 0x1c1   :  { %v2550_v58 = vpack.c.bf16 %v1966_v57, %v1965_v24 }
 0x1c2   :  { %2580 = vst [vmem:[%s3806_s3 + $0xc0] sm:$0xff] %v2555_v34  }
 0x1c3   :  { %2579 = vst [vmem:[%s3806_s3 + $0xb8] sm:$0xff] %v2550_v58  }

// kernel: lenet5_forward.4
= control target key start
LH: loop header
LB: loop body
LE: loop exit
PB: predicated region body
PF: predicated region fallthrough
CT: control target
= control target key end

     0   :  { %s1985_s1 = inlined_call_operand.vmem [shape: bf16[512,128], index: 1, kind: input, shape index: {}]   ;;  %s1986_s0 = inlined_call_operand.vmem [shape: bf16[4,2,32,512], index: 0, kind: input, shape index: {}]   ;;  %s1987_s2 = inlined_call_operand.vmem [shape: f32[1,128], index: 2, kind: input, shape index: {}]   ;;  %s1988_s3 = inlined_call_operand.vmem [shape: bf16[64,128], index: 3, kind: output, shape index: {}]  }
   0x1   :  { %v1428_v0 = vld [vmem:[%s1985_s1 + $0x40] sm:$0xff]   ;;  %v1432_v4 = vld [vmem:[%s1985_s1 + $0x48] sm:$0xff]   ;;  %v1436_v8 = vld [vmem:[%s1985_s1 + $0x50] sm:$0xff]  }
   0x2   :  { %v1429_v1 = vld [vmem:[%s1985_s1 + $0xc0] sm:$0xff]   ;;  %1204 = vmatprep.subr.bf16.mxu0 %v1428_v0  ;;  %v1433_v5 = vld [vmem:[%s1985_s1 + $0xc8] sm:$0xff]   ;;  %v1437_v9 = vld [vmem:[%s1985_s1 + $0xd0] sm:$0xff]  }
   0x3   :  { %v1430_v2 = vld [vmem:[%s1985_s1] sm:$0xff]   ;;  %1316 = vmatprep.subr.bf16.mxu1 %v1429_v1  ;;  %v1434_v6 = vld [vmem:[%s1985_s1 + $0x8] sm:$0xff]   ;;  %v1438_v10 = vld [vmem:[%s1985_s1 + $0x10] sm:$0xff]  }
   0x4   :  { %v1431_v3 = vld [vmem:[%s1985_s1 + $0x80] sm:$0xff]   ;;  %1205 = vmatpush3.bf16.msra.mxu0 %v1430_v2  ;;  %v1435_v7 = vld [vmem:[%s1985_s1 + $0x88] sm:$0xff]   ;;  %v1439_v11 = vld [vmem:[%s1985_s1 + $0x90] sm:$0xff]  }
   0x5   :  { %1317 = vmatpush3.bf16.msra.mxu1 %v1431_v3  ;;  %1206 = vmatprep.subr.bf16.mxu0 %v1432_v4  ;;  %v1440_v12 = vld [vmem:[%s1985_s1 + $0x58] sm:$0xff]   ;;  %v1444_v16 = vld [vmem:[%s1985_s1 + $0x60] sm:$0xff]   ;;  %v1448_v20 = vld [vmem:[%s1985_s1 + $0x68] sm:$0xff]  }
   0x6   :  { %1318 = vmatprep.subr.bf16.mxu1 %v1433_v5  ;;  %v1441_v13 = vld [vmem:[%s1985_s1 + $0xd8] sm:$0xff]   ;;  %v1445_v17 = vld [vmem:[%s1985_s1 + $0xe0] sm:$0xff]   ;;  %v1449_v21 = vld [vmem:[%s1985_s1 + $0xe8] sm:$0xff]  }
   0x7   :  { %v1442_v14 = vld [vmem:[%s1985_s1 + $0x18] sm:$0xff]   ;;  %v1446_v18 = vld [vmem:[%s1985_s1 + $0x20] sm:$0xff]   ;;  %v1450_v22 = vld [vmem:[%s1985_s1 + $0x28] sm:$0xff]  }
   0x8   :  { %1207 = vmatpush3.bf16.msra.mxu0 %v1434_v6  ;;  %v1443_v15 = vld [vmem:[%s1985_s1 + $0x98] sm:$0xff]   ;;  %v1447_v19 = vld [vmem:[%s1985_s1 + $0xa0] sm:$0xff]   ;;  %v1451_v23 = vld [vmem:[%s1985_s1 + $0xa8] sm:$0xff]  }
   0x9   :  { %1319 = vmatpush3.bf16.msra.mxu1 %v1435_v7  ;;  %1208 = vmatprep.subr.bf16.mxu0 %v1436_v8  ;;  %v1452_v24 = vld [vmem:[%s1985_s1 + $0x70] sm:$0xff]   ;;  %v1456_v28 = vld [vmem:[%s1985_s1 + $0x78] sm:$0xff]  }
   0xa   :  { %1320 = vmatprep.subr.bf16.mxu1 %v1437_v9  ;;  %v1453_v25 = vld [vmem:[%s1985_s1 + $0xf0] sm:$0xff]   ;;  %v1457_v29 = vld [vmem:[%s1985_s1 + $0xf8] sm:$0xff]  }
   0xb   :  { %v1454_v26 = vld [vmem:[%s1985_s1 + $0x30] sm:$0xff]   ;;  %v1458_v30 = vld [vmem:[%s1985_s1 + $0x38] sm:$0xff]  }
   0xc   :  { %1209 = vmatpush3.bf16.msra.mxu0 %v1438_v10  ;;  %v1455_v27 = vld [vmem:[%s1985_s1 + $0xb0] sm:$0xff]   ;;  %v1459_v31 = vld [vmem:[%s1985_s1 + $0xb8] sm:$0xff]  }
   0xd   :  { %1321 = vmatpush3.bf16.msra.mxu1 %v1439_v11  ;;  %1210 = vmatprep.subr.bf16.mxu0 %v1440_v12  ;;  %v1460_v32 = vld [vmem:[%s1986_s0] ss:$16 sps:$4 sm:$0xff]   ;;  %v1462_v33 = vld [vmem:[%s1986_s0 + $0x4] ss:$16 sps:$4 sm:$0xff]   ;;  %v1463_v34 = vld [vmem:[%s1986_s0 + $0x8] ss:$16 sps:$4 sm:$0xff]  }
   0xe   :  { %1322 = vmatprep.subr.bf16.mxu1 %v1441_v13  ;;  %v1465_v35 = vld [vmem:[%s1986_s0 + $0xc] ss:$16 sps:$4 sm:$0xff]   ;;  %687 = vmatprep.mubr.bf16.mxu0 %v1462_v33  ;;  %v1466_v36 = vld [vmem:[%s1986_s0 + $0x24] ss:$16 sps:$4 sm:$0xff]   ;;  %v1470_v38 = vld [vmem:[%s1986_s0 + $0x20] ss:$16 sps:$4 sm:$0xff]  }
   0xf   :  { %848 = vmatprep.mubr.bf16.mxu1 %v1465_v35  ;;  %v1468_v37 = vld [vmem:[%s1986_s0 + $0x2c] ss:$16 sps:$4 sm:$0xff]   ;;  %v1471_v39 = vld [vmem:[%s1986_s0 + $0x28] ss:$16 sps:$4 sm:$0xff]   ;;  %v1472_v40 = vld [vmem:[%s1986_s0 + $0x44] ss:$16 sps:$4 sm:$0xff]  }
  0x10   :  { %1211 = vmatpush3.bf16.msra.mxu0 %v1442_v14  ;;  %v1474_v41 = vld [vmem:[%s1986_s0 + $0x4c] ss:$16 sps:$4 sm:$0xff]   ;;  %v1476_v42 = vld [vmem:[%s1986_s0 + $0x40] ss:$16 sps:$4 sm:$0xff]   ;;  %v1477_v43 = vld [vmem:[%s1986_s0 + $0x48] ss:$16 sps:$4 sm:$0xff]  }
  0x11   :  { %1323 = vmatpush3.bf16.msra.mxu1 %v1443_v15  ;;  %1212 = vmatprep.subr.bf16.mxu0 %v1444_v16  ;;  %v1478_v44 = vld [vmem:[%s1986_s0 + $0x64] ss:$16 sps:$4 sm:$0xff]   ;;  %v1480_v45 = vld [vmem:[%s1986_s0 + $0x6c] ss:$16 sps:$4 sm:$0xff]   ;;  %v1482_v46 = vld [vmem:[%s1986_s0 + $0x60] ss:$16 sps:$4 sm:$0xff]  }
  0x12   :  { %1324 = vmatprep.subr.bf16.mxu1 %v1445_v17  ;;  %v1483_v47 = vld [vmem:[%s1986_s0 + $0x68] ss:$16 sps:$4 sm:$0xff]   ;;  %v1484_v48 = vld [vmem:[%s1986_s0 + $0x84] ss:$16 sps:$4 sm:$0xff]   ;;  %v1486_v49 = vld [vmem:[%s1986_s0 + $0x8c] ss:$16 sps:$4 sm:$0xff]  }
  0x13   :  { %v1488_v50 = vld [vmem:[%s1986_s0 + $0x80] ss:$16 sps:$4 sm:$0xff]   ;;  %v1489_v51 = vld [vmem:[%s1986_s0 + $0x88] ss:$16 sps:$4 sm:$0xff]   ;;  %v1490_v52 = vld [vmem:[%s1986_s0 + $0xa4] ss:$16 sps:$4 sm:$0xff]  }
  0x14   :  { %1213 = vmatpush3.bf16.msra.mxu0 %v1446_v18  ;;  %v1492_v53 = vld [vmem:[%s1986_s0 + $0xac] ss:$16 sps:$4 sm:$0xff]   ;;  %v1494_v54 = vld [vmem:[%s1986_s0 + $0xa0] ss:$16 sps:$4 sm:$0xff]   ;;  %v1495_v55 = vld [vmem:[%s1986_s0 + $0xa8] ss:$16 sps:$4 sm:$0xff]  }
  0x15   :  { %1325 = vmatpush3.bf16.msra.mxu1 %v1447_v19  ;;  %1214 = vmatprep.subr.bf16.mxu0 %v1448_v20  ;;  %v1496_v56 = vld [vmem:[%s1986_s0 + $0xc4] ss:$16 sps:$4 sm:$0xff]   ;;  %v1498_v57 = vld [vmem:[%s1986_s0 + $0xcc] ss:$16 sps:$4 sm:$0xff]   ;;  %v1500_v58 = vld [vmem:[%s1986_s0 + $0xc0] ss:$16 sps:$4 sm:$0xff]  }
  0x16   :  { %1326 = vmatprep.subr.bf16.mxu1 %v1449_v21  ;;  %v1501_v59 = vld [vmem:[%s1986_s0 + $0xc8] ss:$16 sps:$4 sm:$0xff]   ;;  %v1502_v60 = vld [vmem:[%s1986_s0 + $0xe4] ss:$16 sps:$4 sm:$0xff]   ;;  %v1504_v61 = vld [vmem:[%s1986_s0 + $0xec] ss:$16 sps:$4 sm:$0xff]  }
  0x17   :  { %v1506_v62 = vld [vmem:[%s1986_s0 + $0xe0] ss:$16 sps:$4 sm:$0xff]   ;;  %v1507_v63 = vld [vmem:[%s1986_s0 + $0xe8] ss:$16 sps:$4 sm:$0xff]   ;;  %v1508_v0 = vld [vmem:[%s1986_s0 + $0x104] ss:$16 sps:$4 sm:$0xff]  }
  0x18   :  { %1215 = vmatpush3.bf16.msra.mxu0 %v1450_v22  ;;  %v1510_v1 = vld [vmem:[%s1986_s0 + $0x10c] ss:$16 sps:$4 sm:$0xff]   ;;  %v1512_v2 = vld [vmem:[%s1986_s0 + $0x100] ss:$16 sps:$4 sm:$0xff]   ;;  %v1513_v3 = vld [vmem:[%s1986_s0 + $0x108] ss:$16 sps:$4 sm:$0xff]  }
  0x19   :  { %1327 = vmatpush3.bf16.msra.mxu1 %v1451_v23  ;;  %1216 = vmatprep.subr.bf16.mxu0 %v1452_v24  ;;  %v1514_v4 = vld [vmem:[%s1986_s0 + $0x124] ss:$16 sps:$4 sm:$0xff]   ;;  %v1516_v5 = vld [vmem:[%s1986_s0 + $0x12c] ss:$16 sps:$4 sm:$0xff]   ;;  %v1518_v6 = vld [vmem:[%s1986_s0 + $0x120] ss:$16 sps:$4 sm:$0xff]  }
  0x1a   :  { %1328 = vmatprep.subr.bf16.mxu1 %v1453_v25  ;;  %v1519_v7 = vld [vmem:[%s1986_s0 + $0x128] ss:$16 sps:$4 sm:$0xff]   ;;  %v1520_v8 = vld [vmem:[%s1986_s0 + $0x144] ss:$16 sps:$4 sm:$0xff]   ;;  %v1522_v9 = vld [vmem:[%s1986_s0 + $0x14c] ss:$16 sps:$4 sm:$0xff]  }
  0x1b   :  { %v1524_v10 = vld [vmem:[%s1986_s0 + $0x140] ss:$16 sps:$4 sm:$0xff]   ;;  %v1525_v11 = vld [vmem:[%s1986_s0 + $0x148] ss:$16 sps:$4 sm:$0xff]   ;;  %v1526_v12 = vld [vmem:[%s1986_s0 + $0x164] ss:$16 sps:$4 sm:$0xff]  }
  0x1c   :  { %1217 = vmatpush3.bf16.msra.mxu0 %v1454_v26  ;;  %v1528_v13 = vld [vmem:[%s1986_s0 + $0x16c] ss:$16 sps:$4 sm:$0xff]   ;;  %v1530_v14 = vld [vmem:[%s1986_s0 + $0x160] ss:$16 sps:$4 sm:$0xff]   ;;  %v1531_v15 = vld [vmem:[%s1986_s0 + $0x168] ss:$16 sps:$4 sm:$0xff]  }
  0x1d   :  { %1329 = vmatpush3.bf16.msra.mxu1 %v1455_v27  ;;  %1218 = vmatprep.subr.bf16.mxu0 %v1456_v28  ;;  %v1532_v16 = vld [vmem:[%s1986_s0 + $0x184] ss:$16 sps:$4 sm:$0xff]   ;;  %v1534_v17 = vld [vmem:[%s1986_s0 + $0x18c] ss:$16 sps:$4 sm:$0xff]   ;;  %v1536_v18 = vld [vmem:[%s1986_s0 + $0x180] ss:$16 sps:$4 sm:$0xff]  }
  0x1e   :  { %1330 = vmatprep.subr.bf16.mxu1 %v1457_v29  ;;  %v1537_v19 = vld [vmem:[%s1986_s0 + $0x188] ss:$16 sps:$4 sm:$0xff]   ;;  %v1538_v20 = vld [vmem:[%s1986_s0 + $0x1a4] ss:$16 sps:$4 sm:$0xff]   ;;  %v1540_v21 = vld [vmem:[%s1986_s0 + $0x1ac] ss:$16 sps:$4 sm:$0xff]  }
  0x1f   :  { %v1542_v22 = vld [vmem:[%s1986_s0 + $0x1a0] ss:$16 sps:$4 sm:$0xff]   ;;  %v1543_v23 = vld [vmem:[%s1986_s0 + $0x1a8] ss:$16 sps:$4 sm:$0xff]   ;;  %v1544_v24 = vld [vmem:[%s1986_s0 + $0x1c4] ss:$16 sps:$4 sm:$0xff]  }
  0x20   :  { %1219 = vmatpush3.bf16.msra.mxu0 %v1458_v30  ;;  %v1546_v25 = vld [vmem:[%s1986_s0 + $0x1cc] ss:$16 sps:$4 sm:$0xff]   ;;  %v1548_v26 = vld [vmem:[%s1986_s0 + $0x1c0] ss:$16 sps:$4 sm:$0xff]   ;;  %v1549_v27 = vld [vmem:[%s1986_s0 + $0x1c8] ss:$16 sps:$4 sm:$0xff]  }
  0x21   :  { %1331 = vmatpush3.bf16.msra.mxu1 %v1459_v31  ;;  %v1550_v28 = vld [vmem:[%s1986_s0 + $0x1e4] ss:$16 sps:$4 sm:$0xff]   ;;  %v1552_v29 = vld [vmem:[%s1986_s0 + $0x1ec] ss:$16 sps:$4 sm:$0xff]   ;;  %v1554_v30 = vld [vmem:[%s1986_s0 + $0x1e0] ss:$16 sps:$4 sm:$0xff]  }
  0x22   :  { %v1555_v31 = vld [vmem:[%s1986_s0 + $0x1e8] ss:$16 sps:$4 sm:$0xff]  }
  0x23   :  { %688 = vmatmul.mubr.bf16.vlgmr.msra.gmra.mrb[0].mxu0 %v1460_v32 }
  0x24   :  { %849 = vmatmul.mubr.bf16.vlgmr.msra.gmra.mrb[0].mxu1 %v1463_v34  ;;  %695 = vmatprep.mubr.bf16.mxu0 %v1466_v36 }
  0x25   :  { %856 = vmatprep.mubr.bf16.mxu1 %v1468_v37 }
  0x2b   :  { %696 = vmatmul.mubr.bf16.gmra.mrb[4].mxu0 %v1470_v38 }
  0x2c   :  { %857 = vmatmul.mubr.bf16.gmra.mrb[4].mxu1 %v1471_v39  ;;  %703 = vmatprep.mubr.bf16.mxu0 %v1472_v40 }
  0x2d   :  { %864 = vmatprep.mubr.bf16.mxu1 %v1474_v41 }
  0x33   :  { %704 = vmatmul.mubr.bf16.gmra.mrb[8].mxu0 %v1476_v42 }
  0x34   :  { %865 = vmatmul.mubr.bf16.gmra.mrb[8].mxu1 %v1477_v43  ;;  %711 = vmatprep.mubr.bf16.mxu0 %v1478_v44 }
  0x35   :  { %872 = vmatprep.mubr.bf16.mxu1 %v1480_v45 }
  0x3b   :  { %712 = vmatmul.mubr.bf16.gmra.mrb[12].mxu0 %v1482_v46 }
  0x3c   :  { %873 = vmatmul.mubr.bf16.gmra.mrb[12].mxu1 %v1483_v47  ;;  %719 = vmatprep.mubr.bf16.mxu0 %v1484_v48 }
  0x3d   :  { %880 = vmatprep.mubr.bf16.mxu1 %v1486_v49 }
  0x43   :  { %720 = vmatmul.mubr.bf16.gmra.mrb[16].mxu0 %v1488_v50 }
  0x44   :  { %881 = vmatmul.mubr.bf16.gmra.mrb[16].mxu1 %v1489_v51  ;;  %727 = vmatprep.mubr.bf16.mxu0 %v1490_v52 }
  0x45   :  { %888 = vmatprep.mubr.bf16.mxu1 %v1492_v53 }
  0x4b   :  { %728 = vmatmul.mubr.bf16.gmra.mrb[20].mxu0 %v1494_v54 }
  0x4c   :  { %889 = vmatmul.mubr.bf16.gmra.mrb[20].mxu1 %v1495_v55  ;;  %735 = vmatprep.mubr.bf16.mxu0 %v1496_v56 }
  0x4d   :  { %896 = vmatprep.mubr.bf16.mxu1 %v1498_v57 }
  0x53   :  { %736 = vmatmul.mubr.bf16.gmra.mrb[24].mxu0 %v1500_v58 }
  0x54   :  { %897 = vmatmul.mubr.bf16.gmra.mrb[24].mxu1 %v1501_v59  ;;  %743 = vmatprep.mubr.bf16.mxu0 %v1502_v60 }
  0x55   :  { %904 = vmatprep.mubr.bf16.mxu1 %v1504_v61 }
  0x5b   :  { %744 = vmatmul.mubr.bf16.gmra.mrb[28].mxu0 %v1506_v62 }
  0x5c   :  { %905 = vmatmul.mubr.bf16.gmra.mrb[28].mxu1 %v1507_v63  ;;  %751 = vmatprep.mubr.bf16.mxu0 %v1508_v0 }
  0x5d   :  { %912 = vmatprep.mubr.bf16.mxu1 %v1510_v1 }
  0x63   :  { %752 = vmatmul.mubr.bf16.gmra.mrb[32].mxu0 %v1512_v2 }
  0x64   :  { %913 = vmatmul.mubr.bf16.gmra.mrb[32].mxu1 %v1513_v3  ;;  %759 = vmatprep.mubr.bf16.mxu0 %v1514_v4 }
  0x65   :  { %920 = vmatprep.mubr.bf16.mxu1 %v1516_v5 }
  0x6b   :  { %760 = vmatmul.mubr.bf16.gmra.mrb[36].mxu0 %v1518_v6 }
  0x6c   :  { %921 = vmatmul.mubr.bf16.gmra.mrb[36].mxu1 %v1519_v7  ;;  %767 = vmatprep.mubr.bf16.mxu0 %v1520_v8 }
  0x6d   :  { %928 = vmatprep.mubr.bf16.mxu1 %v1522_v9 }
  0x73   :  { %768 = vmatmul.mubr.bf16.gmra.mrb[40].mxu0 %v1524_v10 }
  0x74   :  { %929 = vmatmul.mubr.bf16.gmra.mrb[40].mxu1 %v1525_v11  ;;  %775 = vmatprep.mubr.bf16.mxu0 %v1526_v12 }
  0x75   :  { %936 = vmatprep.mubr.bf16.mxu1 %v1528_v13 }
  0x7b   :  { %776 = vmatmul.mubr.bf16.gmra.mrb[44].mxu0 %v1530_v14 }
  0x7c   :  { %937 = vmatmul.mubr.bf16.gmra.mrb[44].mxu1 %v1531_v15  ;;  %783 = vmatprep.mubr.bf16.mxu0 %v1532_v16 }
  0x7d   :  { %944 = vmatprep.mubr.bf16.mxu1 %v1534_v17 }
  0x83   :  { %784 = vmatmul.mubr.bf16.gmra.mrb[48].mxu0 %v1536_v18 }
  0x84   :  { %945 = vmatmul.mubr.bf16.gmra.mrb[48].mxu1 %v1537_v19  ;;  %791 = vmatprep.mubr.bf16.mxu0 %v1538_v20 }
  0x85   :  { %952 = vmatprep.mubr.bf16.mxu1 %v1540_v21 }
  0x8b   :  { %792 = vmatmul.mubr.bf16.gmra.mrb[52].mxu0 %v1542_v22 }
  0x8c   :  { %953 = vmatmul.mubr.bf16.gmra.mrb[52].mxu1 %v1543_v23  ;;  %799 = vmatprep.mubr.bf16.mxu0 %v1544_v24 }
  0x8d   :  { %960 = vmatprep.mubr.bf16.mxu1 %v1546_v25 }
  0x93   :  { %800 = vmatmul.mubr.bf16.gmra.mrb[56].mxu0 %v1548_v26 }
  0x94   :  { %961 = vmatmul.mubr.bf16.gmra.mrb[56].mxu1 %v1549_v27  ;;  %807 = vmatprep.mubr.bf16.mxu0 %v1550_v28 }
  0x95   :  { %968 = vmatprep.mubr.bf16.mxu1 %v1552_v29 }
  0x9b   :  { %808 = vmatmul.mubr.bf16.gmra.mrb[60].mxu0 %v1554_v30 }
  0x9c   :  { %969 = vmatmul.mubr.bf16.gmra.mrb[60].mxu1 %v1555_v31 }
  0xf6   :  { %v1220_v32 = vpop.f32.mrb[0].mxu0 }
  0xf7   :  { %v1332_v33 = vpop.f32.mrb[0].mxu1  ;;  %v1221_v34 = vpop.f32.mrb[1].mxu0 }
  0xf8   :  { %v1222_v35 = vadd.f32 %v1221_v34, %v1220_v32  ;;  %v1333_v36 = vpop.f32.mrb[1].mxu1  ;;  %v1223_v37 = vpop.f32.mrb[2].mxu0 }
  0xf9   :  { %v1334_v38 = vadd.f32 %v1333_v36, %v1332_v33  ;;  %v1335_v39 = vpop.f32.mrb[2].mxu1  ;;  %v1224_v40 = vpop.f32.mrb[3].mxu0 }
  0xfa   :  { %v1225_v41 = vadd.f32 %v1224_v40, %v1223_v37  ;;  %v1336_v42 = vpop.f32.mrb[3].mxu1 }
  0xfb   :  { %v1864_v43 = vadd.f32 %v1334_v38, %v1222_v35  ;;  %v1337_v44 = vadd.f32 %v1336_v42, %v1335_v39 }
  0xfd   :  { %v1866_v45 = vadd.f32 %v1337_v44, %v1225_v41 }
  0xfe   :  { %v1226_v46 = vpop.f32.mrb[4].mxu0 }
  0xff   :  { %v1338_v47 = vpop.f32.mrb[4].mxu1  ;;  %v1227_v48 = vpop.f32.mrb[5].mxu0 }
 0x100   :  { %v1228_v49 = vadd.f32 %v1227_v48, %v1226_v46  ;;  %v1339_v50 = vpop.f32.mrb[5].mxu1  ;;  %v1229_v51 = vpop.f32.mrb[6].mxu0 }
 0x101   :  { %v1340_v52 = vadd.f32 %v1339_v50, %v1338_v47  ;;  %v1341_v53 = vpop.f32.mrb[6].mxu1  ;;  %v1230_v54 = vpop.f32.mrb[7].mxu0 }
 0x102   :  { %v1231_v55 = vadd.f32 %v1230_v54, %v1229_v51  ;;  %v1342_v56 = vpop.f32.mrb[7].mxu1 }
 0x103   :  { %v1868_v57 = vadd.f32 %v1340_v52, %v1228_v49  ;;  %v1343_v58 = vadd.f32 %v1342_v56, %v1341_v53 }
 0x105   :  { %v1870_v59 = vadd.f32 %v1343_v58, %v1231_v55 }
 0x106   :  { %v1232_v60 = vpop.f32.mrb[8].mxu0 }
 0x107   :  { %v1344_v61 = vpop.f32.mrb[8].mxu1  ;;  %v1233_v62 = vpop.f32.mrb[9].mxu0 }
 0x108   :  { %v1234_v63 = vadd.f32 %v1233_v62, %v1232_v60  ;;  %v1345_v0 = vpop.f32.mrb[9].mxu1  ;;  %v1235_v1 = vpop.f32.mrb[10].mxu0 }
 0x109   :  { %v1346_v2 = vadd.f32 %v1345_v0, %v1344_v61  ;;  %v1347_v3 = vpop.f32.mrb[10].mxu1  ;;  %v1236_v4 = vpop.f32.mrb[11].mxu0 }
 0x10a   :  { %v1237_v5 = vadd.f32 %v1236_v4, %v1235_v1  ;;  %v1348_v6 = vpop.f32.mrb[11].mxu1 }
 0x10b   :  { %v1872_v7 = vadd.f32 %v1346_v2, %v1234_v63  ;;  %v1349_v8 = vadd.f32 %v1348_v6, %v1347_v3 }
 0x10d   :  { %v1874_v9 = vadd.f32 %v1349_v8, %v1237_v5 }
 0x10e   :  { %v1238_v10 = vpop.f32.mrb[12].mxu0 }
 0x10f   :  { %v1350_v11 = vpop.f32.mrb[12].mxu1  ;;  %v1239_v12 = vpop.f32.mrb[13].mxu0 }
 0x110   :  { %v1240_v13 = vadd.f32 %v1239_v12, %v1238_v10  ;;  %v1351_v14 = vpop.f32.mrb[13].mxu1  ;;  %v1241_v15 = vpop.f32.mrb[14].mxu0 }
 0x111   :  { %v1352_v16 = vadd.f32 %v1351_v14, %v1350_v11  ;;  %v1353_v17 = vpop.f32.mrb[14].mxu1  ;;  %v1242_v18 = vpop.f32.mrb[15].mxu0 }
 0x112   :  { %v1243_v19 = vadd.f32 %v1242_v18, %v1241_v15  ;;  %v1354_v20 = vpop.f32.mrb[15].mxu1 }
 0x113   :  { %v1876_v21 = vadd.f32 %v1352_v16, %v1240_v13  ;;  %v1355_v22 = vadd.f32 %v1354_v20, %v1353_v17 }
 0x115   :  { %v1878_v23 = vadd.f32 %v1355_v22, %v1243_v19 }
 0x116   :  { %v1244_v24 = vpop.f32.mrb[16].mxu0 }
 0x117   :  { %v1356_v25 = vpop.f32.mrb[16].mxu1  ;;  %v1245_v26 = vpop.f32.mrb[17].mxu0 }
 0x118   :  { %v1246_v27 = vadd.f32 %v1245_v26, %v1244_v24  ;;  %v1357_v28 = vpop.f32.mrb[17].mxu1  ;;  %v1247_v29 = vpop.f32.mrb[18].mxu0 }
 0x119   :  { %v1358_v30 = vadd.f32 %v1357_v28, %v1356_v25  ;;  %v1359_v31 = vpop.f32.mrb[18].mxu1  ;;  %v1248_v32 = vpop.f32.mrb[19].mxu0 }
 0x11a   :  { %v1249_v33 = vadd.f32 %v1248_v32, %v1247_v29  ;;  %v1360_v34 = vpop.f32.mrb[19].mxu1 }
 0x11b   :  { %v1880_v35 = vadd.f32 %v1358_v30, %v1246_v27  ;;  %v1361_v36 = vadd.f32 %v1360_v34, %v1359_v31 }
 0x11d   :  { %v977_v37 = vmax.f32 %v1864_v43, %v1880_v35  ;;  %v1884_v38 = vadd.f32 %v1361_v36, %v1249_v33 }
 0x11e   :  { %v1250_v39 = vpop.f32.mrb[20].mxu0 }
 0x11f   :  { %v978_v40 = vmax.f32 %v1866_v45, %v1884_v38  ;;  %v1362_v41 = vpop.f32.mrb[20].mxu1  ;;  %v1251_v42 = vpop.f32.mrb[21].mxu0 }
 0x120   :  { %v1252_v44 = vadd.f32 %v1251_v42, %v1250_v39  ;;  %v1363_v46 = vpop.f32.mrb[21].mxu1  ;;  %v1253_v47 = vpop.f32.mrb[22].mxu0 }
 0x121   :  { %v1364_v48 = vadd.f32 %v1363_v46, %v1362_v41  ;;  %v1365_v49 = vpop.f32.mrb[22].mxu1  ;;  %v1254_v50 = vpop.f32.mrb[23].mxu0 }
 0x122   :  { %v1255_v51 = vadd.f32 %v1254_v50, %v1253_v47  ;;  %v1366_v52 = vpop.f32.mrb[23].mxu1 }
 0x123   :  { %v1888_v53 = vadd.f32 %v1364_v48, %v1252_v44  ;;  %v1367_v54 = vadd.f32 %v1366_v52, %v1365_v49 }
 0x125   :  { %v979_v55 = vmax.f32 %v1868_v57, %v1888_v53  ;;  %v1892_v56 = vadd.f32 %v1367_v54, %v1255_v51 }
 0x126   :  { %v1256_v58 = vpop.f32.mrb[24].mxu0 }
 0x127   :  { %v980_v60 = vmax.f32 %v1870_v59, %v1892_v56  ;;  %v1368_v61 = vpop.f32.mrb[24].mxu1  ;;  %v1257_v62 = vpop.f32.mrb[25].mxu0 }
 0x128   :  { %v1258_v63 = vadd.f32 %v1257_v62, %v1256_v58  ;;  %v1369_v0 = vpop.f32.mrb[25].mxu1  ;;  %v1259_v1 = vpop.f32.mrb[26].mxu0 }
 0x129   :  { %v1370_v2 = vadd.f32 %v1369_v0, %v1368_v61  ;;  %v1371_v3 = vpop.f32.mrb[26].mxu1  ;;  %v1260_v4 = vpop.f32.mrb[27].mxu0 }
 0x12a   :  { %v1261_v5 = vadd.f32 %v1260_v4, %v1259_v1  ;;  %v1372_v6 = vpop.f32.mrb[27].mxu1 }
 0x12b   :  { %v1896_v8 = vadd.f32 %v1370_v2, %v1258_v63  ;;  %v1373_v10 = vadd.f32 %v1372_v6, %v1371_v3 }
 0x12d   :  { %v981_v11 = vmax.f32 %v1872_v7, %v1896_v8  ;;  %v1900_v12 = vadd.f32 %v1373_v10, %v1261_v5 }
 0x12e   :  { %v1262_v13 = vpop.f32.mrb[28].mxu0 }
 0x12f   :  { %v982_v14 = vmax.f32 %v1874_v9, %v1900_v12  ;;  %v1374_v15 = vpop.f32.mrb[28].mxu1  ;;  %v1263_v16 = vpop.f32.mrb[29].mxu0 }
 0x130   :  { %v1264_v17 = vadd.f32 %v1263_v16, %v1262_v13  ;;  %v1375_v18 = vpop.f32.mrb[29].mxu1  ;;  %v1265_v19 = vpop.f32.mrb[30].mxu0 }
 0x131   :  { %v1376_v20 = vadd.f32 %v1375_v18, %v1374_v15  ;;  %v1377_v22 = vpop.f32.mrb[30].mxu1  ;;  %v1266_v24 = vpop.f32.mrb[31].mxu0 }
 0x132   :  { %v1267_v25 = vadd.f32 %v1266_v24, %v1265_v19  ;;  %v1378_v26 = vpop.f32.mrb[31].mxu1 }
 0x133   :  { %v1904_v27 = vadd.f32 %v1376_v20, %v1264_v17  ;;  %v1379_v28 = vadd.f32 %v1378_v26, %v1377_v22 }
 0x135   :  { %v983_v29 = vmax.f32 %v1876_v21, %v1904_v27  ;;  %v1908_v30 = vadd.f32 %v1379_v28, %v1267_v25 }
 0x136   :  { %v1268_v31 = vpop.f32.mrb[32].mxu0 }
 0x137   :  { %v984_v32 = vmax.f32 %v1878_v23, %v1908_v30  ;;  %v1380_v33 = vpop.f32.mrb[32].mxu1  ;;  %v1269_v34 = vpop.f32.mrb[33].mxu0 }
 0x138   :  { %v1270_v36 = vadd.f32 %v1269_v34, %v1268_v31  ;;  %v1381_v39 = vpop.f32.mrb[33].mxu1  ;;  %v1271_v41 = vpop.f32.mrb[34].mxu0 }
 0x139   :  { %v1382_v42 = vadd.f32 %v1381_v39, %v1380_v33  ;;  %v1383_v44 = vpop.f32.mrb[34].mxu1  ;;  %v1272_v46 = vpop.f32.mrb[35].mxu0 }
 0x13a   :  { %v1273_v47 = vadd.f32 %v1272_v46, %v1271_v41  ;;  %v1384_v48 = vpop.f32.mrb[35].mxu1 }
 0x13b   :  { %v1912_v49 = vadd.f32 %v1382_v42, %v1270_v36  ;;  %v1385_v50 = vadd.f32 %v1384_v48, %v1383_v44 }
 0x13d   :  { %v1914_v51 = vadd.f32 %v1385_v50, %v1273_v47 }
 0x13e   :  { %v1274_v52 = vpop.f32.mrb[36].mxu0 }
 0x13f   :  { %v1386_v54 = vpop.f32.mrb[36].mxu1  ;;  %v1275_v58 = vpop.f32.mrb[37].mxu0 }
 0x140   :  { %v1276_v61 = vadd.f32 %v1275_v58, %v1274_v52  ;;  %v1387_v62 = vpop.f32.mrb[37].mxu1  ;;  %v1277_v63 = vpop.f32.mrb[38].mxu0 }
 0x141   :  { %v1388_v0 = vadd.f32 %v1387_v62, %v1386_v54  ;;  %v1389_v1 = vpop.f32.mrb[38].mxu1  ;;  %v1278_v2 = vpop.f32.mrb[39].mxu0 }
 0x142   :  { %v1279_v3 = vadd.f32 %v1278_v2, %v1277_v63  ;;  %v1390_v4 = vpop.f32.mrb[39].mxu1 }
 0x143   :  { %v1916_v5 = vadd.f32 %v1388_v0, %v1276_v61  ;;  %v1391_v6 = vadd.f32 %v1390_v4, %v1389_v1 }
 0x145   :  { %v1918_v10 = vadd.f32 %v1391_v6, %v1279_v3 }
 0x146   :  { %v1280_v13 = vpop.f32.mrb[40].mxu0 }
 0x147   :  { %v1392_v15 = vpop.f32.mrb[40].mxu1  ;;  %v1281_v16 = vpop.f32.mrb[41].mxu0 }
 0x148   :  { %v1282_v17 = vadd.f32 %v1281_v16, %v1280_v13  ;;  %v1393_v18 = vpop.f32.mrb[41].mxu1  ;;  %v1283_v19 = vpop.f32.mrb[42].mxu0 }
 0x149   :  { %v1394_v20 = vadd.f32 %v1393_v18, %v1392_v15  ;;  %v1395_v22 = vpop.f32.mrb[42].mxu1  ;;  %v1284_v24 = vpop.f32.mrb[43].mxu0 }
 0x14a   :  { %v1285_v25 = vadd.f32 %v1284_v24, %v1283_v19  ;;  %v1396_v26 = vpop.f32.mrb[43].mxu1 }
 0x14b   :  { %v1920_v28 = vadd.f32 %v1394_v20, %v1282_v17  ;;  %v1397_v31 = vadd.f32 %v1396_v26, %v1395_v22  ;;  %v1932_v22 = vld [vmem:[%s1987_s2] ss:$0 sm:$0xff] }
 0x14d   :  { %v1922_v33 = vadd.f32 %v1397_v31, %v1285_v25 }
 0x14e   :  { %v1286_v34 = vpop.f32.mrb[44].mxu0 }
 0x14f   :  { %v1398_v36 = vpop.f32.mrb[44].mxu1  ;;  %v1287_v39 = vpop.f32.mrb[45].mxu0 }
 0x150   :  { %v1288_v41 = vadd.f32 %v1287_v39, %v1286_v34  ;;  %v1399_v42 = vpop.f32.mrb[45].mxu1  ;;  %v1289_v44 = vpop.f32.mrb[46].mxu0 }
 0x151   :  { %v1400_v46 = vadd.f32 %v1399_v42, %v1398_v36  ;;  %v1401_v47 = vpop.f32.mrb[46].mxu1  ;;  %v1290_v48 = vpop.f32.mrb[47].mxu0 }
 0x152   :  { %v1291_v50 = vadd.f32 %v1290_v48, %v1289_v44  ;;  %v1402_v52 = vpop.f32.mrb[47].mxu1 }
 0x153   :  { %v1924_v54 = vadd.f32 %v1400_v46, %v1288_v41  ;;  %v1403_v58 = vadd.f32 %v1402_v52, %v1401_v47 }
 0x155   :  { %v1926_v61 = vadd.f32 %v1403_v58, %v1291_v50 }
 0x156   :  { %v1292_v62 = vpop.f32.mrb[48].mxu0 }
 0x157   :  { %v1404_v63 = vpop.f32.mrb[48].mxu1  ;;  %v1293_v0 = vpop.f32.mrb[49].mxu0 }
 0x158   :  { %v1294_v1 = vadd.f32 %v1293_v0, %v1292_v62  ;;  %v1405_v2 = vpop.f32.mrb[49].mxu1  ;;  %v1295_v3 = vpop.f32.mrb[50].mxu0 }
 0x159   :  { %v1406_v4 = vadd.f32 %v1405_v2, %v1404_v63  ;;  %v1407_v6 = vpop.f32.mrb[50].mxu1  ;;  %v1296_v13 = vpop.f32.mrb[51].mxu0 }
 0x15a   :  { %v1297_v15 = vadd.f32 %v1296_v13, %v1295_v3  ;;  %v1408_v16 = vpop.f32.mrb[51].mxu1 }
 0x15b   :  { %v947_v17 = vadd.f32 %v1406_v4, %v1294_v1  ;;  %v1409_v18 = vadd.f32 %v1408_v16, %v1407_v6 }
 0x15d   :  { %v985_v19 = vmax.f32 %v1912_v49, %v947_v17  ;;  %v950_v20 = vadd.f32 %v1409_v18, %v1297_v15 }
 0x15e   :  { %v1298_v24 = vpop.f32.mrb[52].mxu0 }
 0x15f   :  { %v993_v25 = vmax.f32 %v977_v37, %v985_v19  ;;  %v986_v26 = vmax.f32 %v1914_v51, %v950_v20  ;;  %v1410_v31 = vpop.f32.mrb[52].mxu1  ;;  %v1299_v34 = vpop.f32.mrb[53].mxu0 }
 0x160   :  { %v1300_v36 = vadd.f32 %v1299_v34, %v1298_v24  ;;  %v1411_v39 = vpop.f32.mrb[53].mxu1  ;;  %v1301_v41 = vpop.f32.mrb[54].mxu0 }
 0x161   :  { %v1008_v49 = vadd.f32 %v1932_v22, %v993_v25  ;;  %v994_v42 = vmax.f32 %v978_v40, %v986_v26  ;;  %v1412_v44 = vadd.f32 %v1411_v39, %v1410_v31  ;;  %v1413_v46 = vpop.f32.mrb[54].mxu1  ;;  %v1302_v47 = vpop.f32.mrb[55].mxu0 }
 0x162   :  { %v1303_v48 = vadd.f32 %v1302_v47, %v1301_v41  ;;  %v1414_v50 = vpop.f32.mrb[55].mxu1 }
 0x163   :  { %v1009_v43 = vadd.f32 %v1932_v22, %v994_v42  ;;  %v955_v35 = vadd.f32 %v1412_v44, %v1300_v36  ;;  %v1415_v37 = vadd.f32 %v1414_v50, %v1413_v46  ;;  %v1016_v51 = vmax.f32 %v1008_v49, 0.0 }
 0x165   :  { %v1017_v52 = vmax.f32 %v1009_v43, 0.0  ;;  %v987_v58 = vmax.f32 %v1916_v5, %v955_v35  ;;  %v958_v62 = vadd.f32 %v1415_v37, %v1303_v48 }
 0x166   :  { %v1304_v63 = vpop.f32.mrb[56].mxu0 }
 0x167   :  { %v1184_v0 = vpack.c.bf16 %v1017_v52, %v1016_v51  ;;  %v995_v45 = vmax.f32 %v979_v55, %v987_v58  ;;  %v988_v38 = vmax.f32 %v1918_v10, %v958_v62  ;;  %v1416_v40 = vpop.f32.mrb[56].mxu1  ;;  %v1305_v1 = vpop.f32.mrb[57].mxu0 }
 0x168   :  { %v1306_v2 = vadd.f32 %v1305_v1, %v1304_v63  ;;  %v1417_v3 = vpop.f32.mrb[57].mxu1  ;;  %v1307_v4 = vpop.f32.mrb[58].mxu0 }
 0x169   :  { %1185 = vst [vmem:[%s1988_s3] sm:$0xff] %v1184_v0   ;;  %v1010_v5 = vadd.f32 %v1932_v22, %v995_v45  ;;  %v996_v6 = vmax.f32 %v980_v60, %v988_v38  ;;  %v1418_v13 = vadd.f32 %v1417_v3, %v1416_v40  ;;  %v1419_v57 = vpop.f32.mrb[58].mxu1  ;;  %v1308_v53 = vpop.f32.mrb[59].mxu0 }
 0x16a   :  { %v1309_v55 = vadd.f32 %v1308_v53, %v1307_v4  ;;  %v1420_v10 = vpop.f32.mrb[59].mxu1 }
 0x16b   :  { %v1011_v15 = vadd.f32 %v1932_v22, %v996_v6  ;;  %v963_v16 = vadd.f32 %v1418_v13, %v1306_v2  ;;  %v1421_v17 = vadd.f32 %v1420_v10, %v1419_v57  ;;  %v1018_v18 = vmax.f32 %v1010_v5, 0.0 }
 0x16d   :  { %v1019_v19 = vmax.f32 %v1011_v15, 0.0  ;;  %v989_v20 = vmax.f32 %v1920_v28, %v963_v16  ;;  %v966_v24 = vadd.f32 %v1421_v17, %v1309_v55 }
 0x16e   :  { %v1310_v25 = vpop.f32.mrb[60].mxu0 }
 0x16f   :  { %v1189_v26 = vpack.c.bf16 %v1019_v19, %v1018_v18  ;;  %v997_v59 = vmax.f32 %v981_v11, %v989_v20  ;;  %v990_v56 = vmax.f32 %v1922_v33, %v966_v24  ;;  %v1422_v60 = vpop.f32.mrb[60].mxu1  ;;  %v1311_v31 = vpop.f32.mrb[61].mxu0 }
 0x170   :  { %v1312_v34 = vadd.f32 %v1311_v31, %v1310_v25  ;;  %v1423_v36 = vpop.f32.mrb[61].mxu1  ;;  %v1313_v39 = vpop.f32.mrb[62].mxu0 }
 0x171   :  { %1201 = vst [vmem:[%s1988_s3 + $0x8] sm:$0xff] %v1189_v26   ;;  %v1012_v28 = vadd.f32 %v1932_v22, %v997_v59  ;;  %v998_v41 = vmax.f32 %v982_v14, %v990_v56  ;;  %v1424_v49 = vadd.f32 %v1423_v36, %v1422_v60  ;;  %v1425_v7 = vpop.f32.mrb[62].mxu1  ;;  %v1314_v8 = vpop.f32.mrb[63].mxu0 }
 0x172   :  { %v1315_v11 = vadd.f32 %v1314_v8, %v1313_v39  ;;  %v1426_v33 = vpop.f32.mrb[63].mxu1 }
 0x173   :  { %v1013_v42 = vadd.f32 %v1932_v22, %v998_v41  ;;  %v971_v44 = vadd.f32 %v1424_v49, %v1312_v34  ;;  %v1427_v46 = vadd.f32 %v1426_v33, %v1425_v7  ;;  %v1020_v47 = vmax.f32 %v1012_v28, 0.0 }
 0x175   :  { %v1021_v48 = vmax.f32 %v1013_v42, 0.0  ;;  %v991_v50 = vmax.f32 %v1924_v54, %v971_v44  ;;  %v974_v43 = vadd.f32 %v1427_v46, %v1315_v11 }
 0x177   :  { %v1194_v35 = vpack.c.bf16 %v1021_v48, %v1020_v47  ;;  %v999_v9 = vmax.f32 %v983_v29, %v991_v50  ;;  %v992_v12 = vmax.f32 %v1926_v61, %v974_v43 }
 0x179   :  { %1202 = vst [vmem:[%s1988_s3 + $0x10] sm:$0xff] %v1194_v35   ;;  %v1014_v14 = vadd.f32 %v1932_v22, %v999_v9  ;;  %v1000_v37 = vmax.f32 %v984_v32, %v992_v12 }
 0x17b   :  { %v1015_v54 = vadd.f32 %v1932_v22, %v1000_v37  ;;  %v1022_v51 = vmax.f32 %v1014_v14, 0.0 }
 0x17d   :  { %v1023_v52 = vmax.f32 %v1015_v54, 0.0 }
 0x17f   :  { %v1199_v58 = vpack.c.bf16 %v1023_v52, %v1022_v51 }
 0x181   :  { %1203 = vst [vmem:[%s1988_s3 + $0x18] sm:$0xff] %v1199_v58  }

// kernel: lenet5_forward.5
= control target key start
LH: loop header
LB: loop body
LE: loop exit
PB: predicated region body
PF: predicated region fallthrough
CT: control target
= control target key end

     0   :  { %s4585_s1 = inlined_call_operand.vmem [shape: bf16[1280,384], index: 1, kind: input, shape index: {}]   ;;  %s4586_s0 = inlined_call_operand.vmem [shape: bf16[8,1280], index: 0, kind: input, shape index: {}]   ;;  %s4587_s3 = inlined_call_operand.vmem [shape: bf16[384,256], index: 3, kind: input, shape index: {}]   ;;  %s4588_s2 = inlined_call_operand.vmem [shape: f32[1,384], index: 2, kind: input, shape index: {}]   ;;  %s4589_s5 = inlined_call_operand.vmem [shape: bf16[256,128], index: 5, kind: input, shape index: {}]   ;;  %s4590_s4 = inlined_call_operand.vmem [shape: f32[1,256], index: 4, kind: input, shape index: {}]   ;;  %s4591_s6 = inlined_call_operand.vmem [shape: f32[1,128], index: 6, kind: input, shape index: {}]   ;;  %s4592_s7 = inlined_call_operand.vmem [shape: f32[8,128], index: 7, kind: output, shape index: {}]  }
   0x1   :  { %v3133_v0 = vld [vmem:[%s4585_s1 + $0x4] ss:$12 sps:$4 sm:$0xff]   ;;  %v3135_v1 = vld [vmem:[%s4585_s1] ss:$12 sps:$4 sm:$0xff]   ;;  %v3136_v2 = vld [vmem:[%s4585_s1 + $0x1c] ss:$12 sps:$4 sm:$0xff]  }
   0x2   :  { %1684 = vmatprep.subr.bf16.mxu0 %v3133_v0  ;;  %v3138_v3 = vld [vmem:[%s4585_s1 + $0x18] ss:$12 sps:$4 sm:$0xff]   ;;  %v3139_v4 = vld [vmem:[%s4585_s1 + $0x34] ss:$12 sps:$4 sm:$0xff]   ;;  %v3141_v5 = vld [vmem:[%s4585_s1 + $0x30] ss:$12 sps:$4 sm:$0xff]  }
   0x3   :  { %1685 = vmatpush1.bf16.msra.mxu0 %v3135_v1  ;;  %v3142_v6 = vld [vmem:[%s4585_s1 + $0x4c] ss:$12 sps:$4 sm:$0xff]   ;;  %v3144_v7 = vld [vmem:[%s4585_s1 + $0x48] ss:$12 sps:$4 sm:$0xff]   ;;  %v3145_v8 = vld [vmem:[%s4585_s1 + $0x64] ss:$12 sps:$4 sm:$0xff]  }
   0x4   :  { %1686 = vmatprep.subr.bf16.mxu0 %v3136_v2  ;;  %v3147_v9 = vld [vmem:[%s4585_s1 + $0x60] ss:$12 sps:$4 sm:$0xff]   ;;  %v3148_v10 = vld [vmem:[%s4585_s1 + $0x7c] ss:$12 sps:$4 sm:$0xff]   ;;  %v3150_v11 = vld [vmem:[%s4585_s1 + $0x78] ss:$12 sps:$4 sm:$0xff]  }
   0x5   :  { %v3151_v12 = vld [vmem:[%s4585_s1 + $0x94] ss:$12 sps:$4 sm:$0xff]   ;;  %v3153_v15 = vld [vmem:[%s4585_s1 + $0x90] ss:$12 sps:$4 sm:$0xff]   ;;  %v3154_v16 = vld [vmem:[%s4585_s1 + $0xac] ss:$12 sps:$4 sm:$0xff]  }
   0x6   :  { %v3634_v13 = vld [vmem:[%s4586_s0] sm:$0xff]  ;;  %v3189_v17 = vld [vmem:[%s4585_s1 + $0xc8] ss:$12 sps:$4 sm:$0xff]   ;;  %v3204_v29 = vld [vmem:[%s4585_s1 + $0x110] ss:$12 sps:$4 sm:$0xff]  }
   0x7   :  { %1687 = vmatpush1.bf16.msra.mxu0 %v3138_v3  ;;  %v2662_v14 = vcombine.high %v3634_v13, %v3634_v13  ;;  %v3190_v18 = vld [vmem:[%s4585_s1 + $0x8] ss:$12 sps:$4 sm:$0xff]   ;;  %v3157_v20 = vld [vmem:[%s4585_s1 + $0xc4] ss:$12 sps:$4 sm:$0xff]   ;;  %2976 = vmatprep.subr.bf16.mxu1 %v3189_v17  ;;  %v3194_v21 = vld [vmem:[%s4585_s1 + $0xe0] ss:$12 sps:$4 sm:$0xff]   ;;  %v2661_v51 = vcombine.low %v3634_v13, %v3634_v13 }
   0x8   :  { %1688 = vmatprep.subr.bf16.mxu0 %v3139_v4  ;;  %v3156_v19 = vld [vmem:[%s4585_s1 + $0xa8] ss:$12 sps:$4 sm:$0xff]   ;;  %2977 = vmatpush3.bf16.msra.mxu1 %v3190_v18  ;;  %v3195_v22 = vld [vmem:[%s4585_s1 + $0x20] ss:$12 sps:$4 sm:$0xff]   ;;  %v3199_v25 = vld [vmem:[%s4585_s1 + $0xf8] ss:$12 sps:$4 sm:$0xff]  }
   0x9   :  { %1716 = vmatprep.mubr.bf16.mxu0 %v2662_v14  ;;  %1921 = vmatprep.mubr.bf16.mxu1 %v2662_v14  ;;  %v3159_v23 = vld [vmem:[%s4585_s1 + $0xc0] ss:$12 sps:$4 sm:$0xff]   ;;  %v3160_v24 = vld [vmem:[%s4585_s1 + $0xdc] ss:$12 sps:$4 sm:$0xff]   ;;  %v3200_v26 = vld [vmem:[%s4585_s1 + $0x38] ss:$12 sps:$4 sm:$0xff]  }
   0xa   :  { %2978 = vmatprep.subr.bf16.mxu1 %v3194_v21  ;;  %v3162_v27 = vld [vmem:[%s4585_s1 + $0xd8] ss:$12 sps:$4 sm:$0xff]   ;;  %v3163_v28 = vld [vmem:[%s4585_s1 + $0xf4] ss:$12 sps:$4 sm:$0xff]   ;;  %v3205_v30 = vld [vmem:[%s4585_s1 + $0x50] ss:$12 sps:$4 sm:$0xff]  }
   0xb   :  { %1689 = vmatpush1.bf16.msra.mxu0 %v3141_v5  ;;  %v3209_v31 = vld [vmem:[%s4585_s1 + $0x128] ss:$12 sps:$4 sm:$0xff]   ;;  %v3165_v32 = vld [vmem:[%s4585_s1 + $0xf0] ss:$12 sps:$4 sm:$0xff]   ;;  %v3166_v33 = vld [vmem:[%s4585_s1 + $0x10c] ss:$12 sps:$4 sm:$0xff]  }
   0xc   :  { %1690 = vmatprep.subr.bf16.mxu0 %v3142_v6  ;;  %2979 = vmatpush3.bf16.msra.mxu1 %v3195_v22  ;;  %v3210_v34 = vld [vmem:[%s4585_s1 + $0x68] ss:$12 sps:$4 sm:$0xff]   ;;  %v3214_v35 = vld [vmem:[%s4585_s1 + $0x140] ss:$12 sps:$4 sm:$0xff]   ;;  %v3169_v37 = vld [vmem:[%s4585_s1 + $0x124] ss:$12 sps:$4 sm:$0xff]  }
   0xd   :  { %2980 = vmatprep.subr.bf16.mxu1 %v3199_v25  ;;  %v3168_v36 = vld [vmem:[%s4585_s1 + $0x108] ss:$12 sps:$4 sm:$0xff]   ;;  %v3215_v38 = vld [vmem:[%s4585_s1 + $0x80] ss:$12 sps:$4 sm:$0xff]   ;;  %v3219_v39 = vld [vmem:[%s4585_s1 + $0x158] ss:$12 sps:$4 sm:$0xff]  }
   0xe   :  { %v3171_v40 = vld [vmem:[%s4585_s1 + $0x120] ss:$12 sps:$4 sm:$0xff]   ;;  %v3172_v41 = vld [vmem:[%s4585_s1 + $0x13c] ss:$12 sps:$4 sm:$0xff]   ;;  %v3220_v42 = vld [vmem:[%s4585_s1 + $0x98] ss:$12 sps:$4 sm:$0xff]  }
   0xf   :  { %1691 = vmatpush1.bf16.msra.mxu0 %v3144_v7  ;;  %v3224_v43 = vld [vmem:[%s4585_s1 + $0x170] ss:$12 sps:$4 sm:$0xff]   ;;  %v3174_v44 = vld [vmem:[%s4585_s1 + $0x138] ss:$12 sps:$4 sm:$0xff]   ;;  %v3175_v45 = vld [vmem:[%s4585_s1 + $0x154] ss:$12 sps:$4 sm:$0xff]  }
  0x10   :  { %1692 = vmatprep.subr.bf16.mxu0 %v3145_v8  ;;  %2981 = vmatpush3.bf16.msra.mxu1 %v3200_v26  ;;  %v3225_v46 = vld [vmem:[%s4585_s1 + $0xb0] ss:$12 sps:$4 sm:$0xff]   ;;  %v3229_v47 = vld [vmem:[%s4585_s1 + $0x248] ss:$12 sps:$4 sm:$0xff]   ;;  %v3178_v49 = vld [vmem:[%s4585_s1 + $0x16c] ss:$12 sps:$4 sm:$0xff]  }
  0x11   :  { %2982 = vmatprep.subr.bf16.mxu1 %v3204_v29  ;;  %v3177_v48 = vld [vmem:[%s4585_s1 + $0x150] ss:$12 sps:$4 sm:$0xff]   ;;  %v3230_v50 = vld [vmem:[%s4585_s1 + $0x188] ss:$12 sps:$4 sm:$0xff]   ;;  %v3234_v52 = vld [vmem:[%s4585_s1 + $0x260] ss:$12 sps:$4 sm:$0xff]  }
  0x12   :  { %v3180_v53 = vld [vmem:[%s4585_s1 + $0x168] ss:$12 sps:$4 sm:$0xff]   ;;  %v3185_v54 = vld [vmem:[%s4585_s1 + $0x184] ss:$12 sps:$4 sm:$0xff]   ;;  %v3235_v55 = vld [vmem:[%s4585_s1 + $0x1a0] ss:$12 sps:$4 sm:$0xff]  }
  0x13   :  { %1693 = vmatpush1.bf16.msra.mxu0 %v3147_v9  ;;  %v3239_v56 = vld [vmem:[%s4585_s1 + $0x278] ss:$12 sps:$4 sm:$0xff]   ;;  %v3183_v57 = vld [vmem:[%s4585_s1 + $0x180] ss:$12 sps:$4 sm:$0xff]   ;;  %v3188_v58 = vld [vmem:[%s4585_s1 + $0x19c] ss:$12 sps:$4 sm:$0xff]  }
  0x14   :  { %1694 = vmatprep.subr.bf16.mxu0 %v3148_v10  ;;  %2983 = vmatpush3.bf16.msra.mxu1 %v3205_v30  ;;  %v3240_v59 = vld [vmem:[%s4585_s1 + $0x1b8] ss:$12 sps:$4 sm:$0xff]   ;;  %v3244_v60 = vld [vmem:[%s4585_s1 + $0x290] ss:$12 sps:$4 sm:$0xff]   ;;  %v3193_v62 = vld [vmem:[%s4585_s1 + $0x1b4] ss:$12 sps:$4 sm:$0xff]  }
  0x15   :  { %2984 = vmatprep.subr.bf16.mxu1 %v3209_v31  ;;  %v3186_v61 = vld [vmem:[%s4585_s1 + $0x198] ss:$12 sps:$4 sm:$0xff]   ;;  %v3245_v63 = vld [vmem:[%s4585_s1 + $0x1d0] ss:$12 sps:$4 sm:$0xff]   ;;  %v3249_v0 = vld [vmem:[%s4585_s1 + $0x2a8] ss:$12 sps:$4 sm:$0xff]  }
  0x16   :  { %v3191_v1 = vld [vmem:[%s4585_s1 + $0x1b0] ss:$12 sps:$4 sm:$0xff]   ;;  %v3198_v2 = vld [vmem:[%s4585_s1 + $0x1cc] ss:$12 sps:$4 sm:$0xff]   ;;  %v3250_v3 = vld [vmem:[%s4585_s1 + $0x1e8] ss:$12 sps:$4 sm:$0xff]  }
  0x17   :  { %1695 = vmatpush1.bf16.msra.mxu0 %v3150_v11  ;;  %v3254_v4 = vld [vmem:[%s4585_s1 + $0x2c0] ss:$12 sps:$4 sm:$0xff]   ;;  %v3196_v6 = vld [vmem:[%s4585_s1 + $0x1c8] ss:$12 sps:$4 sm:$0xff]   ;;  %v3203_v8 = vld [vmem:[%s4585_s1 + $0x1e4] ss:$12 sps:$4 sm:$0xff]  }
  0x18   :  { %1696 = vmatprep.subr.bf16.mxu0 %v3151_v12  ;;  %2985 = vmatpush3.bf16.msra.mxu1 %v3210_v34  ;;  %v28_v5 = vld [vmem:[%s4586_s0 + $0x8] sm:$0xff]  ;;  %v3259_v10 = vld [vmem:[%s4585_s1 + $0x2d8] ss:$12 sps:$4 sm:$0xff]   ;;  %v3266_v14 = vld [vmem:[%s4585_s1 + $0x2f0] ss:$12 sps:$4 sm:$0xff]  }
  0x19   :  { %2986 = vmatprep.subr.bf16.mxu1 %v3214_v35  ;;  %v2664_v7 = vcombine.high %v28_v5, %v28_v5  ;;  %v3255_v9 = vld [vmem:[%s4585_s1 + $0x200] ss:$12 sps:$4 sm:$0xff]   ;;  %v3208_v12 = vld [vmem:[%s4585_s1 + $0x1fc] ss:$12 sps:$4 sm:$0xff]   ;;  %v3260_v13 = vld [vmem:[%s4585_s1 + $0x218] ss:$12 sps:$4 sm:$0xff]   ;;  %v3847_v22 = vcombine.low %v28_v5, %v28_v5 }
  0x1a   :  { %v3201_v11 = vld [vmem:[%s4585_s1 + $0x1e0] ss:$12 sps:$4 sm:$0xff]   ;;  %v3267_v17 = vld [vmem:[%s4585_s1 + $0x230] ss:$12 sps:$4 sm:$0xff]   ;;  %v3271_v18 = vld [vmem:[%s4585_s1 + $0x3c8] ss:$12 sps:$4 sm:$0xff]  }
  0x1b   :  { %1697 = vmatpush1.bf16.msra.mxu0 %v3153_v15  ;;  %v3206_v15 = vld [vmem:[%s4585_s1 + $0x1f8] ss:$12 sps:$4 sm:$0xff]   ;;  %v3272_v21 = vld [vmem:[%s4585_s1 + $0x308] ss:$12 sps:$4 sm:$0xff]   ;;  %v3277_v26 = vld [vmem:[%s4585_s1 + $0x320] ss:$12 sps:$4 sm:$0xff]  }
  0x1c   :  { %1698 = vmatprep.subr.bf16.mxu0 %v3154_v16  ;;  %2987 = vmatpush3.bf16.msra.mxu1 %v3215_v38  ;;  %v3213_v16 = vld [vmem:[%s4585_s1 + $0x214] ss:$12 sps:$4 sm:$0xff]   ;;  %v3223_v25 = vld [vmem:[%s4585_s1 + $0x244] ss:$12 sps:$4 sm:$0xff]   ;;  %v3228_v29 = vld [vmem:[%s4585_s1 + $0x25c] ss:$12 sps:$4 sm:$0xff]  }
  0x1d   :  { %2988 = vmatprep.subr.bf16.mxu1 %v3219_v39  ;;  %v3282_v30 = vld [vmem:[%s4585_s1 + $0x338] ss:$12 sps:$4 sm:$0xff]   ;;  %v3286_v31 = vld [vmem:[%s4585_s1 + $0x410] ss:$12 sps:$4 sm:$0xff]   ;;  %v3291_v35 = vld [vmem:[%s4585_s1 + $0x428] ss:$12 sps:$4 sm:$0xff]  }
  0x1e   :  { %v3287_v34 = vld [vmem:[%s4585_s1 + $0x350] ss:$12 sps:$4 sm:$0xff]   ;;  %v3292_v38 = vld [vmem:[%s4585_s1 + $0x368] ss:$12 sps:$4 sm:$0xff]  }
  0x1f   :  { %1699 = vmatpush1.bf16.msra.mxu0 %v3156_v19  ;;  %v3211_v19 = vld [vmem:[%s4585_s1 + $0x210] ss:$12 sps:$4 sm:$0xff]  }
  0x20   :  { %1700 = vmatprep.subr.bf16.mxu0 %v3157_v20  ;;  %2989 = vmatpush3.bf16.msra.mxu1 %v3220_v42  ;;  %v3218_v20 = vld [vmem:[%s4585_s1 + $0x22c] ss:$12 sps:$4 sm:$0xff]   ;;  %v29_v39 = vld [vmem:[%s4586_s0 + $0x10] sm:$0xff] }
  0x21   :  { %2990 = vmatprep.subr.bf16.mxu1 %v3224_v43  ;;  %v3236_v42 = vld [vmem:[%s4585_s1 + $0x288] ss:$12 sps:$4 sm:$0xff]   ;;  %v3243_v43 = vld [vmem:[%s4585_s1 + $0x2a4] ss:$12 sps:$4 sm:$0xff]   ;;  %v30_v5 = vld [vmem:[%s4586_s0 + $0x18] sm:$0xff] }
  0x23   :  { %1701 = vmatpush1.bf16.msra.mxu0 %v3159_v23  ;;  %v3276_v23 = vld [vmem:[%s4585_s1 + $0x3e0] ss:$12 sps:$4 sm:$0xff]  }
  0x24   :  { %1702 = vmatprep.subr.bf16.mxu0 %v3160_v24  ;;  %2991 = vmatpush3.bf16.msra.mxu1 %v3225_v46  ;;  %v3216_v24 = vld [vmem:[%s4585_s1 + $0x228] ss:$12 sps:$4 sm:$0xff]   ;;  %v3241_v46 = vld [vmem:[%s4585_s1 + $0x2a0] ss:$12 sps:$4 sm:$0xff]  }
  0x25   :  { %2998 = vmatprep.subr.bf16.mxu1 %v3229_v47  ;;  %v3248_v47 = vld [vmem:[%s4585_s1 + $0x2bc] ss:$12 sps:$4 sm:$0xff]  }
  0x27   :  { %1703 = vmatpush1.bf16.msra.mxu0 %v3162_v27  ;;  %1922 = vmatmul.mubr.bf16.vlgmr.msra.gmra.mrb[0].mxu1 %v2661_v51  ;;  %v3281_v27 = vld [vmem:[%s4585_s1 + $0x3f8] ss:$12 sps:$4 sm:$0xff]  }
  0x28   :  { %1704 = vmatprep.subr.bf16.mxu0 %v3163_v28  ;;  %2999 = vmatpush3.bf16.msra.mxu1 %v3230_v50  ;;  %v3221_v28 = vld [vmem:[%s4585_s1 + $0x240] ss:$12 sps:$4 sm:$0xff]   ;;  %v3246_v50 = vld [vmem:[%s4585_s1 + $0x2b8] ss:$12 sps:$4 sm:$0xff]  }
  0x29   :  { %3000 = vmatprep.subr.bf16.mxu1 %v3234_v52  ;;  %1961 = vmatprep.mubr.bf16.mxu1 %v2664_v7  ;;  %v3307_v52 = vld [vmem:[%s4585_s1 + $0x3b0] ss:$12 sps:$4 sm:$0xff]  }
  0x2b   :  { %1705 = vmatpush1.bf16.msra.mxu0 %v3165_v32  ;;  %v3226_v32 = vld [vmem:[%s4585_s1 + $0x258] ss:$12 sps:$4 sm:$0xff]  }
  0x2c   :  { %1706 = vmatprep.subr.bf16.mxu0 %v3166_v33  ;;  %3001 = vmatpush3.bf16.msra.mxu1 %v3235_v55  ;;  %v3233_v33 = vld [vmem:[%s4585_s1 + $0x274] ss:$12 sps:$4 sm:$0xff]   ;;  %v3258_v55 = vld [vmem:[%s4585_s1 + $0x2ec] ss:$12 sps:$4 sm:$0xff]  }
  0x2d   :  { %3002 = vmatprep.subr.bf16.mxu1 %v3239_v56  ;;  %v3946_v56 = vcombine.low %v29_v39, %v29_v39 }
  0x2f   :  { %1707 = vmatpush1.bf16.msra.mxu0 %v3168_v36  ;;  %v3231_v36 = vld [vmem:[%s4585_s1 + $0x270] ss:$12 sps:$4 sm:$0xff]  }
  0x30   :  { %1708 = vmatprep.subr.bf16.mxu0 %v3169_v37  ;;  %3003 = vmatpush3.bf16.msra.mxu1 %v3240_v59  ;;  %v3238_v37 = vld [vmem:[%s4585_s1 + $0x28c] ss:$12 sps:$4 sm:$0xff]   ;;  %v3256_v59 = vld [vmem:[%s4585_s1 + $0x2e8] ss:$12 sps:$4 sm:$0xff]  }
  0x31   :  { %3004 = vmatprep.subr.bf16.mxu1 %v3244_v60  ;;  %v3265_v60 = vld [vmem:[%s4585_s1 + $0x304] ss:$12 sps:$4 sm:$0xff]  }
  0x33   :  { %1709 = vmatpush1.bf16.msra.mxu0 %v3171_v40  ;;  %v3296_v40 = vld [vmem:[%s4585_s1 + $0x440] ss:$12 sps:$4 sm:$0xff]  }
  0x34   :  { %1710 = vmatprep.subr.bf16.mxu0 %v3172_v41  ;;  %3005 = vmatpush3.bf16.msra.mxu1 %v3245_v63  ;;  %v2666_v41 = vcombine.high %v29_v39, %v29_v39  ;;  %v3263_v63 = vld [vmem:[%s4585_s1 + $0x300] ss:$12 sps:$4 sm:$0xff]   ;;  %v3370_v39 = vld [vmem:[%s4585_s1 + $0x710] ss:$12 sps:$4 sm:$0xff]  }
  0x35   :  { %3006 = vmatprep.subr.bf16.mxu1 %v3249_v0  ;;  %v3270_v0 = vld [vmem:[%s4585_s1 + $0x31c] ss:$12 sps:$4 sm:$0xff]  }
  0x37   :  { %1711 = vmatpush1.bf16.msra.mxu0 %v3174_v44  ;;  %v3297_v44 = vld [vmem:[%s4585_s1 + $0x380] ss:$12 sps:$4 sm:$0xff]  }
  0x38   :  { %1712 = vmatprep.subr.bf16.mxu0 %v3175_v45  ;;  %3007 = vmatpush3.bf16.msra.mxu1 %v3250_v3  ;;  %v3301_v45 = vld [vmem:[%s4585_s1 + $0x458] ss:$12 sps:$4 sm:$0xff]  }
  0x39   :  { %3008 = vmatprep.subr.bf16.mxu1 %v3254_v4  ;;  %v3268_v3 = vld [vmem:[%s4585_s1 + $0x318] ss:$12 sps:$4 sm:$0xff]   ;;  %v3275_v4 = vld [vmem:[%s4585_s1 + $0x334] ss:$12 sps:$4 sm:$0xff]  }
  0x3b   :  { %1713 = vmatpush1.bf16.msra.mxu0 %v3177_v48  ;;  %v3302_v48 = vld [vmem:[%s4585_s1 + $0x398] ss:$12 sps:$4 sm:$0xff]  }
  0x3c   :  { %1714 = vmatprep.subr.bf16.mxu0 %v3178_v49  ;;  %3009 = vmatpush3.bf16.msra.mxu1 %v3255_v9  ;;  %v3306_v49 = vld [vmem:[%s4585_s1 + $0x470] ss:$12 sps:$4 sm:$0xff]  }
  0x3d   :  { %3010 = vmatprep.subr.bf16.mxu1 %v3259_v10  ;;  %v3273_v9 = vld [vmem:[%s4585_s1 + $0x330] ss:$12 sps:$4 sm:$0xff]   ;;  %v3280_v10 = vld [vmem:[%s4585_s1 + $0x34c] ss:$12 sps:$4 sm:$0xff]  }
  0x3f   :  { %1715 = vmatpush1.bf16.msra.mxu0 %v3180_v53  ;;  %v3313_v53 = vld [vmem:[%s4585_s1 + $0x548] ss:$12 sps:$4 sm:$0xff]  }
  0x40   :  { %1725 = vmatprep.subr.bf16.mxu0 %v3185_v54  ;;  %3011 = vmatpush3.bf16.msra.mxu1 %v3260_v13  ;;  %v3251_v54 = vld [vmem:[%s4585_s1 + $0x2d0] ss:$12 sps:$4 sm:$0xff]   ;;  %v3278_v13 = vld [vmem:[%s4585_s1 + $0x348] ss:$12 sps:$4 sm:$0xff]  }
  0x41   :  { %3012 = vmatprep.subr.bf16.mxu1 %v3266_v14  ;;  %v3285_v14 = vld [vmem:[%s4585_s1 + $0x364] ss:$12 sps:$4 sm:$0xff]  }
  0x42   :  { %1717 = vmatmul.mubr.bf16.vlgmr.msra.gmra.mrb[0].mxu0 %v2661_v51  ;;  %v3253_v51 = vld [vmem:[%s4585_s1 + $0x2d4] ss:$12 sps:$4 sm:$0xff]  }
  0x43   :  { %1726 = vmatpush1.bf16.msra.mxu0 %v3183_v57  ;;  %1757 = vmatprep.mubr.bf16.mxu0 %v2664_v7  ;;  %v3314_v57 = vld [vmem:[%s4585_s1 + $0x488] ss:$12 sps:$4 sm:$0xff]   ;;  %v3992_v7 = vcombine.high %v30_v5, %v30_v5 }
  0x44   :  { %1727 = vmatprep.subr.bf16.mxu0 %v3188_v58  ;;  %3013 = vmatpush3.bf16.msra.mxu1 %v3267_v17  ;;  %v3318_v58 = vld [vmem:[%s4585_s1 + $0x560] ss:$12 sps:$4 sm:$0xff]  }
  0x45   :  { %3020 = vmatprep.subr.bf16.mxu1 %v3271_v18  ;;  %v3283_v17 = vld [vmem:[%s4585_s1 + $0x360] ss:$12 sps:$4 sm:$0xff]   ;;  %v3290_v18 = vld [vmem:[%s4585_s1 + $0x37c] ss:$12 sps:$4 sm:$0xff]  }
  0x47   :  { %1728 = vmatpush1.bf16.msra.mxu0 %v3186_v61  ;;  %1962 = vmatmul.mubr.bf16.vlgmr.msra.gmra.mrb[4].mxu1 %v3847_v22  ;;  %v3319_v61 = vld [vmem:[%s4585_s1 + $0x4a0] ss:$12 sps:$4 sm:$0xff]  }
  0x48   :  { %1729 = vmatprep.subr.bf16.mxu0 %v3193_v62  ;;  %3021 = vmatpush3.bf16.msra.mxu1 %v3272_v21  ;;  %v3323_v62 = vld [vmem:[%s4585_s1 + $0x578] ss:$12 sps:$4 sm:$0xff]  }
  0x49   :  { %3022 = vmatprep.subr.bf16.mxu1 %v3276_v23  ;;  %2001 = vmatprep.mubr.bf16.mxu1 %v2666_v41  ;;  %v3288_v21 = vld [vmem:[%s4585_s1 + $0x378] ss:$12 sps:$4 sm:$0xff]   ;;  %v3349_v23 = vld [vmem:[%s4585_s1 + $0x530] ss:$12 sps:$4 sm:$0xff]  }
  0x4b   :  { %1730 = vmatpush1.bf16.msra.mxu0 %v3191_v1  ;;  %v3324_v1 = vld [vmem:[%s4585_s1 + $0x4b8] ss:$12 sps:$4 sm:$0xff]  }
  0x4c   :  { %1731 = vmatprep.subr.bf16.mxu0 %v3198_v2  ;;  %3023 = vmatpush3.bf16.msra.mxu1 %v3277_v26  ;;  %v3328_v2 = vld [vmem:[%s4585_s1 + $0x590] ss:$12 sps:$4 sm:$0xff]   ;;  %v3300_v26 = vld [vmem:[%s4585_s1 + $0x3ac] ss:$12 sps:$4 sm:$0xff]  }
  0x4d   :  { %3024 = vmatprep.subr.bf16.mxu1 %v3281_v27  ;;  %v4052_v27 = vcombine.low %v30_v5, %v30_v5  ;;  %v3357_v5 = vld [vmem:[%s4585_s1 + $0x4b0] ss:$12 sps:$4 sm:$0xff]  }
  0x4f   :  { %1732 = vmatpush1.bf16.msra.mxu0 %v3196_v6  ;;  %v3329_v6 = vld [vmem:[%s4585_s1 + $0x4d0] ss:$12 sps:$4 sm:$0xff]  }
  0x50   :  { %1733 = vmatprep.subr.bf16.mxu0 %v3203_v8  ;;  %3025 = vmatpush3.bf16.msra.mxu1 %v3282_v30  ;;  %v3333_v8 = vld [vmem:[%s4585_s1 + $0x5a8] ss:$12 sps:$4 sm:$0xff]  }
  0x51   :  { %3026 = vmatprep.subr.bf16.mxu1 %v3286_v31  ;;  %v3298_v30 = vld [vmem:[%s4585_s1 + $0x3a8] ss:$12 sps:$4 sm:$0xff]   ;;  %v3305_v31 = vld [vmem:[%s4585_s1 + $0x3c4] ss:$12 sps:$4 sm:$0xff]  }
  0x53   :  { %1734 = vmatpush1.bf16.msra.mxu0 %v3201_v11  ;;  %v3334_v11 = vld [vmem:[%s4585_s1 + $0x4e8] ss:$12 sps:$4 sm:$0xff]  }
  0x54   :  { %1735 = vmatprep.subr.bf16.mxu0 %v3208_v12  ;;  %3027 = vmatpush3.bf16.msra.mxu1 %v3287_v34  ;;  %v3338_v12 = vld [vmem:[%s4585_s1 + $0x5c0] ss:$12 sps:$4 sm:$0xff]  }
  0x55   :  { %3028 = vmatprep.subr.bf16.mxu1 %v3291_v35  ;;  %v3303_v34 = vld [vmem:[%s4585_s1 + $0x3c0] ss:$12 sps:$4 sm:$0xff]  }
  0x56   :  { %v31_v35 = vld [vmem:[%s4586_s0 + $0x20] sm:$0xff] }
  0x57   :  { %1736 = vmatpush1.bf16.msra.mxu0 %v3206_v15  ;;  %v3339_v15 = vld [vmem:[%s4585_s1 + $0x500] ss:$12 sps:$4 sm:$0xff]  }
  0x58   :  { %1737 = vmatprep.subr.bf16.mxu0 %v3213_v16  ;;  %3029 = vmatpush3.bf16.msra.mxu1 %v3292_v38  ;;  %v3343_v16 = vld [vmem:[%s4585_s1 + $0x5d8] ss:$12 sps:$4 sm:$0xff]  }
  0x59   :  { %3030 = vmatprep.subr.bf16.mxu1 %v3296_v40  ;;  %v3366_v38 = vld [vmem:[%s4585_s1 + $0x638] ss:$12 sps:$4 sm:$0xff]  }
  0x5a   :  { %v3308_v40 = vld [vmem:[%s4585_s1 + $0x3d8] ss:$12 sps:$4 sm:$0xff]  }
  0x5b   :  { %1738 = vmatpush1.bf16.msra.mxu0 %v3211_v19  ;;  %v3344_v19 = vld [vmem:[%s4585_s1 + $0x518] ss:$12 sps:$4 sm:$0xff]  }
  0x5c   :  { %1739 = vmatprep.subr.bf16.mxu0 %v3218_v20  ;;  %3031 = vmatpush3.bf16.msra.mxu1 %v3297_v44  ;;  %v3348_v20 = vld [vmem:[%s4585_s1 + $0x5f0] ss:$12 sps:$4 sm:$0xff]  }
  0x5d   :  { %3032 = vmatprep.subr.bf16.mxu1 %v3301_v45  ;;  %v3315_v44 = vld [vmem:[%s4585_s1 + $0x3f0] ss:$12 sps:$4 sm:$0xff]   ;;  %v3322_v45 = vld [vmem:[%s4585_s1 + $0x40c] ss:$12 sps:$4 sm:$0xff]  }
  0x5f   :  { %1740 = vmatpush1.bf16.msra.mxu0 %v3216_v24  ;;  %v3355_v24 = vld [vmem:[%s4585_s1 + $0x6c8] ss:$12 sps:$4 sm:$0xff]  }
  0x60   :  { %1741 = vmatprep.subr.bf16.mxu0 %v3223_v25  ;;  %3033 = vmatpush3.bf16.msra.mxu1 %v3302_v48  ;;  %v3293_v25 = vld [vmem:[%s4585_s1 + $0x390] ss:$12 sps:$4 sm:$0xff]   ;;  %v3320_v48 = vld [vmem:[%s4585_s1 + $0x408] ss:$12 sps:$4 sm:$0xff]  }
  0x61   :  { %3034 = vmatprep.subr.bf16.mxu1 %v3306_v49  ;;  %v3327_v49 = vld [vmem:[%s4585_s1 + $0x424] ss:$12 sps:$4 sm:$0xff]  }
  0x63   :  { %1742 = vmatpush1.bf16.msra.mxu0 %v3221_v28  ;;  %v3356_v28 = vld [vmem:[%s4585_s1 + $0x608] ss:$12 sps:$4 sm:$0xff]  }
  0x64   :  { %1743 = vmatprep.subr.bf16.mxu0 %v3228_v29  ;;  %3035 = vmatpush3.bf16.msra.mxu1 %v3307_v52  ;;  %v3360_v29 = vld [vmem:[%s4585_s1 + $0x6e0] ss:$12 sps:$4 sm:$0xff]  }
  0x65   :  { %3042 = vmatprep.subr.bf16.mxu1 %v3313_v53  ;;  %v3325_v52 = vld [vmem:[%s4585_s1 + $0x420] ss:$12 sps:$4 sm:$0xff]   ;;  %v3332_v53 = vld [vmem:[%s4585_s1 + $0x43c] ss:$12 sps:$4 sm:$0xff]  }
  0x67   :  { %1744 = vmatpush1.bf16.msra.mxu0 %v3226_v32  ;;  %2002 = vmatmul.mubr.bf16.vlgmr.msra.gmra.mrb[8].mxu1 %v3946_v56  ;;  %v3361_v32 = vld [vmem:[%s4585_s1 + $0x620] ss:$12 sps:$4 sm:$0xff]  }
  0x68   :  { %1745 = vmatprep.subr.bf16.mxu0 %v3233_v33  ;;  %3043 = vmatpush3.bf16.msra.mxu1 %v3314_v57  ;;  %v3365_v33 = vld [vmem:[%s4585_s1 + $0x6f8] ss:$12 sps:$4 sm:$0xff]  }
  0x69   :  { %3044 = vmatprep.subr.bf16.mxu1 %v3318_v58  ;;  %2041 = vmatprep.mubr.bf16.mxu1 %v3992_v7  ;;  %v3330_v57 = vld [vmem:[%s4585_s1 + $0x438] ss:$12 sps:$4 sm:$0xff]   ;;  %v3337_v58 = vld [vmem:[%s4585_s1 + $0x454] ss:$12 sps:$4 sm:$0xff]  }
  0x6b   :  { %1746 = vmatpush1.bf16.msra.mxu0 %v3231_v36  ;;  %v3310_v36 = vld [vmem:[%s4585_s1 + $0x3dc] ss:$12 sps:$4 sm:$0xff]  }
  0x6c   :  { %1747 = vmatprep.subr.bf16.mxu0 %v3238_v37  ;;  %3045 = vmatpush3.bf16.msra.mxu1 %v3319_v61  ;;  %v4082_v37 = vcombine.high %v31_v35, %v31_v35  ;;  %v4151_v61 = vcombine.low %v31_v35, %v31_v35  ;;  %v3418_v35 = vld [vmem:[%s4585_s1 + $0x618] ss:$12 sps:$4 sm:$0xff]  }
  0x6d   :  { %3046 = vmatprep.subr.bf16.mxu1 %v3323_v62  ;;  %v3342_v62 = vld [vmem:[%s4585_s1 + $0x46c] ss:$12 sps:$4 sm:$0xff]  }
  0x6f   :  { %1748 = vmatpush1.bf16.msra.mxu0 %v3236_v42  ;;  %v3371_v42 = vld [vmem:[%s4585_s1 + $0x650] ss:$12 sps:$4 sm:$0xff]  }
  0x70   :  { %1749 = vmatprep.subr.bf16.mxu0 %v3243_v43  ;;  %3047 = vmatpush3.bf16.msra.mxu1 %v3324_v1  ;;  %v3375_v43 = vld [vmem:[%s4585_s1 + $0x728] ss:$12 sps:$4 sm:$0xff]   ;;  %v3345_v1 = vld [vmem:[%s4585_s1 + $0x480] ss:$12 sps:$4 sm:$0xff]  }
  0x71   :  { %3048 = vmatprep.subr.bf16.mxu1 %v3328_v2  ;;  %v3352_v2 = vld [vmem:[%s4585_s1 + $0x49c] ss:$12 sps:$4 sm:$0xff]  }
  0x73   :  { %1750 = vmatpush1.bf16.msra.mxu0 %v3241_v46  ;;  %v3376_v46 = vld [vmem:[%s4585_s1 + $0x668] ss:$12 sps:$4 sm:$0xff]  }
  0x74   :  { %1751 = vmatprep.subr.bf16.mxu0 %v3248_v47  ;;  %3049 = vmatpush3.bf16.msra.mxu1 %v3329_v6  ;;  %v3380_v47 = vld [vmem:[%s4585_s1 + $0x740] ss:$12 sps:$4 sm:$0xff]   ;;  %v3362_v6 = vld [vmem:[%s4585_s1 + $0x4c8] ss:$12 sps:$4 sm:$0xff]  }
  0x75   :  { %3050 = vmatprep.subr.bf16.mxu1 %v3333_v8  ;;  %v3367_v8 = vld [vmem:[%s4585_s1 + $0x4e0] ss:$12 sps:$4 sm:$0xff]  }
  0x77   :  { %1752 = vmatpush1.bf16.msra.mxu0 %v3246_v50  ;;  %v3381_v50 = vld [vmem:[%s4585_s1 + $0x680] ss:$12 sps:$4 sm:$0xff]  }
  0x78   :  { %1753 = vmatprep.subr.bf16.mxu0 %v3253_v51  ;;  %3051 = vmatpush3.bf16.msra.mxu1 %v3334_v11  ;;  %v3385_v51 = vld [vmem:[%s4585_s1 + $0x758] ss:$12 sps:$4 sm:$0xff]   ;;  %v3379_v11 = vld [vmem:[%s4585_s1 + $0x514] ss:$12 sps:$4 sm:$0xff]  }
  0x79   :  { %3052 = vmatprep.subr.bf16.mxu1 %v3338_v12  ;;  %v3377_v12 = vld [vmem:[%s4585_s1 + $0x510] ss:$12 sps:$4 sm:$0xff]  }
  0x7b   :  { %1754 = vmatpush1.bf16.msra.mxu0 %v3251_v54  ;;  %v3386_v54 = vld [vmem:[%s4585_s1 + $0x698] ss:$12 sps:$4 sm:$0xff]  }
  0x7c   :  { %1755 = vmatprep.subr.bf16.mxu0 %v3258_v55  ;;  %3053 = vmatpush3.bf16.msra.mxu1 %v3339_v15  ;;  %v3390_v55 = vld [vmem:[%s4585_s1 + $0x770] ss:$12 sps:$4 sm:$0xff]  }
  0x7d   :  { %3054 = vmatprep.subr.bf16.mxu1 %v3343_v16  ;;  %v3389_v15 = vld [vmem:[%s4585_s1 + $0x544] ss:$12 sps:$4 sm:$0xff]   ;;  %v3387_v16 = vld [vmem:[%s4585_s1 + $0x540] ss:$12 sps:$4 sm:$0xff]  }
  0x7f   :  { %1756 = vmatpush1.bf16.msra.mxu0 %v3256_v59  ;;  %v3391_v59 = vld [vmem:[%s4585_s1 + $0x6b0] ss:$12 sps:$4 sm:$0xff]  }
  0x80   :  { %1766 = vmatprep.subr.bf16.mxu0 %v3265_v60  ;;  %3055 = vmatpush3.bf16.msra.mxu1 %v3344_v19  ;;  %v3335_v60 = vld [vmem:[%s4585_s1 + $0x450] ss:$12 sps:$4 sm:$0xff]   ;;  %v3399_v19 = vld [vmem:[%s4585_s1 + $0x574] ss:$12 sps:$4 sm:$0xff]  }
  0x81   :  { %3056 = vmatprep.subr.bf16.mxu1 %v3348_v20  ;;  %v3397_v20 = vld [vmem:[%s4585_s1 + $0x570] ss:$12 sps:$4 sm:$0xff]  }
  0x82   :  { %1758 = vmatmul.mubr.bf16.vlgmr.msra.gmra.mrb[0].mxu0 %v3847_v22  ;;  %v3295_v22 = vld [vmem:[%s4585_s1 + $0x394] ss:$12 sps:$4 sm:$0xff]  }
  0x83   :  { %1767 = vmatpush1.bf16.msra.mxu0 %v3263_v63  ;;  %1798 = vmatprep.mubr.bf16.mxu0 %v2666_v41  ;;  %v3317_v41 = vld [vmem:[%s4585_s1 + $0x3f4] ss:$12 sps:$4 sm:$0xff]  }
  0x84   :  { %1768 = vmatprep.subr.bf16.mxu0 %v3270_v0  ;;  %3057 = vmatpush3.bf16.msra.mxu1 %v3349_v23  ;;  %v3340_v63 = vld [vmem:[%s4585_s1 + $0x468] ss:$12 sps:$4 sm:$0xff]   ;;  %v3347_v0 = vld [vmem:[%s4585_s1 + $0x484] ss:$12 sps:$4 sm:$0xff]  }
  0x85   :  { %3064 = vmatprep.subr.bf16.mxu1 %v3355_v24  ;;  %v3405_v23 = vld [vmem:[%s4585_s1 + $0x5a4] ss:$12 sps:$4 sm:$0xff]   ;;  %v3403_v24 = vld [vmem:[%s4585_s1 + $0x5a0] ss:$12 sps:$4 sm:$0xff]  }
  0x87   :  { %1769 = vmatpush1.bf16.msra.mxu0 %v3268_v3  ;;  %2042 = vmatmul.mubr.bf16.vlgmr.msra.gmra.mrb[12].mxu1 %v4052_v27  ;;  %v3350_v3 = vld [vmem:[%s4585_s1 + $0x498] ss:$12 sps:$4 sm:$0xff]  }
  0x88   :  { %1770 = vmatprep.subr.bf16.mxu0 %v3275_v4  ;;  %3065 = vmatpush3.bf16.msra.mxu1 %v3356_v28  ;;  %v3359_v4 = vld [vmem:[%s4585_s1 + $0x4b4] ss:$12 sps:$4 sm:$0xff]  }
  0x89   :  { %3066 = vmatprep.subr.bf16.mxu1 %v3360_v29  ;;  %2081 = vmatprep.mubr.bf16.mxu1 %v4082_v37  ;;  %v3411_v28 = vld [vmem:[%s4585_s1 + $0x5d4] ss:$12 sps:$4 sm:$0xff]   ;;  %v3409_v29 = vld [vmem:[%s4585_s1 + $0x5d0] ss:$12 sps:$4 sm:$0xff]  }
  0x8b   :  { %1771 = vmatpush1.bf16.msra.mxu0 %v3273_v9  ;;  %v3374_v9 = vld [vmem:[%s4585_s1 + $0x4fc] ss:$12 sps:$4 sm:$0xff]  }
  0x8c   :  { %1772 = vmatprep.subr.bf16.mxu0 %v3280_v10  ;;  %3067 = vmatpush3.bf16.msra.mxu1 %v3361_v32  ;;  %v3372_v10 = vld [vmem:[%s4585_s1 + $0x4f8] ss:$12 sps:$4 sm:$0xff]  }
  0x8d   :  { %3068 = vmatprep.subr.bf16.mxu1 %v3365_v33  ;;  %v3417_v32 = vld [vmem:[%s4585_s1 + $0x604] ss:$12 sps:$4 sm:$0xff]   ;;  %v3415_v33 = vld [vmem:[%s4585_s1 + $0x600] ss:$12 sps:$4 sm:$0xff]  }
  0x8f   :  { %1773 = vmatpush1.bf16.msra.mxu0 %v3278_v13  ;;  %v3384_v13 = vld [vmem:[%s4585_s1 + $0x52c] ss:$12 sps:$4 sm:$0xff]  }
  0x90   :  { %1774 = vmatprep.subr.bf16.mxu0 %v3285_v14  ;;  %3069 = vmatpush3.bf16.msra.mxu1 %v3366_v38  ;;  %v3382_v14 = vld [vmem:[%s4585_s1 + $0x528] ss:$12 sps:$4 sm:$0xff]   ;;  %v3421_v38 = vld [vmem:[%s4585_s1 + $0x630] ss:$12 sps:$4 sm:$0xff]  }
  0x91   :  { %3070 = vmatprep.subr.bf16.mxu1 %v3370_v39  ;;  %v3429_v39 = vld [vmem:[%s4585_s1 + $0x664] ss:$12 sps:$4 sm:$0xff]  }
  0x93   :  { %1775 = vmatpush1.bf16.msra.mxu0 %v3283_v17  ;;  %v3394_v17 = vld [vmem:[%s4585_s1 + $0x55c] ss:$12 sps:$4 sm:$0xff]  }
  0x94   :  { %1776 = vmatprep.subr.bf16.mxu0 %v3290_v18  ;;  %3071 = vmatpush3.bf16.msra.mxu1 %v3371_v42  ;;  %v3392_v18 = vld [vmem:[%s4585_s1 + $0x558] ss:$12 sps:$4 sm:$0xff]  }
  0x95   :  { %3072 = vmatprep.subr.bf16.mxu1 %v3375_v43  ;;  %v3432_v43 = vld [vmem:[%s4585_s1 + $0x67c] ss:$12 sps:$4 sm:$0xff]  }
  0x97   :  { %1777 = vmatpush1.bf16.msra.mxu0 %v3288_v21  ;;  %v3402_v21 = vld [vmem:[%s4585_s1 + $0x58c] ss:$12 sps:$4 sm:$0xff]  }
  0x98   :  { %1778 = vmatprep.subr.bf16.mxu0 %v3295_v22  ;;  %3073 = vmatpush3.bf16.msra.mxu1 %v3376_v46  ;;  %v3400_v22 = vld [vmem:[%s4585_s1 + $0x588] ss:$12 sps:$4 sm:$0xff]  }
  0x99   :  { %3074 = vmatprep.subr.bf16.mxu1 %v3380_v47  ;;  %v3430_v47 = vld [vmem:[%s4585_s1 + $0x678] ss:$12 sps:$4 sm:$0xff]  }
  0x9b   :  { %1779 = vmatpush1.bf16.msra.mxu0 %v3293_v25  ;;  %v3408_v25 = vld [vmem:[%s4585_s1 + $0x5bc] ss:$12 sps:$4 sm:$0xff]  }
  0x9c   :  { %1780 = vmatprep.subr.bf16.mxu0 %v3300_v26  ;;  %3075 = vmatpush3.bf16.msra.mxu1 %v3381_v50  ;;  %v3406_v26 = vld [vmem:[%s4585_s1 + $0x5b8] ss:$12 sps:$4 sm:$0xff]  }
  0x9d   :  { %3076 = vmatprep.subr.bf16.mxu1 %v3385_v51  ;;  %v3438_v50 = vld [vmem:[%s4585_s1 + $0x6ac] ss:$12 sps:$4 sm:$0xff]   ;;  %v3463_v51 = vld [vmem:[%s4587_s3] ss:$8 sps:$4 sm:$0xff]  }
  0x9f   :  { %1781 = vmatpush1.bf16.msra.mxu0 %v3298_v30  ;;  %v3414_v30 = vld [vmem:[%s4585_s1 + $0x5ec] ss:$12 sps:$4 sm:$0xff]  }
  0xa0   :  { %1782 = vmatprep.subr.bf16.mxu0 %v3305_v31  ;;  %3077 = vmatpush3.bf16.msra.mxu1 %v3386_v54  ;;  %v3412_v31 = vld [vmem:[%s4585_s1 + $0x5e8] ss:$12 sps:$4 sm:$0xff]  }
  0xa1   :  { %3078 = vmatprep.subr.bf16.mxu1 %v3390_v55  ;;  %v3436_v54 = vld [vmem:[%s4585_s1 + $0x6a8] ss:$12 sps:$4 sm:$0xff]   ;;  %v3441_v55 = vld [vmem:[%s4585_s1 + $0x6c4] ss:$12 sps:$4 sm:$0xff]  }
  0xa3   :  { %1783 = vmatpush1.bf16.msra.mxu0 %v3303_v34  ;;  %v3420_v34 = vld [vmem:[%s4585_s1 + $0x61c] ss:$12 sps:$4 sm:$0xff]  }
  0xa4   :  { %1784 = vmatprep.subr.bf16.mxu0 %v3310_v36  ;;  %3079 = vmatpush3.bf16.msra.mxu1 %v3391_v59  ;;  %v3423_v36 = vld [vmem:[%s4585_s1 + $0x634] ss:$12 sps:$4 sm:$0xff]  }
  0xa5   :  { %v3439_v59 = vld [vmem:[%s4585_s1 + $0x6c0] ss:$12 sps:$4 sm:$0xff]  }
  0xa7   :  { %1785 = vmatpush1.bf16.msra.mxu0 %v3308_v40  ;;  %2082 = vmatmul.mubr.bf16.vlgmr.msra.gmra.mrb[16].mxu1 %v4151_v61 }
  0xa8   :  { %1786 = vmatprep.subr.bf16.mxu0 %v3317_v41  ;;  %v3427_v41 = vld [vmem:[%s4585_s1 + $0x660] ss:$12 sps:$4 sm:$0xff]  }
  0xab   :  { %1787 = vmatpush1.bf16.msra.mxu0 %v3315_v44 }
  0xac   :  { %1788 = vmatprep.subr.bf16.mxu0 %v3322_v45 }
  0xaf   :  { %1789 = vmatpush1.bf16.msra.mxu0 %v3320_v48  ;;  %v3435_v48 = vld [vmem:[%s4585_s1 + $0x694] ss:$12 sps:$4 sm:$0xff]  }
  0xb0   :  { %1790 = vmatprep.subr.bf16.mxu0 %v3327_v49  ;;  %v3433_v49 = vld [vmem:[%s4585_s1 + $0x690] ss:$12 sps:$4 sm:$0xff]  }
  0xb3   :  { %1791 = vmatpush1.bf16.msra.mxu0 %v3325_v52  ;;  %v3465_v52 = vld [vmem:[%s4587_s3 + $0x4] ss:$8 sps:$4 sm:$0xff]  }
  0xb4   :  { %1792 = vmatprep.subr.bf16.mxu0 %v3332_v53  ;;  %v3468_v53 = vld [vmem:[%s4587_s3 + $0x14] ss:$8 sps:$4 sm:$0xff]   ;;  %2395 = vmatprep.subr.bf16.mxu1 %v3465_v52 }
  0xb5   :  { %2396 = vmatpush1.bf16.msra.mxu1 %v3463_v51 }
  0xb6   :  { %2397 = vmatprep.subr.bf16.mxu1 %v3468_v53 }
  0xb7   :  { %1793 = vmatpush1.bf16.msra.mxu0 %v3330_v57  ;;  %v3466_v57 = vld [vmem:[%s4587_s3 + $0x10] ss:$8 sps:$4 sm:$0xff]  }
  0xb8   :  { %1794 = vmatprep.subr.bf16.mxu0 %v3337_v58  ;;  %v3471_v58 = vld [vmem:[%s4587_s3 + $0x24] ss:$8 sps:$4 sm:$0xff]  }
  0xb9   :  { %2398 = vmatpush1.bf16.msra.mxu1 %v3466_v57 }
  0xba   :  { %2399 = vmatprep.subr.bf16.mxu1 %v3471_v58 }
  0xbb   :  { %1795 = vmatpush1.bf16.msra.mxu0 %v3335_v60  ;;  %v3444_v60 = vld [vmem:[%s4585_s1 + $0x6dc] ss:$12 sps:$4 sm:$0xff]  }
  0xbc   :  { %1796 = vmatprep.subr.bf16.mxu0 %v3342_v62  ;;  %v354_v62 = vlaneseq }
  0xbf   :  { %1797 = vmatpush1.bf16.msra.mxu0 %v3340_v63  ;;  %v3469_v63 = vld [vmem:[%s4587_s3 + $0x20] ss:$8 sps:$4 sm:$0xff]  }
  0xc0   :  { %1807 = vmatprep.subr.bf16.mxu0 %v3347_v0  ;;  %v3474_v0 = vld [vmem:[%s4587_s3 + $0x34] ss:$8 sps:$4 sm:$0xff]   ;;  %2400 = vmatpush1.bf16.msra.mxu1 %v3469_v63 }
  0xc1   :  { %2401 = vmatprep.subr.bf16.mxu1 %v3474_v0  ;;  %v3507_v0 = vld [vmem:[%s4587_s3 + $0xe4] ss:$8 sps:$4 sm:$0xff]  }
  0xc2   :  { %1799 = vmatmul.mubr.bf16.vlgmr.msra.gmra.mrb[0].mxu0 %v3946_v56  ;;  %v3364_v56 = vld [vmem:[%s4585_s1 + $0x4cc] ss:$12 sps:$4 sm:$0xff]  }
  0xc3   :  { %1808 = vmatpush1.bf16.msra.mxu0 %v3345_v1  ;;  %1839 = vmatprep.mubr.bf16.mxu0 %v3992_v7  ;;  %v3369_v7 = vld [vmem:[%s4585_s1 + $0x4e4] ss:$12 sps:$4 sm:$0xff]  }
  0xc4   :  { %1809 = vmatprep.subr.bf16.mxu0 %v3352_v2  ;;  %v3442_v1 = vld [vmem:[%s4585_s1 + $0x6d8] ss:$12 sps:$4 sm:$0xff]   ;;  %v3447_v2 = vld [vmem:[%s4585_s1 + $0x6f4] ss:$12 sps:$4 sm:$0xff]  }
  0xc7   :  { %1810 = vmatpush1.bf16.msra.mxu0 %v3350_v3  ;;  %v4346_v3 = vshrl.u32 %v354_v62, 7 }
  0xc8   :  { %1811 = vmatprep.subr.bf16.mxu0 %v3359_v4  ;;  %v3472_v4 = vld [vmem:[%s4587_s3 + $0x30] ss:$8 sps:$4 sm:$0xff]  }
  0xc9   :  { %2402 = vmatpush1.bf16.msra.mxu1 %v3472_v4  ;;  %v3508_v4 = vld [vmem:[%s4587_s3 + $0xf0] ss:$8 sps:$4 sm:$0xff]  }
  0xcb   :  { %1812 = vmatpush1.bf16.msra.mxu0 %v3357_v5  ;;  %v3477_v5 = vld [vmem:[%s4587_s3 + $0x44] ss:$8 sps:$4 sm:$0xff]  }
  0xcc   :  { %1813 = vmatprep.subr.bf16.mxu0 %v3364_v56  ;;  %v3445_v56 = vld [vmem:[%s4585_s1 + $0x6f0] ss:$12 sps:$4 sm:$0xff]   ;;  %2403 = vmatprep.subr.bf16.mxu1 %v3477_v5  ;;  %v3513_v5 = vld [vmem:[%s4587_s3 + $0x104] ss:$8 sps:$4 sm:$0xff]  }
  0xcf   :  { %1814 = vmatpush1.bf16.msra.mxu0 %v3362_v6  ;;  %v3450_v6 = vld [vmem:[%s4585_s1 + $0x70c] ss:$12 sps:$4 sm:$0xff]  }
  0xd0   :  { %1815 = vmatprep.subr.bf16.mxu0 %v3369_v7  ;;  %v4363_v7 = vld [vmem:[%s4588_s2] sm:$0x7] }
  0xd3   :  { %1816 = vmatpush1.bf16.msra.mxu0 %v3367_v8  ;;  %v364_v8 = vsub.s32 2, %v4346_v3 }
  0xd4   :  { %1817 = vmatprep.subr.bf16.mxu0 %v3374_v9  ;;  %v3475_v9 = vld [vmem:[%s4587_s3 + $0x40] ss:$8 sps:$4 sm:$0xff]  }
  0xd5   :  { %2404 = vmatpush1.bf16.msra.mxu1 %v3475_v9 }
  0xd7   :  { %1818 = vmatpush1.bf16.msra.mxu0 %v3372_v10  ;;  %v3480_v10 = vld [vmem:[%s4587_s3 + $0x54] ss:$8 sps:$4 sm:$0xff]  }
  0xd8   :  { %1819 = vmatprep.subr.bf16.mxu0 %v3379_v11  ;;  %v3448_v11 = vld [vmem:[%s4585_s1 + $0x708] ss:$12 sps:$4 sm:$0xff]   ;;  %2405 = vmatprep.subr.bf16.mxu1 %v3480_v10 }
  0xdb   :  { %1820 = vmatpush1.bf16.msra.mxu0 %v3377_v12  ;;  %v3478_v12 = vld [vmem:[%s4587_s3 + $0x50] ss:$8 sps:$4 sm:$0xff]  }
  0xdc   :  { %1821 = vmatprep.subr.bf16.mxu0 %v3384_v13  ;;  %v3453_v13 = vld [vmem:[%s4585_s1 + $0x724] ss:$12 sps:$4 sm:$0xff]   ;;  %2406 = vmatpush1.bf16.msra.mxu1 %v3478_v12 }
  0xdf   :  { %1822 = vmatpush1.bf16.msra.mxu0 %v3382_v14  ;;  %v365_v14 = vrot.slane %v4363_v7, %v364_v8 }
  0xe0   :  { %1823 = vmatprep.subr.bf16.mxu0 %v3389_v15  ;;  %v3483_v15 = vld [vmem:[%s4587_s3 + $0x64] ss:$8 sps:$4 sm:$0xff]  }
  0xe1   :  { %2407 = vmatprep.subr.bf16.mxu1 %v3483_v15 }
  0xe3   :  { %1824 = vmatpush1.bf16.msra.mxu0 %v3387_v16  ;;  %v3451_v16 = vld [vmem:[%s4585_s1 + $0x720] ss:$12 sps:$4 sm:$0xff]  }
  0xe4   :  { %1825 = vmatprep.subr.bf16.mxu0 %v3394_v17  ;;  %v3481_v17 = vld [vmem:[%s4587_s3 + $0x60] ss:$8 sps:$4 sm:$0xff]  }
  0xe5   :  { %2408 = vmatpush1.bf16.msra.mxu1 %v3481_v17 }
  0xe7   :  { %1826 = vmatpush1.bf16.msra.mxu0 %v3392_v18 }
  0xe8   :  { %1827 = vmatprep.subr.bf16.mxu0 %v3399_v19 }
  0xeb   :  { %1828 = vmatpush1.bf16.msra.mxu0 %v3397_v20 }
  0xec   :  { %1829 = vmatprep.subr.bf16.mxu0 %v3402_v21  ;;  %v3456_v21 = vld [vmem:[%s4585_s1 + $0x73c] ss:$12 sps:$4 sm:$0xff]  }
  0xef   :  { %1830 = vmatpush1.bf16.msra.mxu0 %v3400_v22 }
  0xf0   :  { %1831 = vmatprep.subr.bf16.mxu0 %v3405_v23 }
  0xf3   :  { %1832 = vmatpush1.bf16.msra.mxu0 %v3403_v24  ;;  %v3486_v24 = vld [vmem:[%s4587_s3 + $0x74] ss:$8 sps:$4 sm:$0xff]  }
  0xf4   :  { %1833 = vmatprep.subr.bf16.mxu0 %v3408_v25  ;;  %2409 = vmatprep.subr.bf16.mxu1 %v3486_v24  ;;  %v3517_v24 = vld [vmem:[%s4587_s3 + $0x120] ss:$8 sps:$4 sm:$0xff]  }
  0xf7   :  { %1834 = vmatpush1.bf16.msra.mxu0 %v3406_v26 }
  0xf8   :  { %1835 = vmatprep.subr.bf16.mxu0 %v3411_v28  ;;  %v3454_v28 = vld [vmem:[%s4585_s1 + $0x738] ss:$12 sps:$4 sm:$0xff]  }
  0xfa   :  { %v2992_v40 = vpop.f32.mrb[0].mxu1 }
  0xfb   :  { %1836 = vmatpush1.bf16.msra.mxu0 %v3409_v29  ;;  %v2993_v42 = vpop.f32.mrb[1].mxu1  ;;  %v3484_v29 = vld [vmem:[%s4587_s3 + $0x70] ss:$8 sps:$4 sm:$0xff]  }
  0xfc   :  { %1837 = vmatprep.subr.bf16.mxu0 %v3414_v30  ;;  %v4293_v44 = vadd.f32 %v2993_v42, %v2992_v40  ;;  %v2995_v45 = vpop.f32.mrb[2].mxu1  ;;  %v3459_v30 = vld [vmem:[%s4585_s1 + $0x754] ss:$12 sps:$4 sm:$0xff]   ;;  %2410 = vmatpush1.bf16.msra.mxu1 %v3484_v29  ;;  %v3496_v40 = vld [vmem:[%s4587_s3 + $0xb0] ss:$8 sps:$4 sm:$0xff]  }
  0xfd   :  { %v2996_v46 = vpop.f32.mrb[3].mxu1  ;;  %v3499_v42 = vld [vmem:[%s4587_s3 + $0xc0] ss:$8 sps:$4 sm:$0xff]  }
  0xfe   :  { %v1924_v18 = vadd.f32 %v4293_v44, %v365_v14  ;;  %v3523_v29 = vld [vmem:[%s4587_s3 + $0x140] ss:$8 sps:$4 sm:$0xff]  }
  0xff   :  { %1838 = vmatpush1.bf16.msra.mxu0 %v3412_v31  ;;  %v3489_v31 = vld [vmem:[%s4587_s3 + $0x84] ss:$8 sps:$4 sm:$0xff]  }
 0x100   :  { %1848 = vmatprep.subr.bf16.mxu0 %v3417_v32  ;;  %v3457_v32 = vld [vmem:[%s4585_s1 + $0x750] ss:$12 sps:$4 sm:$0xff]   ;;  %2411 = vmatprep.subr.bf16.mxu1 %v3489_v31 }
 0x101   :  { %v3526_v31 = vld [vmem:[%s4587_s3 + $0x150] ss:$8 sps:$4 sm:$0xff]  }
 0x102   :  { %1840 = vmatmul.mubr.bf16.vlgmr.msra.gmra.mrb[0].mxu0 %v4052_v27  ;;  %v3426_v27 = vld [vmem:[%s4585_s1 + $0x64c] ss:$12 sps:$4 sm:$0xff]  }
 0x103   :  { %1849 = vmatpush1.bf16.msra.mxu0 %v3415_v33  ;;  %1880 = vmatprep.mubr.bf16.mxu0 %v4082_v37  ;;  %v3424_v37 = vld [vmem:[%s4585_s1 + $0x648] ss:$12 sps:$4 sm:$0xff]  }
 0x104   :  { %1850 = vmatprep.subr.bf16.mxu0 %v3420_v34  ;;  %v3487_v33 = vld [vmem:[%s4587_s3 + $0x80] ss:$8 sps:$4 sm:$0xff]   ;;  %v3462_v34 = vld [vmem:[%s4585_s1 + $0x76c] ss:$12 sps:$4 sm:$0xff]  }
 0x105   :  { %2412 = vmatpush1.bf16.msra.mxu1 %v3487_v33  ;;  %v3529_v33 = vld [vmem:[%s4587_s3 + $0x160] ss:$8 sps:$4 sm:$0xff]  }
 0x107   :  { %1851 = vmatpush1.bf16.msra.mxu0 %v3418_v35  ;;  %v3492_v35 = vld [vmem:[%s4587_s3 + $0x94] ss:$8 sps:$4 sm:$0xff]  }
 0x108   :  { %1852 = vmatprep.subr.bf16.mxu0 %v3423_v36  ;;  %v3460_v36 = vld [vmem:[%s4585_s1 + $0x768] ss:$12 sps:$4 sm:$0xff]   ;;  %2413 = vmatprep.subr.bf16.mxu1 %v3492_v35  ;;  %v3532_v35 = vld [vmem:[%s4587_s3 + $0x170] ss:$8 sps:$4 sm:$0xff]  }
 0x10b   :  { %1853 = vmatpush1.bf16.msra.mxu0 %v3421_v38  ;;  %v3490_v38 = vld [vmem:[%s4587_s3 + $0x90] ss:$8 sps:$4 sm:$0xff]  }
 0x10c   :  { %1854 = vmatprep.subr.bf16.mxu0 %v3426_v27  ;;  %v3495_v27 = vld [vmem:[%s4587_s3 + $0xa4] ss:$8 sps:$4 sm:$0xff]   ;;  %2414 = vmatpush1.bf16.msra.mxu1 %v3490_v38 }
 0x10d   :  { %2415 = vmatprep.subr.bf16.mxu1 %v3495_v27  ;;  %v3535_v38 = vld [vmem:[%s4589_s5 + $0x40] sm:$0xff]  }
 0x10e   :  { %v3536_v27 = vld [vmem:[%s4589_s5] sm:$0xff]  }
 0x10f   :  { %1855 = vmatpush1.bf16.msra.mxu0 %v3424_v37  ;;  %v3493_v37 = vld [vmem:[%s4587_s3 + $0xa0] ss:$8 sps:$4 sm:$0xff]  }
 0x110   :  { %1856 = vmatprep.subr.bf16.mxu0 %v3429_v39  ;;  %v3498_v39 = vld [vmem:[%s4587_s3 + $0xb4] ss:$8 sps:$4 sm:$0xff]   ;;  %2416 = vmatpush1.bf16.msra.mxu1 %v3493_v37 }
 0x111   :  { %2417 = vmatprep.subr.bf16.mxu1 %v3498_v39  ;;  %v3537_v39 = vld [vmem:[%s4589_s5 + $0x48] sm:$0xff]  }
 0x113   :  { %1857 = vmatpush1.bf16.msra.mxu0 %v3427_v41  ;;  %v3501_v41 = vld [vmem:[%s4587_s3 + $0xc4] ss:$8 sps:$4 sm:$0xff]  }
 0x114   :  { %1858 = vmatprep.subr.bf16.mxu0 %v3432_v43  ;;  %2418 = vmatpush1.bf16.msra.mxu1 %v3496_v40  ;;  %v3502_v43 = vld [vmem:[%s4587_s3 + $0xd0] ss:$8 sps:$4 sm:$0xff]   ;;  %v3538_v40 = vld [vmem:[%s4589_s5 + $0x8] sm:$0xff]  }
 0x115   :  { %2419 = vmatprep.subr.bf16.mxu1 %v3501_v41  ;;  %v3539_v41 = vld [vmem:[%s4589_s5 + $0x50] sm:$0xff]  }
 0x117   :  { %1859 = vmatpush1.bf16.msra.mxu0 %v3430_v47 }
 0x118   :  { %1860 = vmatprep.subr.bf16.mxu0 %v3435_v48  ;;  %2420 = vmatpush1.bf16.msra.mxu1 %v3499_v42  ;;  %v3540_v42 = vld [vmem:[%s4589_s5 + $0x10] sm:$0xff]  }
 0x11a   :  { %v3014_v19 = vpop.f32.mrb[4].mxu1 }
 0x11b   :  { %1861 = vmatpush1.bf16.msra.mxu0 %v3433_v49  ;;  %v3015_v20 = vpop.f32.mrb[5].mxu1 }
 0x11c   :  { %1862 = vmatprep.subr.bf16.mxu0 %v3438_v50  ;;  %v3016_v22 = vadd.f32 %v3015_v20, %v3014_v19  ;;  %v3017_v23 = vpop.f32.mrb[6].mxu1  ;;  %v3511_v19 = vld [vmem:[%s4587_s3 + $0x100] ss:$8 sps:$4 sm:$0xff]  }
 0x11d   :  { %v3018_v25 = vpop.f32.mrb[7].mxu1  ;;  %v3519_v23 = vld [vmem:[%s4587_s3 + $0x124] ss:$8 sps:$4 sm:$0xff]  }
 0x11e   :  { %v1964_v26 = vadd.f32 %v3016_v22, %v1924_v18  ;;  %v3551_v22 = vmov 0   ;;  %v3522_v25 = vld [vmem:[%s4587_s3 + $0x134] ss:$8 sps:$4 sm:$0xff]  }
 0x11f   :  { %1863 = vmatpush1.bf16.msra.mxu0 %v3436_v54 }
 0x120   :  { %1864 = vmatprep.subr.bf16.mxu0 %v3441_v55 }
 0x123   :  { %1865 = vmatpush1.bf16.msra.mxu0 %v3439_v59 }
 0x124   :  { %1866 = vmatprep.subr.bf16.mxu0 %v3444_v60 }
 0x127   :  { %1867 = vmatpush1.bf16.msra.mxu0 %v3442_v1  ;;  %v3505_v1 = vld [vmem:[%s4587_s3 + $0xe0] ss:$8 sps:$4 sm:$0xff]  }
 0x128   :  { %1868 = vmatprep.subr.bf16.mxu0 %v3447_v2  ;;  %v3510_v2 = vld [vmem:[%s4587_s3 + $0xf4] ss:$8 sps:$4 sm:$0xff]  }
 0x12b   :  { %1869 = vmatpush1.bf16.msra.mxu0 %v3445_v56  ;;  %v356_v56 = vsub.s32 0, %v4346_v3 }
 0x12c   :  { %1870 = vmatprep.subr.bf16.mxu0 %v3450_v6  ;;  %v360_v6 = vsub.s32 1, %v4346_v3 }
 0x12d   :  { %v357_v8 = vrot.slane %v4363_v7, %v356_v56 }
 0x12e   :  { %v361_v9 = vrot.slane %v4363_v7, %v360_v6  ;;  %v3514_v7 = vld [vmem:[%s4587_s3 + $0x110] ss:$8 sps:$4 sm:$0xff]  }
 0x12f   :  { %1871 = vmatpush1.bf16.msra.mxu0 %v3448_v11 }
 0x130   :  { %1872 = vmatprep.subr.bf16.mxu0 %v3453_v13 }
 0x133   :  { %1873 = vmatpush1.bf16.msra.mxu0 %v3451_v16 }
 0x134   :  { %1874 = vmatprep.subr.bf16.mxu0 %v3456_v21  ;;  %v3516_v21 = vld [vmem:[%s4587_s3 + $0x114] ss:$8 sps:$4 sm:$0xff]  }
 0x137   :  { %1875 = vmatpush1.bf16.msra.mxu0 %v3454_v28  ;;  %v3525_v28 = vld [vmem:[%s4587_s3 + $0x144] ss:$8 sps:$4 sm:$0xff]  }
 0x138   :  { %1876 = vmatprep.subr.bf16.mxu0 %v3459_v30  ;;  %v3528_v30 = vld [vmem:[%s4587_s3 + $0x154] ss:$8 sps:$4 sm:$0xff]  }
 0x13a   :  { %v3036_v44 = vpop.f32.mrb[8].mxu1 }
 0x13b   :  { %1877 = vmatpush1.bf16.msra.mxu0 %v3457_v32  ;;  %v3037_v45 = vpop.f32.mrb[9].mxu1  ;;  %v3531_v32 = vld [vmem:[%s4587_s3 + $0x164] ss:$8 sps:$4 sm:$0xff]  }
 0x13c   :  { %1878 = vmatprep.subr.bf16.mxu0 %v3462_v34  ;;  %v3038_v46 = vadd.f32 %v3037_v45, %v3036_v44  ;;  %v3039_v47 = vpop.f32.mrb[10].mxu1  ;;  %v3534_v34 = vld [vmem:[%s4587_s3 + $0x174] ss:$8 sps:$4 sm:$0xff]   ;;  %v3543_v44 = vld [vmem:[%s4589_s5 + $0x60] sm:$0xff]  }
 0x13d   :  { %v3040_v48 = vpop.f32.mrb[11].mxu1  ;;  %v3544_v45 = vld [vmem:[%s4589_s5 + $0x20] sm:$0xff]   ;;  %v3546_v47 = vld [vmem:[%s4589_s5 + $0x28] sm:$0xff]  }
 0x13e   :  { %v2004_v49 = vadd.f32 %v3038_v46, %v1964_v26  ;;  %v3520_v26 = vld [vmem:[%s4587_s3 + $0x130] ss:$8 sps:$4 sm:$0xff]   ;;  %v3545_v46 = vld [vmem:[%s4589_s5 + $0x68] sm:$0xff]  }
 0x13f   :  { %1879 = vmatpush1.bf16.msra.mxu0 %v3460_v36  ;;  %v3547_v48 = vld [vmem:[%s4589_s5 + $0x70] sm:$0xff]  }
 0x142   :  { %1881 = vmatmul.mubr.bf16.vlgmr.msra.gmra.mrb[0].mxu0 %v4151_v61  ;;  %v3504_v61 = vld [vmem:[%s4587_s3 + $0xd4] ss:$8 sps:$4 sm:$0xff]  }
 0x143   :  { %2421 = vmatprep.subr.bf16.mxu1 %v3504_v61  ;;  %v3541_v61 = vld [vmem:[%s4589_s5 + $0x58] sm:$0xff]  }
 0x144   :  { %2422 = vmatpush1.bf16.msra.mxu1 %v3502_v43  ;;  %v3542_v43 = vld [vmem:[%s4589_s5 + $0x18] sm:$0xff]  }
 0x145   :  { %2423 = vmatprep.subr.bf16.mxu1 %v3507_v0 }
 0x148   :  { %2424 = vmatpush1.bf16.msra.mxu1 %v3505_v1 }
 0x149   :  { %2425 = vmatprep.subr.bf16.mxu1 %v3510_v2 }
 0x14c   :  { %2426 = vmatpush1.bf16.msra.mxu1 %v3508_v4 }
 0x14d   :  { %2436 = vmatprep.subr.bf16.mxu1 %v3513_v5  ;;  %v2959_v5 = vld [vmem:[%s4591_s6] ss:$0 sm:$0xff] }
 0x15a   :  { %v3058_v50 = vpop.f32.mrb[12].mxu1 }
 0x15b   :  { %v3059_v51 = vpop.f32.mrb[13].mxu1 }
 0x15c   :  { %v3060_v52 = vadd.f32 %v3059_v51, %v3058_v50  ;;  %v3061_v53 = vpop.f32.mrb[14].mxu1  ;;  %v3549_v50 = vld [vmem:[%s4589_s5 + $0x78] sm:$0xff]  }
 0x15d   :  { %v3062_v54 = vpop.f32.mrb[15].mxu1  ;;  %v3550_v51 = vld [vmem:[%s4589_s5 + $0x38] sm:$0xff]  }
 0x15e   :  { %v2044_v55 = vadd.f32 %v3060_v52, %v2004_v49  ;;  %v3548_v49 = vld [vmem:[%s4589_s5 + $0x30] sm:$0xff]   ;;  %v2143_v52 = vld [vmem:[%s4590_s4] sm:$0x3] }
 0x15f   :  { %v2148_v53 = vrot.slane %v2143_v52, %v356_v56  ;;  %v2152_v54 = vrot.slane %v2143_v52, %v360_v6 }
 0x17a   :  { %v3080_v57 = vpop.f32.mrb[16].mxu1 }
 0x17b   :  { %v3081_v58 = vpop.f32.mrb[17].mxu1 }
 0x17c   :  { %v3082_v59 = vadd.f32 %v3081_v58, %v3080_v57  ;;  %v3083_v60 = vpop.f32.mrb[18].mxu1 }
 0x17d   :  { %v3084_v62 = vpop.f32.mrb[19].mxu1 }
 0x17e   :  { %v4453_v63 = vadd.f32 %v3082_v59, %v2044_v55 }
 0x180   :  { %v2091_v36 = vmax.f32 %v4453_v63, 0.0 }
 0x182   :  { %v2094_v37 = vpack.c.bf16 %v2091_v36, %v2091_v36 }
 0x215   :  { %v1882_v10 = vpop.f32.mrb[0].mxu0 }
 0x216   :  { %v3108_v11 = vadd.f32 %v1882_v10, %v357_v8  ;;  %v1884_v12 = vpop.f32.mrb[1].mxu0 }
 0x217   :  { %v3109_v13 = vadd.f32 %v1884_v12, %v361_v9  ;;  %v1886_v14 = vpop.f32.mrb[2].mxu0 }
 0x218   :  { %v2089_v15 = vmax.f32 %v3108_v11, 0.0  ;;  %v1887_v16 = vpop.f32.mrb[3].mxu0 }
 0x219   :  { %v2090_v17 = vmax.f32 %v3109_v13, 0.0 }
 0x21a   :  { %v2092_v20 = vpack.c.bf16 %v2089_v15, %v2089_v15 }
 0x21b   :  { %v2093_v18 = vpack.c.bf16 %v2090_v17, %v2090_v17 }
 0x21d   :  { %2427 = vmatprep.mubr.bf16.mxu1 %v2093_v18 }
 0x21e   :  { %2428 = vmatmul.mubr.bf16.vlgmr.msra.gmra.mrb[20].mxu1 %v2092_v20 }
 0x21f   :  { %2437 = vmatpush1.bf16.msra.mxu1 %v3511_v19  ;;  %2468 = vmatprep.mubr.bf16.mxu1 %v3551_v22 }
 0x220   :  { %2438 = vmatprep.subr.bf16.mxu1 %v3516_v21 }
 0x223   :  { %2439 = vmatpush1.bf16.msra.mxu1 %v3514_v7 }
 0x224   :  { %2440 = vmatprep.subr.bf16.mxu1 %v3519_v23 }
 0x227   :  { %2441 = vmatpush1.bf16.msra.mxu1 %v3517_v24 }
 0x228   :  { %2442 = vmatprep.subr.bf16.mxu1 %v3522_v25 }
 0x22b   :  { %2443 = vmatpush1.bf16.msra.mxu1 %v3520_v26 }
 0x22c   :  { %2444 = vmatprep.subr.bf16.mxu1 %v3525_v28 }
 0x22f   :  { %2445 = vmatpush1.bf16.msra.mxu1 %v3523_v29 }
 0x230   :  { %2446 = vmatprep.subr.bf16.mxu1 %v3528_v30 }
 0x233   :  { %2447 = vmatpush1.bf16.msra.mxu1 %v3526_v31 }
 0x234   :  { %2448 = vmatprep.subr.bf16.mxu1 %v3531_v32 }
 0x237   :  { %2449 = vmatpush1.bf16.msra.mxu1 %v3529_v33 }
 0x238   :  { %2450 = vmatprep.subr.bf16.mxu1 %v3534_v34 }
 0x23b   :  { %2451 = vmatpush1.bf16.msra.mxu1 %v3532_v35 }
 0x23c   :  { %3086 = vmatprep.subr.bf16.mxu1 %v3535_v38 }
 0x23e   :  { %2469 = vmatmul.mubr.bf16.vlgmr.msra.gmra.mrb[20].mxu1 %v2094_v37 }
 0x23f   :  { %3087 = vmatpush3.bf16.msra.mxu1 %v3536_v27 }
 0x240   :  { %3088 = vmatprep.subr.bf16.mxu1 %v3537_v39 }
 0x243   :  { %3089 = vmatpush3.bf16.msra.mxu1 %v3538_v40 }
 0x244   :  { %3090 = vmatprep.subr.bf16.mxu1 %v3539_v41 }
 0x247   :  { %3091 = vmatpush3.bf16.msra.mxu1 %v3540_v42 }
 0x248   :  { %3092 = vmatprep.subr.bf16.mxu1 %v3541_v61 }
 0x24b   :  { %3093 = vmatpush3.bf16.msra.mxu1 %v3542_v43 }
 0x24c   :  { %3094 = vmatprep.subr.bf16.mxu1 %v3543_v44 }
 0x24f   :  { %3095 = vmatpush3.bf16.msra.mxu1 %v3544_v45 }
 0x250   :  { %3096 = vmatprep.subr.bf16.mxu1 %v3545_v46 }
 0x253   :  { %3097 = vmatpush3.bf16.msra.mxu1 %v3546_v47 }
 0x254   :  { %3098 = vmatprep.subr.bf16.mxu1 %v3547_v48 }
 0x257   :  { %3099 = vmatpush3.bf16.msra.mxu1 %v3548_v49 }
 0x258   :  { %3100 = vmatprep.subr.bf16.mxu1 %v3549_v50 }
 0x25b   :  { %3101 = vmatpush3.bf16.msra.mxu1 %v3550_v51 }
 0x311   :  { %v2470_v55 = vpop.f32.mrb[20].mxu1 }
 0x312   :  { %v3110_v57 = vadd.f32 %v2470_v55, %v2148_v53  ;;  %v2472_v58 = vpop.f32.mrb[21].mxu1 }
 0x313   :  { %v3111_v59 = vadd.f32 %v2472_v58, %v2152_v54  ;;  %v2474_v60 = vpop.f32.mrb[22].mxu1 }
 0x314   :  { %v2477_v62 = vmax.f32 %v3110_v57, 0.0  ;;  %v2475_v63 = vpop.f32.mrb[23].mxu1 }
 0x315   :  { %v2478_v0 = vmax.f32 %v3111_v59, 0.0 }
 0x316   :  { %v2479_v2 = vpack.c.bf16 %v2477_v62, %v2477_v62 }
 0x317   :  { %v2480_v1 = vpack.c.bf16 %v2478_v0, %v2478_v0 }
 0x319   :  { %2648 = vmatprep.mubr.bf16.mxu1 %v2480_v1 }
 0x31a   :  { %2649 = vmatmul.mubr.bf16.vlgmr.msra.gmra.mrb[24].mxu1 %v2479_v2 }
 0x3ed   :  { %v3102_v4 = vpop.f32.mrb[24].mxu1 }
 0x3ee   :  { %v3103_v56 = vpop.f32.mrb[25].mxu1 }
 0x3ef   :  { %v3104_v3 = vadd.f32 %v3103_v56, %v3102_v4  ;;  %v3105_v6 = vpop.f32.mrb[26].mxu1 }
 0x3f0   :  { %v3106_v8 = vpop.f32.mrb[27].mxu1 }
 0x3f1   :  { %v2651_v9 = vadd.f32 %v3104_v3, %v2959_v5 }
 0x3f3   :  { %2656 = vst [vmem:[%s4592_s7] sm:$0xff] %v2651_v9 }

</bundles_post_ra>
